<compile_context>
chip_gen: v7x
topology: tpu7x:2x2x1
jax: 0.10.0
libtpu: 0.0.40
codegen_flags: <defaults>
</compile_context>

<pallas_src>
import jax
import jax.numpy as jnp
from jax import lax
from jax.experimental import pallas as pl
from jax.experimental.pallas import tpu as pltpu

COMPUTE_DTYPE = jnp.bfloat16  # MXU operand dtype; accumulation stays f32


def encoder_kernel(x_ref, w_in_ref, b_in_ref, w_hid_ref, b_hid_ref,
                   w_out_ref, b_out_ref, o_ref, h_ref):
    # Input layer: cast the streamed x tile to bf16 in-kernel, matmul with
    # f32 accumulation, bias + ReLU in f32, then stage as bf16 in VMEM scratch.
    x = x_ref[...].astype(COMPUTE_DTYPE)
    h = jnp.dot(x, w_in_ref[...], preferred_element_type=jnp.float32)
    h_ref[...] = jnp.maximum(h + b_in_ref[...], 0.0).astype(h_ref.dtype)

    # Hidden layers (L is small -> fully unrolled so the LLO scheduler sees a
    # straight line).  Activations live in the bf16 VMEM scratch.
    n_hidden = w_hid_ref.shape[0]

    def body(i, carry):
        hh = jnp.dot(h_ref[...], w_hid_ref[i],
                     preferred_element_type=jnp.float32)
        h_ref[...] = jnp.maximum(hh + b_hid_ref[i], 0.0).astype(h_ref.dtype)
        return carry

    lax.fori_loop(0, n_hidden, body, 0, unroll=True)

    # Output layer.
    out = jnp.dot(h_ref[...], w_out_ref[...],
                  preferred_element_type=jnp.float32)
    o_ref[...] = jnp.maximum(out + b_out_ref[...], 0.0).astype(o_ref.dtype)


def _const_spec(shape, single_buffer):
    index_map = lambda i: (0,) * len(shape)
    if single_buffer:
        # Grid-invariant blocks: no pipelining needed -> halve their VMEM.
        return pl.BlockSpec(shape, index_map, pipeline_mode=pl.Buffered(1))
    return pl.BlockSpec(shape, index_map)


def _build_call(B, D_in, H, L, D_out, tb, in_dtype, out_dtype,
                single_buffer_weights):
    grid = (B // tb,)
    in_bytes = jnp.dtype(in_dtype).itemsize

    flops = 2 * B * (D_in * H + L * H * H + H * D_out)
    bytes_accessed = (B * D_in * in_bytes                        # x (native dtype)
                      + (D_in * H + L * H * H + H * D_out) * 2   # weights (bf16)
                      + (H + L * H + D_out) * 4                  # biases (f32)
                      + B * D_out * 4)                           # output (f32)

    # Conservative VMEM estimate (assume everything double-buffered), then give
    # 2x headroom; cap well below v7x's 64 MiB physical VMEM per TensorCore.
    weight_bytes = ((D_in * H + L * H * H + H * D_out) * 2
                    + (H + L * H + D_out) * 4)
    est = (2 * tb * D_in * in_bytes   # x tiles (double-buffered)
           + 2 * tb * D_out * 4       # output tiles (double-buffered, f32)
           + 2 * weight_bytes         # weights/biases (worst case: 2 buffers)
           + tb * H * 2               # bf16 hidden-activation scratch
           + 2 * tb * max(H, D_out) * 4)  # live f32 intermediates / slack
    vmem_limit = int(min(48 * 1024 * 1024, max(16 * 1024 * 1024, 2 * est)))

    return pl.pallas_call(
        encoder_kernel,
        out_shape=jax.ShapeDtypeStruct((B, D_out), out_dtype),
        grid_spec=pltpu.PrefetchScalarGridSpec(
            num_scalar_prefetch=0,
            grid=grid,
            in_specs=[
                pl.BlockSpec((tb, D_in), lambda i: (i, 0)),         # x tile
                _const_spec((D_in, H), single_buffer_weights),      # W_in
                _const_spec((1, H), single_buffer_weights),         # b_in
                _const_spec((L, H, H), single_buffer_weights),      # W_hid stack
                _const_spec((L, 1, H), single_buffer_weights),      # b_hid stack
                _const_spec((H, D_out), single_buffer_weights),     # W_out
                _const_spec((1, D_out), single_buffer_weights),     # b_out
            ],
            out_specs=pl.BlockSpec((tb, D_out), lambda i: (i, 0)),
            scratch_shapes=[pltpu.VMEM((tb, H), COMPUTE_DTYPE)],    # hidden acts
        ),
        compiler_params=pltpu.CompilerParams(
            dimension_semantics=("parallel",),
            vmem_limit_bytes=vmem_limit),
        cost_estimate=pl.CostEstimate(flops=flops, transcendentals=0,
                                      bytes_accessed=bytes_accessed),
    )


def encoder_block(x, w_in, b_in, w_hid, b_hid, w_out, b_out, *, tb=256):
    """Fused EncoderBlock forward (bf16 MXU operands, f32 accumulate + bias/ReLU)."""
    B, D_in = x.shape
    H = w_in.shape[1]
    L = w_hid.shape[0]
    D_out = w_out.shape[1]

    tb = min(tb, B)
    assert B % tb == 0, "batch must be divisible by the batch tile"
    assert tb == B or tb % 8 == 0, "batch tile must be sublane aligned"

    # x stays in native dtype (cast to bf16 inside the kernel); only the small,
    # grid-invariant weights are cast once in the wrapper.
    args = (x,
            w_in.astype(COMPUTE_DTYPE), b_in.astype(jnp.float32),
            w_hid.astype(COMPUTE_DTYPE), b_hid.astype(jnp.float32),
            w_out.astype(COMPUTE_DTYPE), b_out.astype(jnp.float32))

    try:
        call = _build_call(B, D_in, H, L, D_out, tb, x.dtype, x.dtype,
                           single_buffer_weights=True)
        return call(*args)
    except Exception:
        # Fallback if this JAX build rejects pl.Buffered(1) single-buffering.
        call = _build_call(B, D_in, H, L, D_out, tb, x.dtype, x.dtype,
                           single_buffer_weights=False)
        return call(*args)


def reference_encoder(x, w_in, b_in, w_hid, b_hid, w_out, b_out):
    """Pure-JAX mixed-precision reference (bf16 operands, f32 accumulation)."""
    c = COMPUTE_DTYPE
    h = jnp.dot(x.astype(c), w_in.astype(c), preferred_element_type=jnp.float32)
    h = jnp.maximum(h + b_in[0], 0.0)
    for i in range(w_hid.shape[0]):
        h = jnp.dot(h.astype(c), w_hid[i].astype(c),
                    preferred_element_type=jnp.float32)
        h = jnp.maximum(h + b_hid[i, 0], 0.0)
    out = jnp.dot(h.astype(c), w_out.astype(c), preferred_element_type=jnp.float32)
    return jnp.maximum(out + b_out[0], 0.0)


if __name__ == "__main__":
    # Shapes consistent with the module's forward:
    #   input_dim=256, number_hidden_neurons=128, number_hidden_layers=2,
    #   associationSpace_dim=128.  Batch=512 so the grid has 2 "parallel" steps
    #   at the default tb=256 (keeps both v7x TensorCores busy).
    B, D_in, H, L, D_out = 512, 256, 128, 2, 128

    key = jax.random.PRNGKey(0)
    k = jax.random.split(key, 8)

    x = jax.random.normal(k[0], (B, D_in), dtype=jnp.float32)

    # Deterministic Kaiming-style init (relu gain), same shapes as nn.Linear.
    w_in = jax.random.normal(k[1], (D_in, H), jnp.float32) * (2.0 / D_in) ** 0.5
    b_in = jnp.zeros((1, H), jnp.float32)
    w_hid = jax.random.normal(k[2], (L, H, H), jnp.float32) * (2.0 / H) ** 0.5
    b_hid = jnp.zeros((L, 1, H), jnp.float32)
    w_out = jax.random.normal(k[3], (H, D_out), jnp.float32) * (2.0 / H) ** 0.5
    b_out = jnp.zeros((1, D_out), jnp.float32)

    out = encoder_block(x, w_in, b_in, w_hid, b_hid, w_out, b_out)
    out = jax.block_until_ready(out)

    ref = reference_encoder(x, w_in, b_in, w_hid, b_hid, w_out, b_out)
    assert out.shape == (B, D_out)
    assert out.dtype == x.dtype
    assert jnp.allclose(out, ref, atol=1e-2, rtol=1e-2), "mismatch vs reference"

    print("KERNEL_OK")
</pallas_src>

<mosaic_0001>
module attributes {stable_mosaic.version = 11 : i64} {
  func.func @encoder_kernel(%arg0: i32, %arg1: memref<256x256xf32, #tpu.memory_space<vmem>>, %arg2: memref<256x128xbf16, #tpu.memory_space<vmem>>, %arg3: memref<1x128xf32, #tpu.memory_space<vmem>>, %arg4: memref<2x128x128xbf16, #tpu.memory_space<vmem>>, %arg5: memref<2x1x128xf32, #tpu.memory_space<vmem>>, %arg6: memref<128x128xbf16, #tpu.memory_space<vmem>>, %arg7: memref<1x128xf32, #tpu.memory_space<vmem>>, %arg8: memref<256x128xf32, #tpu.memory_space<vmem>>, %arg9: memref<256x128xbf16, #tpu.memory_space<vmem>>) attributes {dimension_semantics = [#tpu.dimension_semantics<parallel>], iteration_bounds = array<i64: 2>, scalar_prefetch = 0 : i64, scratch_operands = 1 : i64, tpu.core_type = #tpu.core_type<tc>, window_params = [{transform_indices = @transform_0, window_bounds = array<i64: 256, 256>}, {pipeline_mode = #tpu.pipeline_mode<synchronous>, transform_indices = @transform_1, window_bounds = array<i64: 256, 128>}, {pipeline_mode = #tpu.pipeline_mode<synchronous>, transform_indices = @transform_2, window_bounds = array<i64: 1, 128>}, {pipeline_mode = #tpu.pipeline_mode<synchronous>, transform_indices = @transform_3, window_bounds = array<i64: 2, 128, 128>}, {pipeline_mode = #tpu.pipeline_mode<synchronous>, transform_indices = @transform_4, window_bounds = array<i64: 2, 1, 128>}, {pipeline_mode = #tpu.pipeline_mode<synchronous>, transform_indices = @transform_5, window_bounds = array<i64: 128, 128>}, {pipeline_mode = #tpu.pipeline_mode<synchronous>, transform_indices = @transform_6, window_bounds = array<i64: 1, 128>}, {transform_indices = @transform_7, window_bounds = array<i64: 256, 128>}]} {
    %c0 = arith.constant 0 : index
    %c0_0 = arith.constant 0 : index
    %0 = vector.load %arg1[%c0, %c0_0] : memref<256x256xf32, #tpu.memory_space<vmem>>, vector<256x256xf32>
    %1 = arith.truncf %0 : vector<256x256xf32> to vector<256x256xbf16>
    %c0_1 = arith.constant 0 : index
    %c0_2 = arith.constant 0 : index
    %2 = vector.load %arg2[%c0_1, %c0_2] : memref<256x128xbf16, #tpu.memory_space<vmem>>, vector<256x128xbf16>
    %cst = arith.constant dense<0.000000e+00> : vector<256x128xf32>
    %3 = tpu.matmul %1, %2, %cst {dimension_numbers = #tpu.dot_dimension_numbers<[1], [0], [0], [1], [0, 0, 1, 1], [], []>} : vector<256x256xbf16>, vector<256x128xbf16>, vector<256x128xf32> -> vector<256x128xf32>
    %c0_3 = arith.constant 0 : index
    %c0_4 = arith.constant 0 : index
    %4 = vector.load %arg3[%c0_3, %c0_4] : memref<1x128xf32, #tpu.memory_space<vmem>>, vector<1x128xf32>
    %5 = vector.broadcast %4 : vector<1x128xf32> to vector<256x128xf32>
    %6 = arith.addf %3, %5 : vector<256x128xf32>
    %cst_5 = arith.constant 0.000000e+00 : f32
    %7 = vector.broadcast %cst_5 : f32 to vector<256x128xf32>
    %8 = arith.maximumf %6, %7 : vector<256x128xf32>
    %9 = arith.truncf %8 : vector<256x128xf32> to vector<256x128xbf16>
    %c0_6 = arith.constant 0 : index
    %c0_7 = arith.constant 0 : index
    %10 = vector.load %arg9[%c0_6, %c0_7] : memref<256x128xbf16, #tpu.memory_space<vmem>>, vector<256x128xbf16>
    tpu.vector_store %arg9[%c0_6, %c0_7], %9 {strides = array<i32>} : memref<256x128xbf16, #tpu.memory_space<vmem>>, vector<256x128xbf16>,
    %c0_i32 = arith.constant 0 : i32
    %c0_8 = arith.constant 0 : index
    %c0_9 = arith.constant 0 : index
    %11 = vector.load %arg9[%c0_8, %c0_9] : memref<256x128xbf16, #tpu.memory_space<vmem>>, vector<256x128xbf16>
    %12 = arith.index_cast %c0_i32 : i32 to index
    %c0_10 = arith.constant 0 : index
    %c0_11 = arith.constant 0 : index
    %13 = vector.load %arg4[%12, %c0_10, %c0_11] : memref<2x128x128xbf16, #tpu.memory_space<vmem>>, vector<1x128x128xbf16>
    %14 = vector.shape_cast %13 : vector<1x128x128xbf16> to vector<128x128xbf16>
    %cst_12 = arith.constant dense<0.000000e+00> : vector<256x128xf32>
    %15 = tpu.matmul %11, %14, %cst_12 {dimension_numbers = #tpu.dot_dimension_numbers<[1], [0], [0], [1], [0, 0, 1, 1], [], []>} : vector<256x128xbf16>, vector<128x128xbf16>, vector<256x128xf32> -> vector<256x128xf32>
    %16 = arith.index_cast %c0_i32 : i32 to index
    %c0_13 = arith.constant 0 : index
    %c0_14 = arith.constant 0 : index
    %17 = vector.load %arg5[%16, %c0_13, %c0_14] : memref<2x1x128xf32, #tpu.memory_space<vmem>>, vector<1x1x128xf32>
    %18 = vector.shape_cast %17 : vector<1x1x128xf32> to vector<1x128xf32>
    %19 = vector.broadcast %18 : vector<1x128xf32> to vector<256x128xf32>
    %20 = arith.addf %15, %19 : vector<256x128xf32>
    %cst_15 = arith.constant 0.000000e+00 : f32
    %21 = vector.broadcast %cst_15 : f32 to vector<256x128xf32>
    %22 = arith.maximumf %20, %21 : vector<256x128xf32>
    %23 = arith.truncf %22 : vector<256x128xf32> to vector<256x128xbf16>
    %c0_16 = arith.constant 0 : index
    %c0_17 = arith.constant 0 : index
    %24 = vector.load %arg9[%c0_16, %c0_17] : memref<256x128xbf16, #tpu.memory_space<vmem>>, vector<256x128xbf16>
    tpu.vector_store %arg9[%c0_16, %c0_17], %23 {strides = array<i32>} : memref<256x128xbf16, #tpu.memory_space<vmem>>, vector<256x128xbf16>,
    %c1_i32 = arith.constant 1 : i32
    %c0_18 = arith.constant 0 : index
    %c0_19 = arith.constant 0 : index
    %25 = vector.load %arg9[%c0_18, %c0_19] : memref<256x128xbf16, #tpu.memory_space<vmem>>, vector<256x128xbf16>
    %26 = arith.index_cast %c1_i32 : i32 to index
    %c0_20 = arith.constant 0 : index
    %c0_21 = arith.constant 0 : index
    %27 = vector.load %arg4[%26, %c0_20, %c0_21] : memref<2x128x128xbf16, #tpu.memory_space<vmem>>, vector<1x128x128xbf16>
    %28 = vector.shape_cast %27 : vector<1x128x128xbf16> to vector<128x128xbf16>
    %cst_22 = arith.constant dense<0.000000e+00> : vector<256x128xf32>
    %29 = tpu.matmul %25, %28, %cst_22 {dimension_numbers = #tpu.dot_dimension_numbers<[1], [0], [0], [1], [0, 0, 1, 1], [], []>} : vector<256x128xbf16>, vector<128x128xbf16>, vector<256x128xf32> -> vector<256x128xf32>
    %30 = arith.index_cast %c1_i32 : i32 to index
    %c0_23 = arith.constant 0 : index
    %c0_24 = arith.constant 0 : index
    %31 = vector.load %arg5[%30, %c0_23, %c0_24] : memref<2x1x128xf32, #tpu.memory_space<vmem>>, vector<1x1x128xf32>
    %32 = vector.shape_cast %31 : vector<1x1x128xf32> to vector<1x128xf32>
    %33 = vector.broadcast %32 : vector<1x128xf32> to vector<256x128xf32>
    %34 = arith.addf %29, %33 : vector<256x128xf32>
    %cst_25 = arith.constant 0.000000e+00 : f32
    %35 = vector.broadcast %cst_25 : f32 to vector<256x128xf32>
    %36 = arith.maximumf %34, %35 : vector<256x128xf32>
    %37 = arith.truncf %36 : vector<256x128xf32> to vector<256x128xbf16>
    %c0_26 = arith.constant 0 : index
    %c0_27 = arith.constant 0 : index
    %38 = vector.load %arg9[%c0_26, %c0_27] : memref<256x128xbf16, #tpu.memory_space<vmem>>, vector<256x128xbf16>
    tpu.vector_store %arg9[%c0_26, %c0_27], %37 {strides = array<i32>} : memref<256x128xbf16, #tpu.memory_space<vmem>>, vector<256x128xbf16>,
    %c2_i32 = arith.constant 2 : i32
    %c0_28 = arith.constant 0 : index
    %c0_29 = arith.constant 0 : index
    %39 = vector.load %arg9[%c0_28, %c0_29] : memref<256x128xbf16, #tpu.memory_space<vmem>>, vector<256x128xbf16>
    %c0_30 = arith.constant 0 : index
    %c0_31 = arith.constant 0 : index
    %40 = vector.load %arg6[%c0_30, %c0_31] : memref<128x128xbf16, #tpu.memory_space<vmem>>, vector<128x128xbf16>
    %cst_32 = arith.constant dense<0.000000e+00> : vector<256x128xf32>
    %41 = tpu.matmul %39, %40, %cst_32 {dimension_numbers = #tpu.dot_dimension_numbers<[1], [0], [0], [1], [0, 0, 1, 1], [], []>} : vector<256x128xbf16>, vector<128x128xbf16>, vector<256x128xf32> -> vector<256x128xf32>
    %c0_33 = arith.constant 0 : index
    %c0_34 = arith.constant 0 : index
    %42 = vector.load %arg7[%c0_33, %c0_34] : memref<1x128xf32, #tpu.memory_space<vmem>>, vector<1x128xf32>
    %43 = vector.broadcast %42 : vector<1x128xf32> to vector<256x128xf32>
    %44 = arith.addf %41, %43 : vector<256x128xf32>
    %cst_35 = arith.constant 0.000000e+00 : f32
    %45 = vector.broadcast %cst_35 : f32 to vector<256x128xf32>
    %46 = arith.maximumf %44, %45 : vector<256x128xf32>
    %c0_36 = arith.constant 0 : index
    %c0_37 = arith.constant 0 : index
    %47 = vector.load %arg8[%c0_36, %c0_37] : memref<256x128xf32, #tpu.memory_space<vmem>>, vector<256x128xf32>
    tpu.vector_store %arg8[%c0_36, %c0_37], %46 {strides = array<i32>} : memref<256x128xf32, #tpu.memory_space<vmem>>, vector<256x128xf32>,
    return
  }
  func.func @transform_0(%arg0: i32) -> (i32, i32) {
    %c0_i32 = arith.constant 0 : i32
    %c0_i32_0 = arith.constant 0 : i32
    return %arg0, %c0_i32 : i32, i32
  }
  func.func @transform_1(%arg0: i32) -> (i32, i32) {
    %c0_i32 = arith.constant 0 : i32
    %c0_i32_0 = arith.constant 0 : i32
    %c0_i32_1 = arith.constant 0 : i32
    return %c0_i32, %c0_i32_0 : i32, i32
  }
  func.func @transform_2(%arg0: i32) -> (i32, i32) {
    %c0_i32 = arith.constant 0 : i32
    %c0_i32_0 = arith.constant 0 : i32
    %c0_i32_1 = arith.constant 0 : i32
    return %c0_i32, %c0_i32_0 : i32, i32
  }
  func.func @transform_3(%arg0: i32) -> (i32, i32, i32) {
    %c0_i32 = arith.constant 0 : i32
    %c0_i32_0 = arith.constant 0 : i32
    %c0_i32_1 = arith.constant 0 : i32
    %c0_i32_2 = arith.constant 0 : i32
    return %c0_i32, %c0_i32_0, %c0_i32_1 : i32, i32, i32
  }
  func.func @transform_4(%arg0: i32) -> (i32, i32, i32) {
    %c0_i32 = arith.constant 0 : i32
    %c0_i32_0 = arith.constant 0 : i32
    %c0_i32_1 = arith.constant 0 : i32
    %c0_i32_2 = arith.constant 0 : i32
    return %c0_i32, %c0_i32_0, %c0_i32_1 : i32, i32, i32
  }
  func.func @transform_5(%arg0: i32) -> (i32, i32) {
    %c0_i32 = arith.constant 0 : i32
    %c0_i32_0 = arith.constant 0 : i32
    %c0_i32_1 = arith.constant 0 : i32
    return %c0_i32, %c0_i32_0 : i32, i32
  }
  func.func @transform_6(%arg0: i32) -> (i32, i32) {
    %c0_i32 = arith.constant 0 : i32
    %c0_i32_0 = arith.constant 0 : i32
    %c0_i32_1 = arith.constant 0 : i32
    return %c0_i32, %c0_i32_0 : i32, i32
  }
  func.func @transform_7(%arg0: i32) -> (i32, i32) {
    %c0_i32 = arith.constant 0 : i32
    %c0_i32_0 = arith.constant 0 : i32
    return %arg0, %c0_i32 : i32, i32
  }
}

module attributes {stable_mosaic.version = 11 : i64} {
  func.func @encoder_kernel(%arg0: i32, %arg1: memref<256x256xf32, #tpu.memory_space<vmem>>, %arg2: memref<256x128xbf16, #tpu.memory_space<vmem>>, %arg3: memref<1x128xf32, #tpu.memory_space<vmem>>, %arg4: memref<2x128x128xbf16, #tpu.memory_space<vmem>>, %arg5: memref<2x1x128xf32, #tpu.memory_space<vmem>>, %arg6: memref<128x128xbf16, #tpu.memory_space<vmem>>, %arg7: memref<1x128xf32, #tpu.memory_space<vmem>>, %arg8: memref<256x128xf32, #tpu.memory_space<vmem>>, %arg9: memref<256x128xbf16, #tpu.memory_space<vmem>>) attributes {dimension_semantics = [#tpu.dimension_semantics<parallel>], iteration_bounds = array<i64: 2>, scalar_prefetch = 0 : i64, scratch_operands = 1 : i64, tpu.core_type = #tpu.core_type<tc>, window_params = [{transform_indices = @transform_0, window_bounds = array<i64: 256, 256>}, {pipeline_mode = #tpu.pipeline_mode<synchronous>, transform_indices = @transform_1, window_bounds = array<i64: 256, 128>}, {pipeline_mode = #tpu.pipeline_mode<synchronous>, transform_indices = @transform_2, window_bounds = array<i64: 1, 128>}, {pipeline_mode = #tpu.pipeline_mode<synchronous>, transform_indices = @transform_3, window_bounds = array<i64: 2, 128, 128>}, {pipeline_mode = #tpu.pipeline_mode<synchronous>, transform_indices = @transform_4, window_bounds = array<i64: 2, 1, 128>}, {pipeline_mode = #tpu.pipeline_mode<synchronous>, transform_indices = @transform_5, window_bounds = array<i64: 128, 128>}, {pipeline_mode = #tpu.pipeline_mode<synchronous>, transform_indices = @transform_6, window_bounds = array<i64: 1, 128>}, {transform_indices = @transform_7, window_bounds = array<i64: 256, 128>}]} {
    %c0 = arith.constant 0 : index
    %c0_0 = arith.constant 0 : index
    %0 = vector.load %arg1[%c0, %c0_0] : memref<256x256xf32, #tpu.memory_space<vmem>>, vector<256x256xf32>
    %1 = arith.truncf %0 : vector<256x256xf32> to vector<256x256xbf16>
    %c0_1 = arith.constant 0 : index
    %c0_2 = arith.constant 0 : index
    %2 = vector.load %arg2[%c0_1, %c0_2] : memref<256x128xbf16, #tpu.memory_space<vmem>>, vector<256x128xbf16>
    %cst = arith.constant dense<0.000000e+00> : vector<256x128xf32>
    %3 = tpu.matmul %1, %2, %cst {dimension_numbers = #tpu.dot_dimension_numbers<[1], [0], [0], [1], [0, 0, 1, 1], [], []>} : vector<256x256xbf16>, vector<256x128xbf16>, vector<256x128xf32> -> vector<256x128xf32>
    %c0_3 = arith.constant 0 : index
    %c0_4 = arith.constant 0 : index
    %4 = vector.load %arg3[%c0_3, %c0_4] : memref<1x128xf32, #tpu.memory_space<vmem>>, vector<1x128xf32>
    %5 = vector.broadcast %4 : vector<1x128xf32> to vector<256x128xf32>
    %6 = arith.addf %3, %5 : vector<256x128xf32>
    %cst_5 = arith.constant 0.000000e+00 : f32
    %7 = vector.broadcast %cst_5 : f32 to vector<256x128xf32>
    %8 = arith.maximumf %6, %7 : vector<256x128xf32>
    %9 = arith.truncf %8 : vector<256x128xf32> to vector<256x128xbf16>
    %c0_6 = arith.constant 0 : index
    %c0_7 = arith.constant 0 : index
    %10 = vector.load %arg9[%c0_6, %c0_7] : memref<256x128xbf16, #tpu.memory_space<vmem>>, vector<256x128xbf16>
    tpu.vector_store %arg9[%c0_6, %c0_7], %9 {strides = array<i32>} : memref<256x128xbf16, #tpu.memory_space<vmem>>, vector<256x128xbf16>,
    %c0_i32 = arith.constant 0 : i32
    %c0_8 = arith.constant 0 : index
    %c0_9 = arith.constant 0 : index
    %11 = vector.load %arg9[%c0_8, %c0_9] : memref<256x128xbf16, #tpu.memory_space<vmem>>, vector<256x128xbf16>
    %12 = arith.index_cast %c0_i32 : i32 to index
    %c0_10 = arith.constant 0 : index
    %c0_11 = arith.constant 0 : index
    %13 = vector.load %arg4[%12, %c0_10, %c0_11] : memref<2x128x128xbf16, #tpu.memory_space<vmem>>, vector<1x128x128xbf16>
    %14 = vector.shape_cast %13 : vector<1x128x128xbf16> to vector<128x128xbf16>
    %cst_12 = arith.constant dense<0.000000e+00> : vector<256x128xf32>
    %15 = tpu.matmul %11, %14, %cst_12 {dimension_numbers = #tpu.dot_dimension_numbers<[1], [0], [0], [1], [0, 0, 1, 1], [], []>} : vector<256x128xbf16>, vector<128x128xbf16>, vector<256x128xf32> -> vector<256x128xf32>
    %16 = arith.index_cast %c0_i32 : i32 to index
    %c0_13 = arith.constant 0 : index
    %c0_14 = arith.constant 0 : index
    %17 = vector.load %arg5[%16, %c0_13, %c0_14] : memref<2x1x128xf32, #tpu.memory_space<vmem>>, vector<1x1x128xf32>
    %18 = vector.shape_cast %17 : vector<1x1x128xf32> to vector<1x128xf32>
    %19 = vector.broadcast %18 : vector<1x128xf32> to vector<256x128xf32>
    %20 = arith.addf %15, %19 : vector<256x128xf32>
    %cst_15 = arith.constant 0.000000e+00 : f32
    %21 = vector.broadcast %cst_15 : f32 to vector<256x128xf32>
    %22 = arith.maximumf %20, %21 : vector<256x128xf32>
    %23 = arith.truncf %22 : vector<256x128xf32> to vector<256x128xbf16>
    %c0_16 = arith.constant 0 : index
    %c0_17 = arith.constant 0 : index
    %24 = vector.load %arg9[%c0_16, %c0_17] : memref<256x128xbf16, #tpu.memory_space<vmem>>, vector<256x128xbf16>
    tpu.vector_store %arg9[%c0_16, %c0_17], %23 {strides = array<i32>} : memref<256x128xbf16, #tpu.memory_space<vmem>>, vector<256x128xbf16>,
    %c1_i32 = arith.constant 1 : i32
    %c0_18 = arith.constant 0 : index
    %c0_19 = arith.constant 0 : index
    %25 = vector.load %arg9[%c0_18, %c0_19] : memref<256x128xbf16, #tpu.memory_space<vmem>>, vector<256x128xbf16>
    %26 = arith.index_cast %c1_i32 : i32 to index
    %c0_20 = arith.constant 0 : index
    %c0_21 = arith.constant 0 : index
    %27 = vector.load %arg4[%26, %c0_20, %c0_21] : memref<2x128x128xbf16, #tpu.memory_space<vmem>>, vector<1x128x128xbf16>
    %28 = vector.shape_cast %27 : vector<1x128x128xbf16> to vector<128x128xbf16>
    %cst_22 = arith.constant dense<0.000000e+00> : vector<256x128xf32>
    %29 = tpu.matmul %25, %28, %cst_22 {dimension_numbers = #tpu.dot_dimension_numbers<[1], [0], [0], [1], [0, 0, 1, 1], [], []>} : vector<256x128xbf16>, vector<128x128xbf16>, vector<256x128xf32> -> vector<256x128xf32>
    %30 = arith.index_cast %c1_i32 : i32 to index
    %c0_23 = arith.constant 0 : index
    %c0_24 = arith.constant 0 : index
    %31 = vector.load %arg5[%30, %c0_23, %c0_24] : memref<2x1x128xf32, #tpu.memory_space<vmem>>, vector<1x1x128xf32>
    %32 = vector.shape_cast %31 : vector<1x1x128xf32> to vector<1x128xf32>
    %33 = vector.broadcast %32 : vector<1x128xf32> to vector<256x128xf32>
    %34 = arith.addf %29, %33 : vector<256x128xf32>
    %cst_25 = arith.constant 0.000000e+00 : f32
    %35 = vector.broadcast %cst_25 : f32 to vector<256x128xf32>
    %36 = arith.maximumf %34, %35 : vector<256x128xf32>
    %37 = arith.truncf %36 : vector<256x128xf32> to vector<256x128xbf16>
    %c0_26 = arith.constant 0 : index
    %c0_27 = arith.constant 0 : index
    %38 = vector.load %arg9[%c0_26, %c0_27] : memref<256x128xbf16, #tpu.memory_space<vmem>>, vector<256x128xbf16>
    tpu.vector_store %arg9[%c0_26, %c0_27], %37 {strides = array<i32>} : memref<256x128xbf16, #tpu.memory_space<vmem>>, vector<256x128xbf16>,
    %c2_i32 = arith.constant 2 : i32
    %c0_28 = arith.constant 0 : index
    %c0_29 = arith.constant 0 : index
    %39 = vector.load %arg9[%c0_28, %c0_29] : memref<256x128xbf16, #tpu.memory_space<vmem>>, vector<256x128xbf16>
    %c0_30 = arith.constant 0 : index
    %c0_31 = arith.constant 0 : index
    %40 = vector.load %arg6[%c0_30, %c0_31] : memref<128x128xbf16, #tpu.memory_space<vmem>>, vector<128x128xbf16>
    %cst_32 = arith.constant dense<0.000000e+00> : vector<256x128xf32>
    %41 = tpu.matmul %39, %40, %cst_32 {dimension_numbers = #tpu.dot_dimension_numbers<[1], [0], [0], [1], [0, 0, 1, 1], [], []>} : vector<256x128xbf16>, vector<128x128xbf16>, vector<256x128xf32> -> vector<256x128xf32>
    %c0_33 = arith.constant 0 : index
    %c0_34 = arith.constant 0 : index
    %42 = vector.load %arg7[%c0_33, %c0_34] : memref<1x128xf32, #tpu.memory_space<vmem>>, vector<1x128xf32>
    %43 = vector.broadcast %42 : vector<1x128xf32> to vector<256x128xf32>
    %44 = arith.addf %41, %43 : vector<256x128xf32>
    %cst_35 = arith.constant 0.000000e+00 : f32
    %45 = vector.broadcast %cst_35 : f32 to vector<256x128xf32>
    %46 = arith.maximumf %44, %45 : vector<256x128xf32>
    %c0_36 = arith.constant 0 : index
    %c0_37 = arith.constant 0 : index
    %47 = vector.load %arg8[%c0_36, %c0_37] : memref<256x128xf32, #tpu.memory_space<vmem>>, vector<256x128xf32>
    tpu.vector_store %arg8[%c0_36, %c0_37], %46 {strides = array<i32>} : memref<256x128xf32, #tpu.memory_space<vmem>>, vector<256x128xf32>,
    return
  }
  func.func @transform_0(%arg0: i32) -> (i32, i32) {
    %c0_i32 = arith.constant 0 : i32
    %c0_i32_0 = arith.constant 0 : i32
    return %arg0, %c0_i32 : i32, i32
  }
  func.func @transform_1(%arg0: i32) -> (i32, i32) {
    %c0_i32 = arith.constant 0 : i32
    %c0_i32_0 = arith.constant 0 : i32
    %c0_i32_1 = arith.constant 0 : i32
    return %c0_i32, %c0_i32_0 : i32, i32
  }
  func.func @transform_2(%arg0: i32) -> (i32, i32) {
    %c0_i32 = arith.constant 0 : i32
    %c0_i32_0 = arith.constant 0 : i32
    %c0_i32_1 = arith.constant 0 : i32
    return %c0_i32, %c0_i32_0 : i32, i32
  }
  func.func @transform_3(%arg0: i32) -> (i32, i32, i32) {
    %c0_i32 = arith.constant 0 : i32
    %c0_i32_0 = arith.constant 0 : i32
    %c0_i32_1 = arith.constant 0 : i32
    %c0_i32_2 = arith.constant 0 : i32
    return %c0_i32, %c0_i32_0, %c0_i32_1 : i32, i32, i32
  }
  func.func @transform_4(%arg0: i32) -> (i32, i32, i32) {
    %c0_i32 = arith.constant 0 : i32
    %c0_i32_0 = arith.constant 0 : i32
    %c0_i32_1 = arith.constant 0 : i32
    %c0_i32_2 = arith.constant 0 : i32
    return %c0_i32, %c0_i32_0, %c0_i32_1 : i32, i32, i32
  }
  func.func @transform_5(%arg0: i32) -> (i32, i32) {
    %c0_i32 = arith.constant 0 : i32
    %c0_i32_0 = arith.constant 0 : i32
    %c0_i32_1 = arith.constant 0 : i32
    return %c0_i32, %c0_i32_0 : i32, i32
  }
  func.func @transform_6(%arg0: i32) -> (i32, i32) {
    %c0_i32 = arith.constant 0 : i32
    %c0_i32_0 = arith.constant 0 : i32
    %c0_i32_1 = arith.constant 0 : i32
    return %c0_i32, %c0_i32_0 : i32, i32
  }
  func.func @transform_7(%arg0: i32) -> (i32, i32) {
    %c0_i32 = arith.constant 0 : i32
    %c0_i32_0 = arith.constant 0 : i32
    return %arg0, %c0_i32 : i32, i32
  }
}

</mosaic_0001>

<bundles_post_ra>
// kernel: tpu_custom_call.1
= control target key start
LH: loop header
LB: loop body
LE: loop exit
PB: predicated region body
PF: predicated region fallthrough
CT: control target
= control target key end

     0   :  { %12 = vsyncpa [#allocation4], 0  ;;  %s3166_s0 = inlined_call_operand.hbm [shape: f32[512,256], index: 0, kind: input, shape index: {}]   ;;  %s3167_s1 = inlined_call_operand.hbm [shape: bf16[256,128], index: 1, kind: input, shape index: {}]   ;;  %s3168_s2 = inlined_call_operand.vmem [shape: f32[1,128], index: 2, kind: input, shape index: {}]   ;;  %s3169_s3 = inlined_call_operand.hbm [shape: bf16[2,128,128], index: 3, kind: input, shape index: {}]   ;;  %s3170_s4 = inlined_call_operand.vmem [shape: f32[2,1,128], index: 4, kind: input, shape index: {}]   ;;  %s3171_s5 = inlined_call_operand.hbm [shape: bf16[128,128], index: 5, kind: input, shape index: {}]   ;;  %s3172_s6 = inlined_call_operand.vmem [shape: f32[1,128], index: 6, kind: input, shape index: {}]   ;;  %s3173_s7 = inlined_call_operand.hbm [shape: f32[512,128], index: 7, kind: output, shape index: {}]  }
   0x1   :  { %14 = vsyncpa [#allocation4 + $0x1], 0 }
   0x2   :  { %15 = vsyncpa [#allocation7], 0 }
   0x3   :  { %16 = vsyncpa [#allocation10], 0 }
   0x4   :  { %17 = vsyncpa [#allocation5], 0 }
   0x5   :  { %19 = vsyncpa [#allocation5 + $0x1], 0  ;;  %s2632_s24 = smov 0   ;;  %s2634_s25 = smov 0  }
   0x6   :  { %s2636_s26 = smov 0   ;;  %s2638_s27 = smov 0  }
   0x7 LB: > { %s2653_s28 = sadd.s32 4294967295, %s2579_s27   ;;  %s1855_s29 = sadd.s32 4294967294, %s2579_s27   ;;  %s2579_s27 = sphi %s2638_s27, %s3199_s27   ;;  %s2575_s26 = sphi %s2636_s26, %s3198_s26   ;;  %s2571_s25 = sphi %s2634_s25, %s3197_s25   ;;  %s2567_s24 = sphi %s2632_s24, %s3196_s24  }
   0x8   : > { %p45_p0 = scmp.ne.s32.totalorder %s2571_s25, %s2567_s24  ;;  %p3174_p1 = scmp.eq.s32.totalorder %s2653_s28, 0 }
   0x9   : > { %p201_p3 = scmp.eq.s32.totalorder %s1855_s29, 1  ;;  %p1856_p5 = scmp.ge.s32.totalorder %s2579_s27, 1 }
   0xa   : > { %p2662_p4 = por %p3174_p1, %p45_p0  ;;  %p208_p7 = scmp.lt.s32.totalorder %s2579_s27, 3 }
   0xb   : > { %p2667_p6 = por %p201_p3, %p45_p0  ;;  %s2581_s10 = smov [#allocation6]  }
   0xc   : > { %s3178_s30 = scalar_select %p2662_p4, 1, 0 }
   0xd   : > { %s3179_s8 = scalar_select %p2667_p6, 1, 0 }
   0xe   : > { %p2672_p8 = pnand %p1856_p5, %p208_p7  ;;  %s220_s11 = sshll.u32 %s2581_s10, 4  ;;  %s2676_s11 = int_to_ptr.vmem [resolvable:$true] %s220_s11 }
   0xf   : > { %3180 = sst [smem:[#allocation16_spill]] %s3179_s8  ;;  %s2582_s13 = smov [#allocation8]  }
  0x10   : > { %s3181_s9 = scalar_select %p2672_p8, 1, 0 }
  0x11   : > { %p2284_p9 = pneg %p2672_p8  ;;  %s236_s14 = sshll.u32 %s2582_s13, 4  ;;  %s2687_s14 = int_to_ptr.vmem [resolvable:$true] %s236_s14 }
  0x12   : > { %s2583_s15 = smov [#allocation9]   ;;  %s2391_s19 = scalar_lea.hbm %s3167_s1, 2048 }
  0x13   : > { %p2683_p11 = pnand %p2284_p9, %p3174_p1  ;;  %s2689_s16 = sshll.u32 %s2583_s15, 4  ;;  %s253_s16 = int_to_ptr.vmem [resolvable:$true] %s2689_s16 }
  0x14   : > { %p2392_p12 = scmp.ne.s32.totalorder %s3167_s1, %s2391_s19  ;;  %p2398_p5 = scmp.lt.u32.totalorder %s2391_s19, %s3167_s1 }
  0x15   : > { %p2699_p13 = pneg %p2683_p11 }
  0x17   : > { %p2394_p0 = pnand %p2699_p13, %p2392_p12 }
  0x19   : > { %p2395_p3 = pneg %p2394_p0 }
  0x1b   : > { %p2400_p7 = pnand %p2398_p5, %p2395_p3 }
  0x1d   : > { %2403 = shalt.err (!%p2400_p7)
}
  0x1e   : > { %s2404_s10 = scalar_lea.vmem %s2676_s11, 2048  ;;  %p2412_p2 = scmp.lt.s32.totalorder %s2676_s11, %s2676_s11 }
  0x1f   : > { %p2405_p9 = scmp.ne.s32.totalorder %s2676_s11, %s2404_s10  ;;  %p2413_p6 = scmp.lt.s32.totalorder %s2404_s10, %s2404_s10 }
  0x21   : > { %p2407_p10 = pnand %p2405_p9, %p2699_p13  ;;  %p2414_p12 = por %p2413_p6, %p2412_p2 }
  0x23   : > { %p2408_p1 = pneg %p2407_p10 }
  0x25   : > { %p2415_p0 = pnand %p2414_p12, %p2408_p1 }
  0x27   : > { %2418 = shalt.err (!%p2415_p0)
}
  0x28   : > { %s2584_s13 = smov 64   ;;  %s2585_s15 = smov 4  }
  0x29   : > { %2287 = dma.hbm_to_vmem [thread:$0]  (!%p2683_p11), %s3167_s1, 2048, %s2676_s11, [#allocation7], %s2584_s13, %s2584_s13, %s2585_s15  }
  0x2a   : > { %s2419_s21 = scalar_lea.hbm %s3169_s3, 2048 }
  0x2b   : > { %p2420_p1 = scmp.ne.s32.totalorder %s3169_s3, %s2419_s21  ;;  %p2426_p10 = scmp.lt.u32.totalorder %s2419_s21, %s3169_s3 }
  0x2d   : > { %p2422_p2 = pnand %p2420_p1, %p2699_p13 }
  0x2f   : > { %p2423_p6 = pneg %p2422_p2 }
  0x31   : > { %p2428_p3 = pnand %p2426_p10, %p2423_p6 }
  0x33   : > { %2431 = shalt.err (!%p2428_p3)
}
  0x34   : > { %s2432_s11 = scalar_lea.vmem %s2687_s14, 2048  ;;  %p2440_p12 = scmp.lt.s32.totalorder %s2687_s14, %s2687_s14 }
  0x35   : > { %p2433_p5 = scmp.ne.s32.totalorder %s2687_s14, %s2432_s11  ;;  %p2441_p0 = scmp.lt.s32.totalorder %s2432_s11, %s2432_s11 }
  0x37   : > { %p2435_p7 = pnand %p2433_p5, %p2699_p13  ;;  %p2442_p1 = por %p2441_p0, %p2440_p12 }
  0x39   : > { %p2436_p9 = pneg %p2435_p7 }
  0x3b   : > { %p2443_p2 = pnand %p2442_p1, %p2436_p9 }
  0x3d   : > { %2446 = shalt.err (!%p2443_p2)
}
  0x3e   : > { %2290 = dma.hbm_to_vmem [thread:$0]  (!%p2683_p11), %s3169_s3, 2048, %s2687_s14, [#allocation7], %s2584_s13, %s2584_s13, %s2585_s15  }
  0x3f   : > { %s2447_s20 = scalar_lea.hbm %s3171_s5, 1024 }
  0x40   : > { %p2448_p6 = scmp.ne.s32.totalorder %s3171_s5, %s2447_s20  ;;  %p2454_p5 = scmp.lt.u32.totalorder %s2447_s20, %s3171_s5 }
  0x42   : > { %p2450_p10 = pnand %p2448_p6, %p2699_p13 }
  0x44   : > { %p2451_p3 = pneg %p2450_p10 }
  0x46   : > { %p2456_p7 = pnand %p2454_p5, %p2451_p3 }
  0x48   : > { %2459 = shalt.err (!%p2456_p7)
}
  0x49   : > { %s2460_s11 = scalar_lea.vmem %s253_s16, 1024  ;;  %p2468_p1 = scmp.lt.s32.totalorder %s253_s16, %s253_s16 }
  0x4a   : > { %p2461_p9 = scmp.ne.s32.totalorder %s253_s16, %s2460_s11  ;;  %p2469_p2 = scmp.lt.s32.totalorder %s2460_s11, %s2460_s11 }
  0x4c   : > { %p2463_p12 = pnand %p2461_p9, %p2699_p13  ;;  %p2470_p4 = por %p2469_p2, %p2468_p1 }
  0x4e   : > { %p2464_p0 = pneg %p2463_p12 }
  0x50   : > { %p2471_p8 = pnand %p2470_p4, %p2464_p0 }
  0x52   : > { %2474 = shalt.err (!%p2471_p8)
}
  0x53   : > { %2293 = dma.hbm_to_vmem [thread:$0]  (!%p2683_p11), %s3171_s5, 1024, %s253_s16, [#allocation10], %s2584_s13, %s2584_s13, %s2585_s15  }
  0x54   : > { %s2772_s22 = sadd.s32 1, %s2579_s27   ;;  %s32_s17 = sadd.s32 1, %s2575_s26 }
  0x55   : > { %s29_s12 = ssub.s32 %s2579_s27, %s2772_s22  ;;  %p39_p8 = scmp.ne.s32.totalorder %s2575_s26, %s2571_s25 }
  0x56   : > { %p30_p4 = scmp.eq.s32.totalorder %s29_s12, 0  ;;  %p40_p13 = scmp.eq.s32.totalorder %s2579_s27, 0 }
  0x57   : > { %p2305_p6 = scmp.lt.s32.totalorder %s2579_s27, 2  ;;  %p3184_p3 = scmp.eq.s32.totalorder %s2653_s28, 1 }
  0x58   : > { %s2782_s18 = scalar_select %p30_p4, %s2575_s26, %s32_s17  }
  0x59   : > { %p41_p10 = por %p40_p13, %p39_p8  ;;  %p2786_p5 = por %p3184_p3, %p39_p8 }
  0x5a   : > { %s269_s20 = sand.u32 1, %s2575_s26   ;;  %s1922_s21 = sshll.u32 %s2579_s27, 13 }
  0x5b   : > { %s1861_s16 = sshll.u32 %s269_s20, 9  ;;  %s2795_s23 = scalar_lea.hbm %s3166_s0, %s1922_s21 }
  0x5c   : > { %s273_s29 = scalar_lea.vmem [#allocation3], %s1861_s16  ;;  %p2797_p11 = pnand %p2305_p6, %p41_p10 }
  0x5d   : > { %s281_s10 = sshll.u32 %s273_s29, 4  ;;  %s2803_s14 = scalar_lea.sflag [#allocation4], %s269_s20  ;;  %s2801_s10 = int_to_ptr.vmem [resolvable:$true] %s281_s10 }
  0x5e   : > { %s2475_s8 = scalar_lea.hbm %s2795_s23, 8192  ;;  %p2477_p9 = pneg %p2797_p11 }
  0x5f   : > { %p2476_p7 = scmp.ne.s32.totalorder %s2795_s23, %s2475_s8  ;;  %s2480_s21 = scalar_lea.hbm %s3166_s0, 16384 }
  0x60   : > { %p2481_p1 = scmp.lt.u32.totalorder %s2795_s23, %s3166_s0  ;;  %p2482_p2 = scmp.lt.u32.totalorder %s2480_s21, %s2475_s8 }
  0x61   : > { %p2478_p12 = pnand %p2477_p9, %p2476_p7  ;;  %p2484_p8 = scmp.lt.u32.totalorder %s2475_s8, %s2795_s23 }
  0x62   : > { %p2483_p4 = por %p2482_p2, %p2481_p1 }
  0x63   : > { %p2479_p0 = pneg %p2478_p12 }
  0x64   : > { %p2485_p13 = por %p2484_p8, %p2483_p4 }
  0x66   : > { %p2486_p6 = pnand %p2485_p13, %p2479_p0 }
  0x68   : > { %2489 = shalt.err (!%p2486_p6)
}
  0x69   : > { %s2490_s20 = scalar_lea.vmem %s2801_s10, 8192  ;;  %s2586_s15 = smov [#allocation3]  }
  0x6a   : > { %p2491_p10 = scmp.ne.s32.totalorder %s2801_s10, %s2490_s20  ;;  %s2495_s29 = sshll.u32 %s2586_s15, 4  ;;  %s2496_s29 = int_to_ptr.vmem [resolvable:$false] %s2495_s29 }
  0x6b   : > { %s2497_s12 = scalar_lea.vmem %s2496_s29, 16384  ;;  %p2498_p12 = scmp.lt.s32.totalorder %s2801_s10, %s2496_s29 }
  0x6c   : > { %p2493_p3 = pnand %p2491_p10, %p2477_p9  ;;  %p2499_p1 = scmp.lt.s32.totalorder %s2497_s12, %s2490_s20 }
  0x6e   : > { %p2494_p7 = pneg %p2493_p3  ;;  %p2500_p2 = por %p2499_p1, %p2498_p12 }
  0x70   : > { %p2501_p4 = pnand %p2500_p2, %p2494_p7 }
  0x72   : > { %2504 = shalt.err (!%p2501_p4)
}
  0x73   : > { %s2587_s8 = smov 256   ;;  %s2588_s17 = smov 16  }
  0x74   : > { %2297 = dma.hbm_to_vmem [thread:$0]  (!%p2797_p11), %s2795_s23, 8192, %s2801_s10, %s2803_s14, %s2587_s8, %s2587_s8, %s2588_s17  }
  0x75   : > { %p3187_p9 = scmp.ne.s32.totalorder %s3181_s9, 0 }
  0x76   : > { %s2834_s21 = sand.u32 (!%p3187_p9), 1, %s2571_s25   ;;  %p3188_p0 = scmp.ne.s32.totalorder (!%p3187_p9), %s3178_s30, 0 }
  0x77   : > { %293 = sbr.rel (%p3187_p9) target bundleno = 1172 (0x494), region = 48  ;;  %s1866_s16 = sshll.u32 (!%p3187_p9), %s2834_s21, 9 }
  0x78   : > { %s296_s13 = scalar_lea.sflag (!%p3187_p9), [#allocation4], %s2834_s21  ;;  %s2838_s20 = scalar_lea.vmem (!%p3187_p9), [#allocation3], %s1866_s16 }
  0x7e   : > { %2550 = dma.done.wait (%p3188_p0), %s296_s13, 8192  }
  0x7f   : > { %2552 = vsyncadd (%p3188_p0), %s296_s13, 4294959104  ;;  %p3189_p11 = scmp.eq.s32.totalorder %s2653_s28, 0 }
  0x81   : > { %2554 = dma.done.wait (%p3189_p11), [#allocation7], 4096   ;;  %p3190_p8 = pmov %p3189_p11 }
  0x83   : > { %2556 = vsyncadd (%p3190_p8), [#allocation7], 4294963200  ;;  %p3191_p13 = pmov %p3190_p8 }
  0x84   : > { %p3192_p6 = pmov %p3190_p8 }
  0x85   : > { %2558 = dma.done.wait (%p3191_p13), [#allocation10], 1024  }
  0x86   : > { %2560 = vsyncadd (%p3192_p6), [#allocation10], 4294966272  ;;  %v2351_v0 = vld [vmem:[#allocation6 + $0x40] sm:$0xff]   ;;  %v2353_v2 = vld [vmem:[#allocation6 + $0x48] sm:$0xff]   ;;  %s1870_s12 = sshll.u32 %s2834_s21, 8  ;;  %s1923_s17 = sshll.u32 %s2653_s28, 12 }
  0x87   : > { %v2352_v1 = vld [vmem:[#allocation6] sm:$0xff]   ;;  %1924 = vmatprep.subr.bf16.mxu0 %v2351_v0  ;;  %2252 = vmatprep.subr.bf16.mxu1 %v2351_v0  ;;  %v2354_v3 = vld [vmem:[#allocation6 + $0x8] sm:$0xff]   ;;  %v2355_v4 = vld [vmem:[#allocation6 + $0x50] sm:$0xff]   ;;  %s3053_s8 = scalar_lea.vmem [#allocation11], %s1870_s12  ;;  %s3117_s30 = scalar_lea.hbm %s3173_s7, %s1923_s17 }
  0x88   : > { %1925 = vmatpush3.bf16.msra.mxu0 %v2352_v1  ;;  %2260 = vmatpush3.bf16.msra.mxu1 %v2352_v1  ;;  %v2356_v5 = vld [vmem:[#allocation6 + $0x10] sm:$0xff]   ;;  %v2357_v6 = vld [vmem:[#allocation6 + $0x58] sm:$0xff]   ;;  %v2359_v8 = vld [vmem:[#allocation6 + $0x60] sm:$0xff]   ;;  %s1753_s16 = sshll.u32 %s3053_s8, 4  ;;  %s1740_s28 = scalar_lea.sflag [#allocation5], %s2834_s21  ;;  %s3119_s16 = int_to_ptr.vmem [resolvable:$true] %s1753_s16 }
  0x89   : > { %1926 = vmatprep.subr.bf16.mxu0 %v2353_v2  ;;  %2253 = vmatprep.subr.bf16.mxu1 %v2353_v2  ;;  %v2358_v7 = vld [vmem:[#allocation6 + $0x18] sm:$0xff]   ;;  %v2360_v9 = vld [vmem:[#allocation6 + $0x20] sm:$0xff]   ;;  %v2361_v10 = vld [vmem:[#allocation6 + $0x68] sm:$0xff]   ;;  %s2505_s9 = scalar_lea.vmem %s3119_s16, 4096  ;;  %s2589_s23 = smov [#allocation11]  }
  0x8a   : > { %v346_v11 = vld [vmem:[%s2838_s20 + $0x8] sm:$0xff]  ;;  %v348_v12 = vld [vmem:[%s2838_s20 + $0x18] sm:$0xff]  ;;  %v2363_v15 = vld [vmem:[#allocation6 + $0x70] sm:$0xff]   ;;  %p2506_p10 = scmp.ne.s32.totalorder %s3119_s16, %s2505_s9  ;;  %s2509_s10 = sshll.u32 %s2589_s23, 4  ;;  %s2510_s10 = int_to_ptr.vmem [resolvable:$false] %s2509_s10 }
  0x8b   : > { %v410_v13 = vpack.c.bf16 %v348_v12, %v346_v11  ;;  %v2362_v14 = vld [vmem:[#allocation6 + $0x28] sm:$0xff]   ;;  %v2364_v16 = vld [vmem:[#allocation6 + $0x30] sm:$0xff]   ;;  %v2365_v17 = vld [vmem:[#allocation6 + $0x78] sm:$0xff]   ;;  %s2511_s11 = scalar_lea.vmem %s2510_s10, 8192  ;;  %p2512_p12 = scmp.lt.s32.totalorder %s3119_s16, %s2510_s10 }
  0x8c   : > { %1927 = vmatpush3.bf16.msra.mxu0 %v2354_v3  ;;  %2261 = vmatpush3.bf16.msra.mxu1 %v2354_v3  ;;  %v2366_v18 = vld [vmem:[#allocation6 + $0x38] sm:$0xff]   ;;  %v345_v19 = vld [vmem:[%s2838_s20] sm:$0xff]  ;;  %v347_v20 = vld [vmem:[%s2838_s20 + $0x10] sm:$0xff]  ;;  %p2507_p3 = pnand %p2506_p10, %p2786_p5  ;;  %p2513_p1 = scmp.lt.s32.totalorder %s2511_s11, %s2505_s9 }
  0x8d   : > { %1928 = vmatprep.subr.bf16.mxu0 %v2355_v4  ;;  %2254 = vmatprep.subr.bf16.mxu1 %v2355_v4  ;;  %v350_v21 = vld [vmem:[%s2838_s20 + $0x28] sm:$0xff]  ;;  %v352_v22 = vld [vmem:[%s2838_s20 + $0x38] sm:$0xff]  ;;  %v409_v25 = vpack.c.bf16 %v347_v20, %v345_v19  ;;  %v393_v27 = vld [vmem:[%s2838_s20 + $0x180] sm:$0xff] }
  0x8e   : > { %608 = vmatprep.mubr.bf16.mxu0 %v410_v13  ;;  %v394_v23 = vld [vmem:[%s2838_s20 + $0x188] sm:$0xff]  ;;  %v396_v24 = vld [vmem:[%s2838_s20 + $0x198] sm:$0xff]  ;;  %v395_v28 = vld [vmem:[%s2838_s20 + $0x190] sm:$0xff]  ;;  %v412_v29 = vpack.c.bf16 %v352_v22, %v350_v21  ;;  %p2508_p7 = pneg %p2507_p3  ;;  %p2514_p2 = por %p2513_p1, %p2512_p12 }
  0x8f   : > { %v434_v26 = vpack.c.bf16 %v396_v24, %v394_v23  ;;  %v433_v30 = vpack.c.bf16 %v395_v28, %v393_v27  ;;  %v398_v31 = vld [vmem:[%s2838_s20 + $0x1a8] sm:$0xff]  ;;  %v400_v32 = vld [vmem:[%s2838_s20 + $0x1b8] sm:$0xff]  ;;  %v349_v34 = vld [vmem:[%s2838_s20 + $0x20] sm:$0xff] }
  0x90   : > { %1929 = vmatpush3.bf16.msra.mxu0 %v2356_v5  ;;  %2262 = vmatpush3.bf16.msra.mxu1 %v2356_v5  ;;  %v436_v33 = vpack.c.bf16 %v400_v32, %v398_v31  ;;  %v351_v35 = vld [vmem:[%s2838_s20 + $0x30] sm:$0xff]  ;;  %v354_v36 = vld [vmem:[%s2838_s20 + $0x48] sm:$0xff]  ;;  %v356_v37 = vld [vmem:[%s2838_s20 + $0x58] sm:$0xff]  ;;  %p2515_p4 = pnand %p2514_p2, %p2508_p7 }
  0x91   : > { %1930 = vmatprep.subr.bf16.mxu0 %v2357_v6  ;;  %2255 = vmatprep.subr.bf16.mxu1 %v2357_v6  ;;  %v397_v38 = vld [vmem:[%s2838_s20 + $0x1a0] sm:$0xff]  ;;  %v399_v39 = vld [vmem:[%s2838_s20 + $0x1b0] sm:$0xff]  ;;  %v402_v40 = vld [vmem:[%s2838_s20 + $0x1c8] sm:$0xff]  ;;  %v411_v42 = vpack.c.bf16 %v351_v35, %v349_v34  ;;  %v414_v44 = vpack.c.bf16 %v356_v37, %v354_v36 }
  0x92   : > { %704 = vmatprep.mubr.bf16.mxu1 %v434_v26  ;;  %v404_v41 = vld [vmem:[%s2838_s20 + $0x1d8] sm:$0xff]  ;;  %v2367_v43 = vld [vmem:[#allocation8] sm:$0xff]   ;;  %v435_v45 = vpack.c.bf16 %v399_v39, %v397_v38  ;;  %v2368_v46 = vld [vmem:[#allocation8 + $0x8] sm:$0xff]  }
  0x93   : > { %v438_v47 = vpack.c.bf16 %v404_v41, %v402_v40  ;;  %v2369_v48 = vld [vmem:[#allocation8 + $0x10] sm:$0xff]   ;;  %v353_v49 = vld [vmem:[%s2838_s20 + $0x40] sm:$0xff]  ;;  %v358_v51 = vld [vmem:[%s2838_s20 + $0x68] sm:$0xff] }
  0x94   : > { %1931 = vmatpush3.bf16.msra.mxu0 %v2358_v7  ;;  %2263 = vmatpush3.bf16.msra.mxu1 %v2358_v7  ;;  %v355_v50 = vld [vmem:[%s2838_s20 + $0x50] sm:$0xff]  ;;  %v360_v52 = vld [vmem:[%s2838_s20 + $0x78] sm:$0xff]  ;;  %v401_v53 = vld [vmem:[%s2838_s20 + $0x1c0] sm:$0xff] }
  0x95   : > { %1932 = vmatprep.subr.bf16.mxu0 %v2359_v8  ;;  %2256 = vmatprep.subr.bf16.mxu1 %v2359_v8  ;;  %v403_v54 = vld [vmem:[%s2838_s20 + $0x1d0] sm:$0xff]  ;;  %v406_v55 = vld [vmem:[%s2838_s20 + $0x1e8] sm:$0xff]  ;;  %v408_v56 = vld [vmem:[%s2838_s20 + $0x1f8] sm:$0xff]  ;;  %v413_v57 = vpack.c.bf16 %v355_v50, %v353_v49  ;;  %v416_v58 = vpack.c.bf16 %v360_v52, %v358_v51 }
  0x96   : > { %v437_v59 = vpack.c.bf16 %v403_v54, %v401_v53  ;;  %v440_v60 = vpack.c.bf16 %v408_v56, %v406_v55  ;;  %v357_v61 = vld [vmem:[%s2838_s20 + $0x60] sm:$0xff]  ;;  %v359_v62 = vld [vmem:[%s2838_s20 + $0x70] sm:$0xff]  ;;  %v362_v63 = vld [vmem:[%s2838_s20 + $0x88] sm:$0xff] }
  0x97   : > { %v364_v0 = vld [vmem:[%s2838_s20 + $0x98] sm:$0xff]  ;;  %v405_v1 = vld [vmem:[%s2838_s20 + $0x1e0] sm:$0xff]  ;;  %v407_v2 = vld [vmem:[%s2838_s20 + $0x1f0] sm:$0xff]  ;;  %v415_v3 = vpack.c.bf16 %v359_v62, %v357_v61 }
  0x98   : > { %1933 = vmatpush3.bf16.msra.mxu0 %v2360_v9  ;;  %2264 = vmatpush3.bf16.msra.mxu1 %v2360_v9  ;;  %v418_v4 = vpack.c.bf16 %v364_v0, %v362_v63  ;;  %v439_v5 = vpack.c.bf16 %v407_v2, %v405_v1  ;;  %v361_v6 = vld [vmem:[%s2838_s20 + $0x80] sm:$0xff]  ;;  %v363_v7 = vld [vmem:[%s2838_s20 + $0x90] sm:$0xff]  ;;  %v366_v8 = vld [vmem:[%s2838_s20 + $0xa8] sm:$0xff] }
  0x99   : > { %1934 = vmatprep.subr.bf16.mxu0 %v2361_v10  ;;  %2257 = vmatprep.subr.bf16.mxu1 %v2361_v10  ;;  %v368_v9 = vld [vmem:[%s2838_s20 + $0xb8] sm:$0xff]  ;;  %v417_v10 = vpack.c.bf16 %v363_v7, %v361_v6  ;;  %v365_v12 = vld [vmem:[%s2838_s20 + $0xa0] sm:$0xff]  ;;  %v367_v13 = vld [vmem:[%s2838_s20 + $0xb0] sm:$0xff] }
  0x9a   : > { %v420_v11 = vpack.c.bf16 %v368_v9, %v366_v8  ;;  %v371_v19 = vld [vmem:[%s2838_s20 + $0xd0] sm:$0xff]  ;;  %v374_v20 = vld [vmem:[%s2838_s20 + $0xe8] sm:$0xff]  ;;  %v376_v21 = vld [vmem:[%s2838_s20 + $0xf8] sm:$0xff] }
  0x9b   : > { %v424_v23 = vpack.c.bf16 %v376_v21, %v374_v20  ;;  %v373_v24 = vld [vmem:[%s2838_s20 + $0xe0] sm:$0xff]  ;;  %v378_v26 = vld [vmem:[%s2838_s20 + $0x108] sm:$0xff]  ;;  %v380_v27 = vld [vmem:[%s2838_s20 + $0x118] sm:$0xff] }
  0x9c   : > { %1935 = vmatpush3.bf16.msra.mxu0 %v2362_v14  ;;  %2265 = vmatpush3.bf16.msra.mxu1 %v2362_v14  ;;  %v370_v14 = vld [vmem:[%s2838_s20 + $0xc8] sm:$0xff]  ;;  %v379_v31 = vld [vmem:[%s2838_s20 + $0x110] sm:$0xff]  ;;  %v381_v36 = vld [vmem:[%s2838_s20 + $0x120] sm:$0xff] }
  0x9d   : > { %1936 = vmatprep.subr.bf16.mxu0 %v2363_v15  ;;  %2258 = vmatprep.subr.bf16.mxu1 %v2363_v15  ;;  %v372_v15 = vld [vmem:[%s2838_s20 + $0xd8] sm:$0xff]  ;;  %v382_v32 = vld [vmem:[%s2838_s20 + $0x128] sm:$0xff]  ;;  %v383_v37 = vld [vmem:[%s2838_s20 + $0x130] sm:$0xff] }
  0x9e   : > { %v386_v38 = vld [vmem:[%s2838_s20 + $0x148] sm:$0xff]  ;;  %v388_v39 = vld [vmem:[%s2838_s20 + $0x158] sm:$0xff]  ;;  %v427_v40 = vpack.c.bf16 %v383_v37, %v381_v36  ;;  %v391_v49 = vld [vmem:[%s2838_s20 + $0x170] sm:$0xff] }
  0x9f   : > { %v430_v41 = vpack.c.bf16 %v388_v39, %v386_v38  ;;  %v2370_v50 = vld [vmem:[#allocation8 + $0x18] sm:$0xff]   ;;  %v2371_v52 = vld [vmem:[#allocation8 + $0x20] sm:$0xff]   ;;  %v2372_v53 = vld [vmem:[#allocation8 + $0x28] sm:$0xff]  }
  0xa0   : > { %1937 = vmatpush3.bf16.msra.mxu0 %v2364_v16  ;;  %2266 = vmatpush3.bf16.msra.mxu1 %v2364_v16  ;;  %v419_v16 = vpack.c.bf16 %v367_v13, %v365_v12  ;;  %v2373_v54 = vld [vmem:[#allocation8 + $0x30] sm:$0xff]   ;;  %v2374_v55 = vld [vmem:[#allocation8 + $0x38] sm:$0xff]   ;;  %v2916_v56 = vld [vmem:[#allocation8 + $0x40] sm:$0xff]  }
  0xa1   : > { %1938 = vmatprep.subr.bf16.mxu0 %v2365_v17  ;;  %2259 = vmatprep.subr.bf16.mxu1 %v2365_v17  ;;  %v422_v17 = vpack.c.bf16 %v372_v15, %v370_v14 }
  0xa4   : > { %1939 = vmatpush3.bf16.msra.mxu0 %v2366_v18  ;;  %2267 = vmatpush3.bf16.msra.mxu1 %v2366_v18  ;;  %v369_v18 = vld [vmem:[%s2838_s20 + $0xc0] sm:$0xff] }
  0xa5   : > { %2108 = vmatprep.subr.bf16.mxu1 %v2367_v43  ;;  %v421_v22 = vpack.c.bf16 %v371_v19, %v369_v18 }
  0xa7   : > { %609 = vmatmul.mubr.bf16.vlgmr.msra.gmra.mrb[0].mxu0 %v409_v25  ;;  %705 = vmatmul.mubr.bf16.vlgmr.msra.gmra.mrb[0].mxu1 %v433_v30  ;;  %v375_v25 = vld [vmem:[%s2838_s20 + $0xf0] sm:$0xff]  ;;  %v377_v30 = vld [vmem:[%s2838_s20 + $0x100] sm:$0xff] }
  0xa8   : > { %616 = vmatprep.mubr.bf16.mxu0 %v412_v29  ;;  %712 = vmatprep.mubr.bf16.mxu1 %v436_v33  ;;  %v423_v28 = vpack.c.bf16 %v375_v25, %v373_v24  ;;  %v426_v29 = vpack.c.bf16 %v380_v27, %v378_v26  ;;  %v384_v33 = vld [vmem:[%s2838_s20 + $0x138] sm:$0xff]  ;;  %v425_v34 = vpack.c.bf16 %v379_v31, %v377_v30 }
  0xa9   : > { %2109 = vmatpush3.bf16.msra.mxu1 %v2367_v43  ;;  %v428_v35 = vpack.c.bf16 %v384_v33, %v382_v32  ;;  %v387_v43 = vld [vmem:[%s2838_s20 + $0x150] sm:$0xff] }
  0xaa   : > { %2110 = vmatprep.subr.bf16.mxu1 %v2368_v46 }
  0xad   : > { %2111 = vmatpush3.bf16.msra.mxu1 %v2368_v46 }
  0xae   : > { %2112 = vmatprep.subr.bf16.mxu1 %v2369_v48 }
  0xaf   : > { %617 = vmatmul.mubr.bf16.gmra.mrb[4].mxu0 %v411_v42  ;;  %713 = vmatmul.mubr.bf16.gmra.mrb[4].mxu1 %v435_v45  ;;  %v385_v42 = vld [vmem:[%s2838_s20 + $0x140] sm:$0xff]  ;;  %v392_v45 = vld [vmem:[%s2838_s20 + $0x178] sm:$0xff] }
  0xb0   : > { %624 = vmatprep.mubr.bf16.mxu0 %v414_v44  ;;  %720 = vmatprep.mubr.bf16.mxu1 %v438_v47  ;;  %v390_v44 = vld [vmem:[%s2838_s20 + $0x168] sm:$0xff]  ;;  %v429_v46 = vpack.c.bf16 %v387_v43, %v385_v42 }
  0xb1   : > { %2113 = vmatpush3.bf16.msra.mxu1 %v2369_v48  ;;  %v432_v47 = vpack.c.bf16 %v392_v45, %v390_v44  ;;  %v389_v48 = vld [vmem:[%s2838_s20 + $0x160] sm:$0xff]  ;;  %v2376_v43 = vld [vmem:[#allocation8 + $0x48] sm:$0xff]  }
  0xb2   : > { %2114 = vmatprep.subr.bf16.mxu1 %v2370_v50  ;;  %v431_v51 = vpack.c.bf16 %v391_v49, %v389_v48 }
  0xb5   : > { %2115 = vmatpush3.bf16.msra.mxu1 %v2370_v50 }
  0xb6   : > { %2116 = vmatprep.subr.bf16.mxu1 %v2371_v52 }
  0xb7   : > { %625 = vmatmul.mubr.bf16.gmra.mrb[8].mxu0 %v413_v57  ;;  %721 = vmatmul.mubr.bf16.gmra.mrb[8].mxu1 %v437_v59 }
  0xb8   : > { %632 = vmatprep.mubr.bf16.mxu0 %v416_v58  ;;  %728 = vmatprep.mubr.bf16.mxu1 %v440_v60  ;;  %v2922_v58 = vld [vmem:[%s3168_s2] ss:$0 sm:$0xff] }
  0xb9   : > { %2117 = vmatpush3.bf16.msra.mxu1 %v2371_v52 }
  0xba   : > { %2118 = vmatprep.subr.bf16.mxu1 %v2372_v53 }
  0xbd   : > { %2119 = vmatpush3.bf16.msra.mxu1 %v2372_v53 }
  0xbe   : > { %2120 = vmatprep.subr.bf16.mxu1 %v2373_v54 }
  0xbf   : > { %633 = vmatmul.mubr.bf16.gmra.mrb[12].mxu0 %v415_v3  ;;  %729 = vmatmul.mubr.bf16.gmra.mrb[12].mxu1 %v439_v5 }
  0xc0   : > { %640 = vmatprep.mubr.bf16.mxu0 %v418_v4 }
  0xc1   : > { %2121 = vmatpush3.bf16.msra.mxu1 %v2373_v54  ;;  %v2377_v54 = vld [vmem:[#allocation8 + $0x50] sm:$0xff]  }
  0xc2   : > { %2122 = vmatprep.subr.bf16.mxu1 %v2374_v55 }
  0xc5   : > { %2123 = vmatpush3.bf16.msra.mxu1 %v2374_v55 }
  0xc6   : > { %2156 = vmatprep.subr.bf16.mxu1 %v2916_v56 }
  0xc7   : > { %641 = vmatmul.mubr.bf16.gmra.mrb[16].mxu0 %v417_v10 }
  0xc8   : > { %648 = vmatprep.mubr.bf16.mxu0 %v420_v11 }
  0xcf   : > { %649 = vmatmul.mubr.bf16.gmra.mrb[20].mxu0 %v419_v16 }
  0xd0   : > { %656 = vmatprep.mubr.bf16.mxu0 %v422_v17 }
  0xd7   : > { %657 = vmatmul.mubr.bf16.gmra.mrb[24].mxu0 %v421_v22 }
  0xd8   : > { %664 = vmatprep.mubr.bf16.mxu0 %v424_v23 }
  0xdf   : > { %665 = vmatmul.mubr.bf16.gmra.mrb[28].mxu0 %v423_v28 }
  0xe0   : > { %672 = vmatprep.mubr.bf16.mxu0 %v426_v29 }
  0xe7   : > { %673 = vmatmul.mubr.bf16.gmra.mrb[32].mxu0 %v425_v34 }
  0xe8   : > { %680 = vmatprep.mubr.bf16.mxu0 %v428_v35 }
  0xef   : > { %681 = vmatmul.mubr.bf16.gmra.mrb[36].mxu0 %v427_v40 }
  0xf0   : > { %688 = vmatprep.mubr.bf16.mxu0 %v430_v41 }
  0xf7   : > { %689 = vmatmul.mubr.bf16.gmra.mrb[40].mxu0 %v429_v46 }
  0xf8   : > { %696 = vmatprep.mubr.bf16.mxu0 %v432_v47 }
  0xff   : > { %697 = vmatmul.mubr.bf16.gmra.mrb[44].mxu0 %v431_v51 }
 0x17a   : > { %v1940_v57 = vpop.f32.mrb[0].mxu0  ;;  %v2012_v60 = vpop.f32.mrb[0].mxu1 }
 0x17b   : > { %v1941_v59 = vpop.f32.mrb[1].mxu0  ;;  %v2013_v63 = vpop.f32.mrb[1].mxu1 }
 0x17c   : > { %v1942_v61 = vadd.f32 %v1941_v59, %v1940_v57  ;;  %v1943_v62 = vpop.f32.mrb[2].mxu0  ;;  %v2014_v1 = vadd.f32 %v2013_v63, %v2012_v60  ;;  %v2015_v2 = vpop.f32.mrb[2].mxu1 }
 0x17d   : > { %v1944_v0 = vpop.f32.mrb[3].mxu0  ;;  %v2016_v5 = vpop.f32.mrb[3].mxu1 }
 0x17e   : > { %v611_v3 = vadd.f32 %v1942_v61, %v2922_v58  ;;  %v1945_v4 = vadd.f32 %v1944_v0, %v1943_v62  ;;  %v707_v6 = vadd.f32 %v2014_v1, %v2922_v58  ;;  %v2017_v7 = vadd.f32 %v2016_v5, %v2015_v2 }
 0x180   : > { %v614_v8 = vadd.f32 %v1945_v4, %v2922_v58  ;;  %v761_v9 = vmax.f32 %v707_v6, 0.0  ;;  %v710_v10 = vadd.f32 %v2017_v7, %v2922_v58  ;;  %v737_v11 = vmax.f32 %v611_v3, 0.0 }
 0x182   : > { %v738_v12 = vmax.f32 %v614_v8, 0.0  ;;  %v1946_v13 = vpop.f32.mrb[4].mxu0  ;;  %v762_v15 = vmax.f32 %v710_v10, 0.0  ;;  %v2018_v16 = vpop.f32.mrb[4].mxu1 }
 0x183   : > { %v1947_v14 = vpop.f32.mrb[5].mxu0  ;;  %v2019_v20 = vpop.f32.mrb[5].mxu1 }
 0x184   : > { %v1948_v17 = vadd.f32 %v1947_v14, %v1946_v13  ;;  %v1949_v18 = vpop.f32.mrb[6].mxu0  ;;  %v769_v19 = vpack.c.bf16 %v738_v12, %v737_v11  ;;  %v2020_v22 = vadd.f32 %v2019_v20, %v2018_v16  ;;  %v2021_v23 = vpop.f32.mrb[6].mxu1  ;;  %v2928_v24 = vpack.c.bf16 %v762_v15, %v761_v9  ;;  %v2379_v15 = vld [vmem:[#allocation8 + $0x60] sm:$0xff]  }
 0x185   : > { %v1950_v21 = vpop.f32.mrb[7].mxu0  ;;  %v2022_v27 = vpop.f32.mrb[7].mxu1 }
 0x186   : > { %v619_v25 = vadd.f32 %v1948_v17, %v2922_v58  ;;  %v1951_v26 = vadd.f32 %v1950_v21, %v1949_v18  ;;  %2124 = vmatprep.mubr.bf16.mxu1 %v769_v19  ;;  %v715_v28 = vadd.f32 %v2020_v22, %v2922_v58  ;;  %v2023_v29 = vadd.f32 %v2022_v27, %v2021_v23  ;;  %v2380_v27 = vld [vmem:[#allocation8 + $0x68] sm:$0xff]  }
 0x188   : > { %v622_v30 = vadd.f32 %v1951_v26, %v2922_v58  ;;  %v763_v31 = vmax.f32 %v715_v28, 0.0  ;;  %v718_v32 = vadd.f32 %v2023_v29, %v2922_v58  ;;  %v739_v33 = vmax.f32 %v619_v25, 0.0 }
 0x18a   : > { %v740_v34 = vmax.f32 %v622_v30, 0.0  ;;  %v1952_v35 = vpop.f32.mrb[8].mxu0  ;;  %v764_v37 = vmax.f32 %v718_v32, 0.0  ;;  %v2024_v38 = vpop.f32.mrb[8].mxu1 }
 0x18b   : > { %v1953_v36 = vpop.f32.mrb[9].mxu0  ;;  %v2025_v42 = vpop.f32.mrb[9].mxu1 }
 0x18c   : > { %v770_v39 = vpack.c.bf16 %v740_v34, %v739_v33  ;;  %v1954_v40 = vadd.f32 %v1953_v36, %v1952_v35  ;;  %v1955_v41 = vpop.f32.mrb[10].mxu0  ;;  %v2026_v45 = vadd.f32 %v2025_v42, %v2024_v38  ;;  %v2027_v46 = vpop.f32.mrb[10].mxu1  ;;  %v2934_v47 = vpack.c.bf16 %v764_v37, %v763_v31 }
 0x18d   : > { %v1956_v44 = vpop.f32.mrb[11].mxu0  ;;  %v2028_v50 = vpop.f32.mrb[11].mxu1 }
 0x18e   : > { %v627_v48 = vadd.f32 %v1954_v40, %v2922_v58  ;;  %v1957_v49 = vadd.f32 %v1956_v44, %v1955_v41  ;;  %2125 = vmatmul.mubr.bf16.vlgmr.msra.gmra.mrb[16].mxu1 %v770_v39  ;;  %v723_v51 = vadd.f32 %v2026_v45, %v2922_v58  ;;  %v2029_v52 = vadd.f32 %v2028_v50, %v2027_v46 }
 0x18f   : > { %2157 = vmatpush3.bf16.msra.mxu1 %v2916_v56  ;;  %v2378_v56 = vld [vmem:[#allocation8 + $0x58] sm:$0xff]  }
 0x190   : > { %v630_v53 = vadd.f32 %v1957_v49, %v2922_v58  ;;  %2158 = vmatprep.subr.bf16.mxu1 %v2376_v43  ;;  %v765_v55 = vmax.f32 %v723_v51, 0.0  ;;  %v726_v57 = vadd.f32 %v2029_v52, %v2922_v58  ;;  %v741_v59 = vmax.f32 %v627_v48, 0.0 }
 0x192   : > { %v742_v60 = vmax.f32 %v630_v53, 0.0  ;;  %v1958_v61 = vpop.f32.mrb[12].mxu0  ;;  %v766_v63 = vmax.f32 %v726_v57, 0.0  ;;  %v2030_v0 = vpop.f32.mrb[12].mxu1 }
 0x193   : > { %v1959_v62 = vpop.f32.mrb[13].mxu0  ;;  %2159 = vmatpush3.bf16.msra.mxu1 %v2376_v43  ;;  %v2031_v4 = vpop.f32.mrb[13].mxu1 }
 0x194   : > { %v1960_v1 = vadd.f32 %v1959_v62, %v1958_v61  ;;  %v1961_v2 = vpop.f32.mrb[14].mxu0  ;;  %v771_v3 = vpack.c.bf16 %v742_v60, %v741_v59  ;;  %2160 = vmatprep.subr.bf16.mxu1 %v2377_v54  ;;  %v2032_v6 = vadd.f32 %v2031_v4, %v2030_v0  ;;  %v2033_v7 = vpop.f32.mrb[14].mxu1  ;;  %v2941_v8 = vpack.c.bf16 %v766_v63, %v765_v55 }
 0x195   : > { %v1962_v5 = vpop.f32.mrb[15].mxu0  ;;  %v2034_v11 = vpop.f32.mrb[15].mxu1 }
 0x196   : > { %v635_v9 = vadd.f32 %v1960_v1, %v2922_v58  ;;  %v1963_v10 = vadd.f32 %v1962_v5, %v1961_v2  ;;  %2128 = vmatprep.mubr.bf16.mxu1 %v771_v3  ;;  %v731_v12 = vadd.f32 %v2032_v6, %v2922_v58  ;;  %v2035_v13 = vadd.f32 %v2034_v11, %v2033_v7 }
 0x197   : > { %2161 = vmatpush3.bf16.msra.mxu1 %v2377_v54 }
 0x198   : > { %v638_v14 = vadd.f32 %v1963_v10, %v2922_v58  ;;  %2162 = vmatprep.subr.bf16.mxu1 %v2378_v56  ;;  %v767_v16 = vmax.f32 %v731_v12, 0.0  ;;  %v734_v17 = vadd.f32 %v2035_v13, %v2922_v58  ;;  %v743_v18 = vmax.f32 %v635_v9, 0.0 }
 0x19a   : > { %v744_v19 = vmax.f32 %v638_v14, 0.0  ;;  %v1964_v20 = vpop.f32.mrb[16].mxu0  ;;  %v768_v22 = vmax.f32 %v734_v17, 0.0 }
 0x19b   : > { %v1965_v21 = vpop.f32.mrb[17].mxu0  ;;  %2163 = vmatpush3.bf16.msra.mxu1 %v2378_v56 }
 0x19c   : > { %v1966_v23 = vadd.f32 %v1965_v21, %v1964_v20  ;;  %v1967_v25 = vpop.f32.mrb[18].mxu0  ;;  %v772_v26 = vpack.c.bf16 %v744_v19, %v743_v18  ;;  %2164 = vmatprep.subr.bf16.mxu1 %v2379_v15  ;;  %v2947_v29 = vpack.c.bf16 %v768_v22, %v767_v16 }
 0x19d   : > { %v1968_v28 = vpop.f32.mrb[19].mxu0 }
 0x19e   : > { %v643_v30 = vadd.f32 %v1966_v23, %v2922_v58  ;;  %v1969_v31 = vadd.f32 %v1968_v28, %v1967_v25  ;;  %2129 = vmatmul.mubr.bf16.gmra.mrb[20].mxu1 %v772_v26 }
 0x19f   : > { %2165 = vmatpush3.bf16.msra.mxu1 %v2379_v15 }
 0x1a0   : > { %v646_v32 = vadd.f32 %v1969_v31, %v2922_v58  ;;  %2166 = vmatprep.subr.bf16.mxu1 %v2380_v27  ;;  %v745_v33 = vmax.f32 %v643_v30, 0.0 }
 0x1a2   : > { %v746_v34 = vmax.f32 %v646_v32, 0.0  ;;  %v1970_v35 = vpop.f32.mrb[20].mxu0 }
 0x1a3   : > { %v1971_v36 = vpop.f32.mrb[21].mxu0  ;;  %2167 = vmatpush3.bf16.msra.mxu1 %v2380_v27 }
 0x1a4   : > { %v1972_v37 = vadd.f32 %v1971_v36, %v1970_v35  ;;  %v1973_v38 = vpop.f32.mrb[22].mxu0  ;;  %v773_v39 = vpack.c.bf16 %v746_v34, %v745_v33 }
 0x1a5   : > { %v1974_v40 = vpop.f32.mrb[23].mxu0 }
 0x1a6   : > { %v651_v41 = vadd.f32 %v1972_v37, %v2922_v58  ;;  %v1975_v42 = vadd.f32 %v1974_v40, %v1973_v38  ;;  %2132 = vmatprep.mubr.bf16.mxu1 %v773_v39 }
 0x1a8   : > { %v654_v43 = vadd.f32 %v1975_v42, %v2922_v58  ;;  %v747_v44 = vmax.f32 %v651_v41, 0.0 }
 0x1aa   : > { %v748_v45 = vmax.f32 %v654_v43, 0.0  ;;  %v1976_v46 = vpop.f32.mrb[24].mxu0 }
 0x1ab   : > { %v1977_v48 = vpop.f32.mrb[25].mxu0 }
 0x1ac   : > { %v1978_v49 = vadd.f32 %v1977_v48, %v1976_v46  ;;  %v1979_v50 = vpop.f32.mrb[26].mxu0  ;;  %v774_v51 = vpack.c.bf16 %v748_v45, %v747_v44 }
 0x1ad   : > { %v1980_v52 = vpop.f32.mrb[27].mxu0 }
 0x1ae   : > { %v659_v53 = vadd.f32 %v1978_v49, %v2922_v58  ;;  %v1981_v54 = vadd.f32 %v1980_v52, %v1979_v50  ;;  %2133 = vmatmul.mubr.bf16.gmra.mrb[24].mxu1 %v774_v51 }
 0x1b0   : > { %v662_v55 = vadd.f32 %v1981_v54, %v2922_v58  ;;  %v749_v57 = vmax.f32 %v659_v53, 0.0 }
 0x1b2   : > { %v750_v59 = vmax.f32 %v662_v55, 0.0  ;;  %v1982_v60 = vpop.f32.mrb[28].mxu0  ;;  %v2381_v55 = vld [vmem:[#allocation8 + $0x70] sm:$0xff]  }
 0x1b3   : > { %v1983_v61 = vpop.f32.mrb[29].mxu0  ;;  %2168 = vmatprep.subr.bf16.mxu1 %v2381_v55 }
 0x1b4   : > { %v1984_v62 = vadd.f32 %v1983_v61, %v1982_v60  ;;  %v1985_v63 = vpop.f32.mrb[30].mxu0  ;;  %v775_v0 = vpack.c.bf16 %v750_v59, %v749_v57  ;;  %2169 = vmatpush3.bf16.msra.mxu1 %v2381_v55  ;;  %v2382_v57 = vld [vmem:[#allocation8 + $0x78] sm:$0xff]   ;;  %v2383_v59 = vld [vmem:[#allocation9] sm:$0xff]   ;;  %v2385_v60 = vld [vmem:[#allocation9 + $0x10] sm:$0xff]  }
 0x1b5   : > { %v1986_v1 = vpop.f32.mrb[31].mxu0  ;;  %2170 = vmatprep.subr.bf16.mxu1 %v2382_v57  ;;  %2204 = vmatprep.subr.bf16.mxu0 %v2383_v59  ;;  %v2387_v61 = vld [vmem:[#allocation9 + $0x20] sm:$0xff]  }
 0x1b6   : > { %v667_v2 = vadd.f32 %v1984_v62, %v2922_v58  ;;  %v1987_v3 = vadd.f32 %v1986_v1, %v1985_v63  ;;  %2136 = vmatprep.mubr.bf16.mxu1 %v775_v0  ;;  %2205 = vmatpush3.bf16.msra.mxu0 %v2383_v59 }
 0x1b8   : > { %v670_v4 = vadd.f32 %v1987_v3, %v2922_v58  ;;  %v751_v56 = vmax.f32 %v667_v2, 0.0  ;;  %2171 = vmatpush3.bf16.msra.mxu1 %v2382_v57 }
 0x1ba   : > { %v752_v5 = vmax.f32 %v670_v4, 0.0  ;;  %v1988_v6 = vpop.f32.mrb[32].mxu0 }
 0x1bb   : > { %v1989_v7 = vpop.f32.mrb[33].mxu0 }
 0x1bc   : > { %v1990_v9 = vadd.f32 %v1989_v7, %v1988_v6  ;;  %v1991_v10 = vpop.f32.mrb[34].mxu0  ;;  %v776_v11 = vpack.c.bf16 %v752_v5, %v751_v56 }
 0x1bd   : > { %v1992_v12 = vpop.f32.mrb[35].mxu0 }
 0x1be   : > { %v675_v13 = vadd.f32 %v1990_v9, %v2922_v58  ;;  %v1993_v14 = vadd.f32 %v1992_v12, %v1991_v10  ;;  %2137 = vmatmul.mubr.bf16.gmra.mrb[28].mxu1 %v776_v11 }
 0x1c0   : > { %v678_v15 = vadd.f32 %v1993_v14, %v2922_v58  ;;  %v753_v16 = vmax.f32 %v675_v13, 0.0 }
 0x1c2   : > { %v754_v17 = vmax.f32 %v678_v15, 0.0  ;;  %v1994_v18 = vpop.f32.mrb[36].mxu0 }
 0x1c3   : > { %v1995_v19 = vpop.f32.mrb[37].mxu0 }
 0x1c4   : > { %v1996_v20 = vadd.f32 %v1995_v19, %v1994_v18  ;;  %v1997_v21 = vpop.f32.mrb[38].mxu0  ;;  %v777_v22 = vpack.c.bf16 %v754_v17, %v753_v16 }
 0x1c5   : > { %v1998_v23 = vpop.f32.mrb[39].mxu0 }
 0x1c6   : > { %v683_v25 = vadd.f32 %v1996_v20, %v2922_v58  ;;  %v1999_v26 = vadd.f32 %v1998_v23, %v1997_v21  ;;  %2140 = vmatprep.mubr.bf16.mxu1 %v777_v22 }
 0x1c8   : > { %v686_v27 = vadd.f32 %v1999_v26, %v2922_v58  ;;  %v755_v28 = vmax.f32 %v683_v25, 0.0 }
 0x1ca   : > { %v756_v30 = vmax.f32 %v686_v27, 0.0  ;;  %v2000_v31 = vpop.f32.mrb[40].mxu0 }
 0x1cb   : > { %v2001_v32 = vpop.f32.mrb[41].mxu0 }
 0x1cc   : > { %v2002_v33 = vadd.f32 %v2001_v32, %v2000_v31  ;;  %v2003_v34 = vpop.f32.mrb[42].mxu0  ;;  %v778_v35 = vpack.c.bf16 %v756_v30, %v755_v28 }
 0x1cd   : > { %v2004_v36 = vpop.f32.mrb[43].mxu0 }
 0x1ce   : > { %v691_v37 = vadd.f32 %v2002_v33, %v2922_v58  ;;  %v2005_v38 = vadd.f32 %v2004_v36, %v2003_v34  ;;  %2141 = vmatmul.mubr.bf16.gmra.mrb[32].mxu1 %v778_v35 }
 0x1d0   : > { %v694_v39 = vadd.f32 %v2005_v38, %v2922_v58  ;;  %v757_v40 = vmax.f32 %v691_v37, 0.0 }
 0x1d2   : > { %v758_v41 = vmax.f32 %v694_v39, 0.0  ;;  %v2006_v42 = vpop.f32.mrb[44].mxu0 }
 0x1d3   : > { %v2007_v43 = vpop.f32.mrb[45].mxu0 }
 0x1d4   : > { %v2008_v44 = vadd.f32 %v2007_v43, %v2006_v42  ;;  %v2009_v45 = vpop.f32.mrb[46].mxu0  ;;  %v779_v46 = vpack.c.bf16 %v758_v41, %v757_v40 }
 0x1d5   : > { %v2010_v48 = vpop.f32.mrb[47].mxu0 }
 0x1d6   : > { %v699_v49 = vadd.f32 %v2008_v44, %v2922_v58  ;;  %v2011_v50 = vadd.f32 %v2010_v48, %v2009_v45  ;;  %2144 = vmatprep.mubr.bf16.mxu1 %v779_v46 }
 0x1d8   : > { %v702_v51 = vadd.f32 %v2011_v50, %v2922_v58  ;;  %v759_v52 = vmax.f32 %v699_v49, 0.0  ;;  %v2384_v58 = vld [vmem:[#allocation9 + $0x8] sm:$0xff]  }
 0x1d9   : > { %2206 = vmatprep.subr.bf16.mxu0 %v2384_v58 }
 0x1da   : > { %v760_v53 = vmax.f32 %v702_v51, 0.0  ;;  %2207 = vmatpush3.bf16.msra.mxu0 %v2384_v58 }
 0x1db   : > { %2208 = vmatprep.subr.bf16.mxu0 %v2385_v60 }
 0x1dc   : > { %v780_v54 = vpack.c.bf16 %v760_v53, %v759_v52 }
 0x1de   : > { %2145 = vmatmul.mubr.bf16.gmra.mrb[36].mxu1 %v780_v54  ;;  %2209 = vmatpush3.bf16.msra.mxu0 %v2385_v60 }
 0x1df   : > { %2148 = vmatprep.mubr.bf16.mxu1 %v2928_v24  ;;  %v2386_v24 = vld [vmem:[#allocation9 + $0x18] sm:$0xff]  }
 0x1e0   : > { %2210 = vmatprep.subr.bf16.mxu0 %v2386_v24 }
 0x1e2   : > { %2211 = vmatpush3.bf16.msra.mxu0 %v2386_v24 }
 0x1e3   : > { %2212 = vmatprep.subr.bf16.mxu0 %v2387_v61 }
 0x1e6   : > { %2149 = vmatmul.mubr.bf16.gmra.mrb[40].mxu1 %v2934_v47  ;;  %v2388_v47 = vld [vmem:[#allocation9 + $0x28] sm:$0xff]   ;;  %2213 = vmatpush3.bf16.msra.mxu0 %v2387_v61 }
 0x1e7   : > { %2152 = vmatprep.mubr.bf16.mxu1 %v2941_v8  ;;  %v2972_v8 = vld [vmem:[%s3170_s4] ss:$0 sm:$0xff]  ;;  %2214 = vmatprep.subr.bf16.mxu0 %v2388_v47 }
 0x1ea   : > { %2215 = vmatpush3.bf16.msra.mxu0 %v2388_v47 }
 0x1ee   : > { %2153 = vmatmul.mubr.bf16.gmra.mrb[44].mxu1 %v2947_v29 }
 0x261   : > { %v2126_v29 = vpop.f32.mrb[16].mxu1 }
 0x262   : > { %v931_v62 = vadd.f32 %v2126_v29, %v2972_v8  ;;  %v922_v63 = vpop.f32.mrb[17].mxu1 }
 0x263   : > { %v923_v0 = vadd.f32 %v2972_v8, %v922_v63  ;;  %v2127_v1 = vpop.f32.mrb[18].mxu1 }
 0x264   : > { %v934_v2 = vadd.f32 %v2127_v1, %v2972_v8  ;;  %v925_v3 = vpop.f32.mrb[19].mxu1  ;;  %v1051_v56 = vmax.f32 %v931_v62, 0.0 }
 0x265   : > { %v926_v4 = vadd.f32 %v2972_v8, %v925_v3  ;;  %v1049_v6 = vmax.f32 %v923_v0, 0.0 }
 0x266   : > { %v1052_v5 = vmax.f32 %v934_v2, 0.0 }
 0x267   : > { %v1050_v7 = vmax.f32 %v926_v4, 0.0 }
 0x268   : > { %v1082_v9 = vpack.c.bf16 %v1052_v5, %v1051_v56 }
 0x269   : > { %v1081_v10 = vpack.c.bf16 %v1050_v7, %v1049_v6 }
 0x26b   : > { %2172 = vmatprep.mubr.bf16.mxu1 %v1081_v10 }
 0x26c   : > { %2173 = vmatmul.mubr.bf16.vlgmr.msra.gmra.mrb[48].mxu1 %v1082_v9 }
 0x271   : > { %v2130_v11 = vpop.f32.mrb[20].mxu1 }
 0x272   : > { %v947_v12 = vadd.f32 %v2130_v11, %v2972_v8  ;;  %v938_v13 = vpop.f32.mrb[21].mxu1 }
 0x273   : > { %v939_v14 = vadd.f32 %v2972_v8, %v938_v13  ;;  %v2131_v15 = vpop.f32.mrb[22].mxu1 }
 0x274   : > { %v950_v16 = vadd.f32 %v2131_v15, %v2972_v8  ;;  %v941_v17 = vpop.f32.mrb[23].mxu1  ;;  %v1055_v19 = vmax.f32 %v947_v12, 0.0 }
 0x275   : > { %v942_v18 = vadd.f32 %v2972_v8, %v941_v17  ;;  %v1053_v21 = vmax.f32 %v939_v14, 0.0 }
 0x276   : > { %v1056_v20 = vmax.f32 %v950_v16, 0.0 }
 0x277   : > { %v1054_v22 = vmax.f32 %v942_v18, 0.0 }
 0x278   : > { %v1084_v23 = vpack.c.bf16 %v1056_v20, %v1055_v19 }
 0x279   : > { %v1083_v25 = vpack.c.bf16 %v1054_v22, %v1053_v21 }
 0x27b   : > { %2176 = vmatprep.mubr.bf16.mxu1 %v1083_v25 }
 0x27c   : > { %2177 = vmatmul.mubr.bf16.gmra.mrb[52].mxu1 %v1084_v23 }
 0x281   : > { %v2134_v26 = vpop.f32.mrb[24].mxu1 }
 0x282   : > { %v963_v27 = vadd.f32 %v2134_v26, %v2972_v8  ;;  %v954_v28 = vpop.f32.mrb[25].mxu1 }
 0x283   : > { %v955_v30 = vadd.f32 %v2972_v8, %v954_v28  ;;  %v2135_v31 = vpop.f32.mrb[26].mxu1 }
 0x284   : > { %v966_v32 = vadd.f32 %v2135_v31, %v2972_v8  ;;  %v957_v33 = vpop.f32.mrb[27].mxu1  ;;  %v1059_v35 = vmax.f32 %v963_v27, 0.0 }
 0x285   : > { %v958_v34 = vadd.f32 %v2972_v8, %v957_v33  ;;  %v1057_v37 = vmax.f32 %v955_v30, 0.0  ;;  %v2389_v33 = vld [vmem:[#allocation9 + $0x30] sm:$0xff]  }
 0x286   : > { %v1060_v36 = vmax.f32 %v966_v32, 0.0  ;;  %2216 = vmatprep.subr.bf16.mxu0 %v2389_v33 }
 0x287   : > { %v1058_v38 = vmax.f32 %v958_v34, 0.0  ;;  %2217 = vmatpush3.bf16.msra.mxu0 %v2389_v33 }
 0x288   : > { %v1086_v39 = vpack.c.bf16 %v1060_v36, %v1059_v35 }
 0x289   : > { %v1085_v40 = vpack.c.bf16 %v1058_v38, %v1057_v37 }
 0x28b   : > { %2180 = vmatprep.mubr.bf16.mxu1 %v1085_v40 }
 0x28c   : > { %2181 = vmatmul.mubr.bf16.gmra.mrb[56].mxu1 %v1086_v39 }
 0x291   : > { %v2138_v41 = vpop.f32.mrb[28].mxu1 }
 0x292   : > { %v979_v42 = vadd.f32 %v2138_v41, %v2972_v8  ;;  %v970_v43 = vpop.f32.mrb[29].mxu1 }
 0x293   : > { %v971_v44 = vadd.f32 %v2972_v8, %v970_v43  ;;  %v2139_v45 = vpop.f32.mrb[30].mxu1 }
 0x294   : > { %v982_v46 = vadd.f32 %v2139_v45, %v2972_v8  ;;  %v973_v48 = vpop.f32.mrb[31].mxu1  ;;  %v1063_v50 = vmax.f32 %v979_v42, 0.0  ;;  %v2390_v42 = vld [vmem:[#allocation9 + $0x38] sm:$0xff]  }
 0x295   : > { %v974_v49 = vadd.f32 %v2972_v8, %v973_v48  ;;  %v1061_v52 = vmax.f32 %v971_v44, 0.0  ;;  %2218 = vmatprep.subr.bf16.mxu0 %v2390_v42 }
 0x296   : > { %v1064_v51 = vmax.f32 %v982_v46, 0.0  ;;  %2219 = vmatpush3.bf16.msra.mxu0 %v2390_v42 }
 0x297   : > { %v1062_v53 = vmax.f32 %v974_v49, 0.0 }
 0x298   : > { %v1088_v54 = vpack.c.bf16 %v1064_v51, %v1063_v50  ;;  %v3009_v51 = vld [vmem:[%s3170_s4 + $0x1] ss:$0 sm:$0xff] }
 0x299   : > { %v1087_v55 = vpack.c.bf16 %v1062_v53, %v1061_v52 }
 0x29b   : > { %2184 = vmatprep.mubr.bf16.mxu1 %v1087_v55 }
 0x29c   : > { %2185 = vmatmul.mubr.bf16.gmra.mrb[60].mxu1 %v1088_v54 }
 0x2a1   : > { %v2142_v57 = vpop.f32.mrb[32].mxu1 }
 0x2a2   : > { %v995_v59 = vadd.f32 %v2142_v57, %v2972_v8  ;;  %v986_v58 = vpop.f32.mrb[33].mxu1 }
 0x2a3   : > { %v987_v60 = vadd.f32 %v2972_v8, %v986_v58  ;;  %v2143_v24 = vpop.f32.mrb[34].mxu1 }
 0x2a4   : > { %v998_v61 = vadd.f32 %v2143_v24, %v2972_v8  ;;  %v989_v47 = vpop.f32.mrb[35].mxu1  ;;  %v1067_v62 = vmax.f32 %v995_v59, 0.0 }
 0x2a5   : > { %v990_v29 = vadd.f32 %v2972_v8, %v989_v47  ;;  %v1065_v0 = vmax.f32 %v987_v60, 0.0 }
 0x2a6   : > { %v1068_v63 = vmax.f32 %v998_v61, 0.0 }
 0x2a7   : > { %v1066_v1 = vmax.f32 %v990_v29, 0.0 }
 0x2a8   : > { %v1090_v2 = vpack.c.bf16 %v1068_v63, %v1067_v62 }
 0x2a9   : > { %v1089_v3 = vpack.c.bf16 %v1066_v1, %v1065_v0 }
 0x2ab   : > { %2188 = vmatprep.mubr.bf16.mxu1 %v1089_v3 }
 0x2ac   : > { %2189 = vmatmul.mubr.bf16.gmra.mrb[64].mxu1 %v1090_v2 }
 0x2b1   : > { %v2146_v4 = vpop.f32.mrb[36].mxu1 }
 0x2b2   : > { %v1011_v56 = vadd.f32 %v2146_v4, %v2972_v8  ;;  %v1002_v5 = vpop.f32.mrb[37].mxu1 }
 0x2b3   : > { %v1003_v6 = vadd.f32 %v2972_v8, %v1002_v5  ;;  %v2147_v7 = vpop.f32.mrb[38].mxu1 }
 0x2b4   : > { %v1014_v9 = vadd.f32 %v2147_v7, %v2972_v8  ;;  %v1005_v10 = vpop.f32.mrb[39].mxu1  ;;  %v1071_v12 = vmax.f32 %v1011_v56, 0.0 }
 0x2b5   : > { %v1006_v11 = vadd.f32 %v2972_v8, %v1005_v10  ;;  %v1069_v14 = vmax.f32 %v1003_v6, 0.0 }
 0x2b6   : > { %v1072_v13 = vmax.f32 %v1014_v9, 0.0 }
 0x2b7   : > { %v1070_v15 = vmax.f32 %v1006_v11, 0.0 }
 0x2b8   : > { %v1092_v16 = vpack.c.bf16 %v1072_v13, %v1071_v12 }
 0x2b9   : > { %v1091_v17 = vpack.c.bf16 %v1070_v15, %v1069_v14  ;;  %v2150_v18 = vpop.f32.mrb[40].mxu1 }
 0x2ba   : > { %v1027_v19 = vadd.f32 %v2150_v18, %v2972_v8  ;;  %v1018_v20 = vpop.f32.mrb[41].mxu1 }
 0x2bb   : > { %v1019_v21 = vadd.f32 %v2972_v8, %v1018_v20  ;;  %v2151_v22 = vpop.f32.mrb[42].mxu1  ;;  %2192 = vmatprep.mubr.bf16.mxu1 %v1091_v17 }
 0x2bc   : > { %v1030_v23 = vadd.f32 %v2151_v22, %v2972_v8  ;;  %v1021_v25 = vpop.f32.mrb[43].mxu1  ;;  %2193 = vmatmul.mubr.bf16.gmra.mrb[68].mxu1 %v1092_v16  ;;  %v1075_v27 = vmax.f32 %v1027_v19, 0.0 }
 0x2bd   : > { %v1022_v26 = vadd.f32 %v2972_v8, %v1021_v25  ;;  %v1073_v30 = vmax.f32 %v1019_v21, 0.0 }
 0x2be   : > { %v1076_v28 = vmax.f32 %v1030_v23, 0.0 }
 0x2bf   : > { %v1074_v31 = vmax.f32 %v1022_v26, 0.0 }
 0x2c0   : > { %v1094_v32 = vpack.c.bf16 %v1076_v28, %v1075_v27 }
 0x2c1   : > { %v1093_v34 = vpack.c.bf16 %v1074_v31, %v1073_v30  ;;  %v2154_v35 = vpop.f32.mrb[44].mxu1 }
 0x2c2   : > { %v1043_v36 = vadd.f32 %v2154_v35, %v2972_v8  ;;  %v1034_v37 = vpop.f32.mrb[45].mxu1 }
 0x2c3   : > { %v1035_v38 = vadd.f32 %v2972_v8, %v1034_v37  ;;  %v2155_v39 = vpop.f32.mrb[46].mxu1  ;;  %2196 = vmatprep.mubr.bf16.mxu1 %v1093_v34 }
 0x2c4   : > { %v1046_v40 = vadd.f32 %v2155_v39, %v2972_v8  ;;  %v1037_v41 = vpop.f32.mrb[47].mxu1  ;;  %2197 = vmatmul.mubr.bf16.gmra.mrb[72].mxu1 %v1094_v32  ;;  %v1079_v44 = vmax.f32 %v1043_v36, 0.0 }
 0x2c5   : > { %v1038_v43 = vadd.f32 %v2972_v8, %v1037_v41  ;;  %v1077_v46 = vmax.f32 %v1035_v38, 0.0 }
 0x2c6   : > { %v1080_v45 = vmax.f32 %v1046_v40, 0.0 }
 0x2c7   : > { %v1078_v48 = vmax.f32 %v1038_v43, 0.0 }
 0x2c8   : > { %v1096_v49 = vpack.c.bf16 %v1080_v45, %v1079_v44 }
 0x2c9   : > { %v1095_v50 = vpack.c.bf16 %v1078_v48, %v1077_v46 }
 0x2cb   : > { %2200 = vmatprep.mubr.bf16.mxu1 %v1095_v50 }
 0x2cc   : > { %2201 = vmatmul.mubr.bf16.gmra.mrb[76].mxu1 %v1096_v49 }
 0x33f   : > { %v2174_v52 = vpop.f32.mrb[48].mxu1 }
 0x340   : > { %v1245_v53 = vadd.f32 %v2174_v52, %v3009_v51  ;;  %v1236_v54 = vpop.f32.mrb[49].mxu1 }
 0x341   : > { %v1237_v8 = vadd.f32 %v3009_v51, %v1236_v54  ;;  %v2175_v55 = vpop.f32.mrb[50].mxu1 }
 0x342   : > { %v1248_v57 = vadd.f32 %v2175_v55, %v3009_v51  ;;  %v1239_v59 = vpop.f32.mrb[51].mxu1  ;;  %v1365_v60 = vmax.f32 %v1245_v53, 0.0 }
 0x343   : > { %v1240_v58 = vadd.f32 %v3009_v51, %v1239_v59  ;;  %v1363_v61 = vmax.f32 %v1237_v8, 0.0 }
 0x344   : > { %v1366_v24 = vmax.f32 %v1248_v57, 0.0 }
 0x345   : > { %v1364_v47 = vmax.f32 %v1240_v58, 0.0 }
 0x346   : > { %v1396_v29 = vpack.c.bf16 %v1366_v24, %v1365_v60 }
 0x347   : > { %v1395_v62 = vpack.c.bf16 %v1364_v47, %v1363_v61 }
 0x349   : > { %2220 = vmatprep.mubr.bf16.mxu0 %v1395_v62 }
 0x34a   : > { %2221 = vmatmul.mubr.bf16.vlgmr.msra.gmra.mrb[48].mxu0 %v1396_v29 }
 0x34f   : > { %v2178_v63 = vpop.f32.mrb[52].mxu1 }
 0x350   : > { %v1261_v0 = vadd.f32 %v2178_v63, %v3009_v51  ;;  %v1252_v1 = vpop.f32.mrb[53].mxu1 }
 0x351   : > { %v1253_v2 = vadd.f32 %v3009_v51, %v1252_v1  ;;  %v2179_v3 = vpop.f32.mrb[54].mxu1 }
 0x352   : > { %v1264_v4 = vadd.f32 %v2179_v3, %v3009_v51  ;;  %v1255_v56 = vpop.f32.mrb[55].mxu1  ;;  %v1369_v6 = vmax.f32 %v1261_v0, 0.0 }
 0x353   : > { %v1256_v5 = vadd.f32 %v3009_v51, %v1255_v56  ;;  %v1367_v9 = vmax.f32 %v1253_v2, 0.0 }
 0x354   : > { %v1370_v7 = vmax.f32 %v1264_v4, 0.0 }
 0x355   : > { %v1368_v10 = vmax.f32 %v1256_v5, 0.0 }
 0x356   : > { %v1398_v11 = vpack.c.bf16 %v1370_v7, %v1369_v6 }
 0x357   : > { %v1397_v12 = vpack.c.bf16 %v1368_v10, %v1367_v9 }
 0x359   : > { %2224 = vmatprep.mubr.bf16.mxu0 %v1397_v12 }
 0x35a   : > { %2225 = vmatmul.mubr.bf16.gmra.mrb[52].mxu0 %v1398_v11 }
 0x35f   : > { %v2182_v13 = vpop.f32.mrb[56].mxu1 }
 0x360   : > { %v1277_v14 = vadd.f32 %v2182_v13, %v3009_v51  ;;  %v1268_v15 = vpop.f32.mrb[57].mxu1 }
 0x361   : > { %v1269_v16 = vadd.f32 %v3009_v51, %v1268_v15  ;;  %v2183_v17 = vpop.f32.mrb[58].mxu1 }
 0x362   : > { %v1280_v18 = vadd.f32 %v2183_v17, %v3009_v51  ;;  %v1271_v19 = vpop.f32.mrb[59].mxu1  ;;  %v1373_v21 = vmax.f32 %v1277_v14, 0.0 }
 0x363   : > { %v1272_v20 = vadd.f32 %v3009_v51, %v1271_v19  ;;  %v1371_v23 = vmax.f32 %v1269_v16, 0.0 }
 0x364   : > { %v1374_v22 = vmax.f32 %v1280_v18, 0.0 }
 0x365   : > { %v1372_v25 = vmax.f32 %v1272_v20, 0.0 }
 0x366   : > { %v1400_v26 = vpack.c.bf16 %v1374_v22, %v1373_v21 }
 0x367   : > { %v1399_v27 = vpack.c.bf16 %v1372_v25, %v1371_v23 }
 0x369   : > { %2228 = vmatprep.mubr.bf16.mxu0 %v1399_v27 }
 0x36a   : > { %2229 = vmatmul.mubr.bf16.gmra.mrb[56].mxu0 %v1400_v26 }
 0x36f   : > { %v2186_v28 = vpop.f32.mrb[60].mxu1 }
 0x370   : > { %v1293_v30 = vadd.f32 %v2186_v28, %v3009_v51  ;;  %v1284_v31 = vpop.f32.mrb[61].mxu1 }
 0x371   : > { %v1285_v32 = vadd.f32 %v3009_v51, %v1284_v31  ;;  %v2187_v33 = vpop.f32.mrb[62].mxu1 }
 0x372   : > { %v1296_v34 = vadd.f32 %v2187_v33, %v3009_v51  ;;  %v1287_v35 = vpop.f32.mrb[63].mxu1  ;;  %v1377_v37 = vmax.f32 %v1293_v30, 0.0 }
 0x373   : > { %v1288_v36 = vadd.f32 %v3009_v51, %v1287_v35  ;;  %v1375_v39 = vmax.f32 %v1285_v32, 0.0 }
 0x374   : > { %v1378_v38 = vmax.f32 %v1296_v34, 0.0 }
 0x375   : > { %v1376_v40 = vmax.f32 %v1288_v36, 0.0  ;;  %v3046_v36 = vld [vmem:[%s3172_s6] ss:$0 sm:$0xff] }
 0x376   : > { %v1402_v41 = vpack.c.bf16 %v1378_v38, %v1377_v37 }
 0x377   : > { %v1401_v42 = vpack.c.bf16 %v1376_v40, %v1375_v39 }
 0x379   : > { %2232 = vmatprep.mubr.bf16.mxu0 %v1401_v42 }
 0x37a   : > { %2233 = vmatmul.mubr.bf16.gmra.mrb[60].mxu0 %v1402_v41 }
 0x37f   : > { %v2190_v43 = vpop.f32.mrb[64].mxu1 }
 0x380   : > { %v1309_v44 = vadd.f32 %v2190_v43, %v3009_v51  ;;  %v1300_v45 = vpop.f32.mrb[65].mxu1 }
 0x381   : > { %v1301_v46 = vadd.f32 %v3009_v51, %v1300_v45  ;;  %v2191_v48 = vpop.f32.mrb[66].mxu1 }
 0x382   : > { %v1312_v49 = vadd.f32 %v2191_v48, %v3009_v51  ;;  %v1303_v50 = vpop.f32.mrb[67].mxu1  ;;  %v1381_v53 = vmax.f32 %v1309_v44, 0.0 }
 0x383   : > { %v1304_v52 = vadd.f32 %v3009_v51, %v1303_v50  ;;  %v1379_v8 = vmax.f32 %v1301_v46, 0.0 }
 0x384   : > { %v1382_v54 = vmax.f32 %v1312_v49, 0.0 }
 0x385   : > { %v1380_v55 = vmax.f32 %v1304_v52, 0.0 }
 0x386   : > { %v1404_v57 = vpack.c.bf16 %v1382_v54, %v1381_v53 }
 0x387   : > { %v1403_v59 = vpack.c.bf16 %v1380_v55, %v1379_v8 }
 0x389   : > { %2236 = vmatprep.mubr.bf16.mxu0 %v1403_v59 }
 0x38a   : > { %2237 = vmatmul.mubr.bf16.gmra.mrb[64].mxu0 %v1404_v57 }
 0x38f   : > { %v2194_v58 = vpop.f32.mrb[68].mxu1 }
 0x390   : > { %v1325_v60 = vadd.f32 %v2194_v58, %v3009_v51  ;;  %v1316_v24 = vpop.f32.mrb[69].mxu1 }
 0x391   : > { %v1317_v61 = vadd.f32 %v3009_v51, %v1316_v24  ;;  %v2195_v47 = vpop.f32.mrb[70].mxu1 }
 0x392   : > { %v1328_v29 = vadd.f32 %v2195_v47, %v3009_v51  ;;  %v1319_v62 = vpop.f32.mrb[71].mxu1  ;;  %v1385_v0 = vmax.f32 %v1325_v60, 0.0 }
 0x393   : > { %v1320_v63 = vadd.f32 %v3009_v51, %v1319_v62  ;;  %v1383_v2 = vmax.f32 %v1317_v61, 0.0 }
 0x394   : > { %v1386_v1 = vmax.f32 %v1328_v29, 0.0 }
 0x395   : > { %v1384_v3 = vmax.f32 %v1320_v63, 0.0 }
 0x396   : > { %v1406_v4 = vpack.c.bf16 %v1386_v1, %v1385_v0 }
 0x397   : > { %v1405_v56 = vpack.c.bf16 %v1384_v3, %v1383_v2  ;;  %v2198_v5 = vpop.f32.mrb[72].mxu1 }
 0x398   : > { %v1341_v6 = vadd.f32 %v2198_v5, %v3009_v51  ;;  %v1332_v7 = vpop.f32.mrb[73].mxu1 }
 0x399   : > { %v1333_v9 = vadd.f32 %v3009_v51, %v1332_v7  ;;  %v2199_v10 = vpop.f32.mrb[74].mxu1  ;;  %2240 = vmatprep.mubr.bf16.mxu0 %v1405_v56 }
 0x39a   : > { %v1344_v11 = vadd.f32 %v2199_v10, %v3009_v51  ;;  %v1335_v12 = vpop.f32.mrb[75].mxu1  ;;  %2241 = vmatmul.mubr.bf16.gmra.mrb[68].mxu0 %v1406_v4  ;;  %v1389_v14 = vmax.f32 %v1341_v6, 0.0 }
 0x39b   : > { %v1336_v13 = vadd.f32 %v3009_v51, %v1335_v12  ;;  %v1387_v16 = vmax.f32 %v1333_v9, 0.0 }
 0x39c   : > { %v1390_v15 = vmax.f32 %v1344_v11, 0.0 }
 0x39d   : > { %v1388_v17 = vmax.f32 %v1336_v13, 0.0 }
 0x39e   : > { %v1408_v18 = vpack.c.bf16 %v1390_v15, %v1389_v14 }
 0x39f   : > { %v1407_v19 = vpack.c.bf16 %v1388_v17, %v1387_v16  ;;  %v2202_v20 = vpop.f32.mrb[76].mxu1 }
 0x3a0   : > { %v1357_v21 = vadd.f32 %v2202_v20, %v3009_v51  ;;  %v1348_v22 = vpop.f32.mrb[77].mxu1 }
 0x3a1   : > { %v1349_v23 = vadd.f32 %v3009_v51, %v1348_v22  ;;  %v2203_v25 = vpop.f32.mrb[78].mxu1  ;;  %2244 = vmatprep.mubr.bf16.mxu0 %v1407_v19 }
 0x3a2   : > { %v1360_v26 = vadd.f32 %v2203_v25, %v3009_v51  ;;  %v1351_v27 = vpop.f32.mrb[79].mxu1  ;;  %2245 = vmatmul.mubr.bf16.gmra.mrb[72].mxu0 %v1408_v18  ;;  %v1393_v30 = vmax.f32 %v1357_v21, 0.0 }
 0x3a3   : > { %v1352_v28 = vadd.f32 %v3009_v51, %v1351_v27  ;;  %v1391_v32 = vmax.f32 %v1349_v23, 0.0 }
 0x3a4   : > { %v1394_v31 = vmax.f32 %v1360_v26, 0.0 }
 0x3a5   : > { %v1392_v33 = vmax.f32 %v1352_v28, 0.0 }
 0x3a6   : > { %v1410_v34 = vpack.c.bf16 %v1394_v31, %v1393_v30 }
 0x3a7   : > { %v1409_v35 = vpack.c.bf16 %v1392_v33, %v1391_v32 }
 0x3a9   : > { %2248 = vmatprep.mubr.bf16.mxu0 %v1409_v35 }
 0x3aa   : > { %2249 = vmatmul.mubr.bf16.gmra.mrb[76].mxu0 %v1410_v34 }
 0x41d   : > { %v2222_v37 = vpop.f32.mrb[48].mxu0 }
 0x41e   : > { %v1557_v38 = vadd.f32 %v2222_v37, %v3046_v36  ;;  %v1548_v39 = vpop.f32.mrb[49].mxu0 }
 0x41f   : > { %v1549_v51 = vadd.f32 %v3046_v36, %v1548_v39  ;;  %v2223_v40 = vpop.f32.mrb[50].mxu0 }
 0x420   : > { %v1677_v41 = vmax.f32 %v1557_v38, 0.0  ;;  %v1560_v42 = vadd.f32 %v2223_v40, %v3046_v36  ;;  %v1551_v43 = vpop.f32.mrb[51].mxu0 }
 0x421   : > { %v1675_v44 = vmax.f32 %v1549_v51, 0.0  ;;  %v1552_v45 = vadd.f32 %v3046_v36, %v1551_v43 }
 0x422   : > { %1709 = vst [vmem:[%s3053_s8 + $0x10] sm:$0xff] %v1677_v41  ;;  %v1678_v46 = vmax.f32 %v1560_v42, 0.0 }
 0x423   : > { %1707 = vst [vmem:[%s3053_s8] sm:$0xff] %v1675_v44  ;;  %v1676_v48 = vmax.f32 %v1552_v45, 0.0 }
 0x424   : > { %1710 = vst [vmem:[%s3053_s8 + $0x18] sm:$0xff] %v1678_v46 }
 0x425   : > { %1708 = vst [vmem:[%s3053_s8 + $0x8] sm:$0xff] %v1676_v48 }
 0x42d   : > { %v2226_v49 = vpop.f32.mrb[52].mxu0 }
 0x42e   : > { %v1573_v50 = vadd.f32 %v2226_v49, %v3046_v36  ;;  %v1564_v52 = vpop.f32.mrb[53].mxu0 }
 0x42f   : > { %v1565_v53 = vadd.f32 %v3046_v36, %v1564_v52  ;;  %v2227_v54 = vpop.f32.mrb[54].mxu0 }
 0x430   : > { %v1681_v8 = vmax.f32 %v1573_v50, 0.0  ;;  %v1576_v55 = vadd.f32 %v2227_v54, %v3046_v36  ;;  %v1567_v57 = vpop.f32.mrb[55].mxu0 }
 0x431   : > { %v1679_v59 = vmax.f32 %v1565_v53, 0.0  ;;  %v1568_v58 = vadd.f32 %v3046_v36, %v1567_v57 }
 0x432   : > { %1713 = vst [vmem:[%s3053_s8 + $0x30] sm:$0xff] %v1681_v8  ;;  %v1682_v60 = vmax.f32 %v1576_v55, 0.0 }
 0x433   : > { %1711 = vst [vmem:[%s3053_s8 + $0x20] sm:$0xff] %v1679_v59  ;;  %v1680_v24 = vmax.f32 %v1568_v58, 0.0 }
 0x434   : > { %1714 = vst [vmem:[%s3053_s8 + $0x38] sm:$0xff] %v1682_v60 }
 0x435   : > { %1712 = vst [vmem:[%s3053_s8 + $0x28] sm:$0xff] %v1680_v24 }
 0x43d   : > { %v2230_v61 = vpop.f32.mrb[56].mxu0 }
 0x43e   : > { %v1589_v47 = vadd.f32 %v2230_v61, %v3046_v36  ;;  %v1580_v29 = vpop.f32.mrb[57].mxu0 }
 0x43f   : > { %v1581_v62 = vadd.f32 %v3046_v36, %v1580_v29  ;;  %v2231_v63 = vpop.f32.mrb[58].mxu0 }
 0x440   : > { %v1685_v0 = vmax.f32 %v1589_v47, 0.0  ;;  %v1592_v1 = vadd.f32 %v2231_v63, %v3046_v36  ;;  %v1583_v2 = vpop.f32.mrb[59].mxu0 }
 0x441   : > { %v1683_v3 = vmax.f32 %v1581_v62, 0.0  ;;  %v1584_v4 = vadd.f32 %v3046_v36, %v1583_v2 }
 0x442   : > { %1717 = vst [vmem:[%s3053_s8 + $0x50] sm:$0xff] %v1685_v0  ;;  %v1686_v56 = vmax.f32 %v1592_v1, 0.0 }
 0x443   : > { %1715 = vst [vmem:[%s3053_s8 + $0x40] sm:$0xff] %v1683_v3  ;;  %v1684_v5 = vmax.f32 %v1584_v4, 0.0 }
 0x444   : > { %1718 = vst [vmem:[%s3053_s8 + $0x58] sm:$0xff] %v1686_v56 }
 0x445   : > { %1716 = vst [vmem:[%s3053_s8 + $0x48] sm:$0xff] %v1684_v5 }
 0x44d   : > { %v2234_v6 = vpop.f32.mrb[60].mxu0 }
 0x44e   : > { %v1605_v7 = vadd.f32 %v2234_v6, %v3046_v36  ;;  %v1596_v9 = vpop.f32.mrb[61].mxu0 }
 0x44f   : > { %v1597_v10 = vadd.f32 %v3046_v36, %v1596_v9  ;;  %v2235_v11 = vpop.f32.mrb[62].mxu0 }
 0x450   : > { %v1689_v12 = vmax.f32 %v1605_v7, 0.0  ;;  %v1608_v13 = vadd.f32 %v2235_v11, %v3046_v36  ;;  %v1599_v14 = vpop.f32.mrb[63].mxu0 }
 0x451   : > { %v1687_v15 = vmax.f32 %v1597_v10, 0.0  ;;  %v1600_v16 = vadd.f32 %v3046_v36, %v1599_v14 }
 0x452   : > { %1721 = vst [vmem:[%s3053_s8 + $0x70] sm:$0xff] %v1689_v12  ;;  %v1690_v17 = vmax.f32 %v1608_v13, 0.0 }
 0x453   : > { %1719 = vst [vmem:[%s3053_s8 + $0x60] sm:$0xff] %v1687_v15  ;;  %v1688_v18 = vmax.f32 %v1600_v16, 0.0 }
 0x454   : > { %1722 = vst [vmem:[%s3053_s8 + $0x78] sm:$0xff] %v1690_v17 }
 0x455   : > { %1720 = vst [vmem:[%s3053_s8 + $0x68] sm:$0xff] %v1688_v18 }
 0x45d   : > { %v2238_v19 = vpop.f32.mrb[64].mxu0 }
 0x45e   : > { %v1621_v20 = vadd.f32 %v2238_v19, %v3046_v36  ;;  %v1612_v21 = vpop.f32.mrb[65].mxu0 }
 0x45f   : > { %v1613_v22 = vadd.f32 %v3046_v36, %v1612_v21  ;;  %v2239_v23 = vpop.f32.mrb[66].mxu0 }
 0x460   : > { %v1693_v25 = vmax.f32 %v1621_v20, 0.0  ;;  %v1624_v26 = vadd.f32 %v2239_v23, %v3046_v36  ;;  %v1615_v27 = vpop.f32.mrb[67].mxu0 }
 0x461   : > { %v1691_v28 = vmax.f32 %v1613_v22, 0.0  ;;  %v1616_v30 = vadd.f32 %v3046_v36, %v1615_v27 }
 0x462   : > { %1725 = vst [vmem:[%s3053_s8 + $0x90] sm:$0xff] %v1693_v25  ;;  %v1694_v31 = vmax.f32 %v1624_v26, 0.0 }
 0x463   : > { %1723 = vst [vmem:[%s3053_s8 + $0x80] sm:$0xff] %v1691_v28  ;;  %v1692_v32 = vmax.f32 %v1616_v30, 0.0 }
 0x464   : > { %1726 = vst [vmem:[%s3053_s8 + $0x98] sm:$0xff] %v1694_v31 }
 0x465   : > { %1724 = vst [vmem:[%s3053_s8 + $0x88] sm:$0xff] %v1692_v32 }
 0x46d   : > { %v2242_v33 = vpop.f32.mrb[68].mxu0 }
 0x46e   : > { %v1637_v34 = vadd.f32 %v2242_v33, %v3046_v36  ;;  %v1628_v35 = vpop.f32.mrb[69].mxu0 }
 0x46f   : > { %v1629_v37 = vadd.f32 %v3046_v36, %v1628_v35  ;;  %v2243_v38 = vpop.f32.mrb[70].mxu0 }
 0x470   : > { %v1697_v39 = vmax.f32 %v1637_v34, 0.0  ;;  %v1640_v51 = vadd.f32 %v2243_v38, %v3046_v36  ;;  %v1631_v40 = vpop.f32.mrb[71].mxu0 }
 0x471   : > { %v1695_v41 = vmax.f32 %v1629_v37, 0.0  ;;  %v1632_v42 = vadd.f32 %v3046_v36, %v1631_v40 }
 0x472   : > { %1729 = vst [vmem:[%s3053_s8 + $0xb0] sm:$0xff] %v1697_v39  ;;  %v1698_v43 = vmax.f32 %v1640_v51, 0.0 }
 0x473   : > { %1727 = vst [vmem:[%s3053_s8 + $0xa0] sm:$0xff] %v1695_v41  ;;  %v1696_v44 = vmax.f32 %v1632_v42, 0.0 }
 0x474   : > { %1730 = vst [vmem:[%s3053_s8 + $0xb8] sm:$0xff] %v1698_v43 }
 0x475   : > { %1728 = vst [vmem:[%s3053_s8 + $0xa8] sm:$0xff] %v1696_v44  ;;  %v2246_v45 = vpop.f32.mrb[72].mxu0 }
 0x476   : > { %v1653_v46 = vadd.f32 %v2246_v45, %v3046_v36  ;;  %v1644_v48 = vpop.f32.mrb[73].mxu0 }
 0x477   : > { %v1645_v49 = vadd.f32 %v3046_v36, %v1644_v48  ;;  %v2247_v50 = vpop.f32.mrb[74].mxu0 }
 0x478   : > { %v1701_v52 = vmax.f32 %v1653_v46, 0.0  ;;  %v1656_v53 = vadd.f32 %v2247_v50, %v3046_v36  ;;  %v1647_v54 = vpop.f32.mrb[75].mxu0 }
 0x479   : > { %v1699_v8 = vmax.f32 %v1645_v49, 0.0  ;;  %v1648_v55 = vadd.f32 %v3046_v36, %v1647_v54 }
 0x47a   : > { %1733 = vst [vmem:[%s3053_s8 + $0xd0] sm:$0xff] %v1701_v52  ;;  %v1702_v57 = vmax.f32 %v1656_v53, 0.0 }
 0x47b   : > { %1731 = vst [vmem:[%s3053_s8 + $0xc0] sm:$0xff] %v1699_v8  ;;  %v1700_v59 = vmax.f32 %v1648_v55, 0.0 }
 0x47c   : > { %1734 = vst [vmem:[%s3053_s8 + $0xd8] sm:$0xff] %v1702_v57 }
 0x47d   : > { %1732 = vst [vmem:[%s3053_s8 + $0xc8] sm:$0xff] %v1700_v59  ;;  %v2250_v58 = vpop.f32.mrb[76].mxu0 }
 0x47e   : > { %v1669_v60 = vadd.f32 %v2250_v58, %v3046_v36  ;;  %v1660_v24 = vpop.f32.mrb[77].mxu0 }
 0x47f   : > { %v1661_v61 = vadd.f32 %v3046_v36, %v1660_v24  ;;  %v2251_v47 = vpop.f32.mrb[78].mxu0 }
 0x480   : > { %v1705_v29 = vmax.f32 %v1669_v60, 0.0  ;;  %v1672_v62 = vadd.f32 %v2251_v47, %v3046_v36  ;;  %v1663_v63 = vpop.f32.mrb[79].mxu0 }
 0x481   : > { %v1703_v0 = vmax.f32 %v1661_v61, 0.0  ;;  %v1664_v1 = vadd.f32 %v3046_v36, %v1663_v63 }
 0x482   : > { %1737 = vst [vmem:[%s3053_s8 + $0xf0] sm:$0xff] %v1705_v29  ;;  %v1706_v2 = vmax.f32 %v1672_v62, 0.0 }
 0x483   : > { %1735 = vst [vmem:[%s3053_s8 + $0xe0] sm:$0xff] %v1703_v0  ;;  %v1704_v3 = vmax.f32 %v1664_v1, 0.0 }
 0x484   : > { %1738 = vst [vmem:[%s3053_s8 + $0xf8] sm:$0xff] %v1706_v2 }
 0x485   : > { %1736 = vst [vmem:[%s3053_s8 + $0xe8] sm:$0xff] %v1704_v3 }
 0x486   : > { %2518 = shalt.err (!%p2515_p4)
}
 0x487   : > { %s2519_s14 = scalar_lea.hbm %s3117_s30, 4096  ;;  %s2523_s12 = scalar_lea.hbm %s3173_s7, 8192 }
 0x488   : > { %p2520_p9 = scmp.ne.s32.totalorder %s3117_s30, %s2519_s14  ;;  %p2524_p8 = scmp.lt.u32.totalorder %s3117_s30, %s3173_s7 }
 0x489   : > { %p2525_p13 = scmp.lt.u32.totalorder %s2523_s12, %s2519_s14  ;;  %p2527_p10 = scmp.lt.u32.totalorder %s2519_s14, %s3117_s30 }
 0x48a   : > { %p2521_p0 = pnand %p2520_p9, %p2786_p5 }
 0x48b   : > { %p2526_p6 = por %p2525_p13, %p2524_p8 }
 0x48c   : > { %p2522_p11 = pneg %p2521_p0 }
 0x48d   : > { %p2528_p3 = por %p2527_p10, %p2526_p6 }
 0x48f   : > { %p2529_p7 = pnand %p2528_p3, %p2522_p11 }
 0x491   : > { %2532 = shalt.err (!%p2529_p7)
}
 0x492   : > { %s2590_s13 = smov 128   ;;  %s2591_s20 = smov 8  }
 0x493   : > { %2282 = dma.vmem_to_hbm [thread:$0]  (%p2786_p5), %s3119_s16, 4096, %s3117_s30, %s1740_s28, %s2590_s13, %s2590_s13, %s2591_s20  }
 0x494 PF: > { %s3193_s9 = sld [smem:[#allocation16_spill]]  ;;  %s1768_s23 = sand.u32 1, %s2567_s24  }
 0x495   : > { %p3195_p1 = scmp.ge.s32.totalorder %s2579_s27, 2  ;;  %s1769_s10 = scalar_lea.sflag [#allocation5], %s1768_s23 }
 0x49a   : > { %p3194_p12 = scmp.ne.s32.totalorder %s3193_s9, 0 }
 0x49c   : > { %p2299_p2 = pnand %p3195_p1, %p3194_p12 }
 0x49e   : > { %2562 = dma.done.wait (!%p2299_p2), %s1769_s10, 4096  }
 0x49f   : > { %2564 = vsyncadd (!%p2299_p2), %s1769_s10, 4294963200  ;;  %p22_p4 = scmp.ge.s32.totalorder %s2772_s22, 4   ;;  %s3196_s24 = smov %s2571_s25 }
 0x4a0   : > { %s3197_s25 = smov %s2575_s26  ;;  %s3198_s26 = smov %s2782_s18 }
 0x4a1   : > { %s3199_s27 = smov %s2772_s22  ;;  %24 = sbr.rel (!%p22_p4) target bundleno = 7 (0x7), region = 107 }
 0x4a8   :  { %1774 = vsyncpa [#allocation4], 1 }
 0x4a9   :  { %1776 = vsyncpa [#allocation4 + $0x1], 1 }
 0x4aa   :  { %1777 = vsyncpa [#allocation7], 1 }
 0x4ab   :  { %1778 = vsyncpa [#allocation10], 1 }
 0x4ac   :  { %1779 = vsyncpa [#allocation5], 1 }
 0x4ad   :  { %1781 = vsyncpa [#allocation5 + $0x1], 1 }

// kernel: tpu_custom_call.1
= control target key start
LH: loop header
LB: loop body
LE: loop exit
PB: predicated region body
PF: predicated region fallthrough
CT: control target
= control target key end

     0   :  { %12 = vsyncpa [#allocation4], 0  ;;  %s3166_s0 = inlined_call_operand.hbm [shape: f32[512,256], index: 0, kind: input, shape index: {}]   ;;  %s3167_s1 = inlined_call_operand.hbm [shape: bf16[256,128], index: 1, kind: input, shape index: {}]   ;;  %s3168_s2 = inlined_call_operand.vmem [shape: f32[1,128], index: 2, kind: input, shape index: {}]   ;;  %s3169_s3 = inlined_call_operand.hbm [shape: bf16[2,128,128], index: 3, kind: input, shape index: {}]   ;;  %s3170_s4 = inlined_call_operand.vmem [shape: f32[2,1,128], index: 4, kind: input, shape index: {}]   ;;  %s3171_s5 = inlined_call_operand.hbm [shape: bf16[128,128], index: 5, kind: input, shape index: {}]   ;;  %s3172_s6 = inlined_call_operand.vmem [shape: f32[1,128], index: 6, kind: input, shape index: {}]   ;;  %s3173_s7 = inlined_call_operand.hbm [shape: f32[512,128], index: 7, kind: output, shape index: {}]  }
   0x1   :  { %14 = vsyncpa [#allocation4 + $0x1], 0 }
   0x2   :  { %15 = vsyncpa [#allocation7], 0 }
   0x3   :  { %16 = vsyncpa [#allocation10], 0 }
   0x4   :  { %17 = vsyncpa [#allocation5], 0 }
   0x5   :  { %19 = vsyncpa [#allocation5 + $0x1], 0  ;;  %s2632_s24 = smov 0   ;;  %s2634_s25 = smov 0  }
   0x6   :  { %s2636_s26 = smov 0   ;;  %s2638_s27 = smov 0  }
   0x7 LB: > { %s2653_s28 = sadd.s32 4294967295, %s2579_s27   ;;  %s1855_s29 = sadd.s32 4294967294, %s2579_s27   ;;  %s2579_s27 = sphi %s2638_s27, %s3199_s27   ;;  %s2575_s26 = sphi %s2636_s26, %s3198_s26   ;;  %s2571_s25 = sphi %s2634_s25, %s3197_s25   ;;  %s2567_s24 = sphi %s2632_s24, %s3196_s24  }
   0x8   : > { %p45_p0 = scmp.ne.s32.totalorder %s2571_s25, %s2567_s24  ;;  %p3174_p1 = scmp.eq.s32.totalorder %s2653_s28, 0 }
   0x9   : > { %p201_p3 = scmp.eq.s32.totalorder %s1855_s29, 1  ;;  %p1856_p5 = scmp.ge.s32.totalorder %s2579_s27, 1 }
   0xa   : > { %p2662_p4 = por %p3174_p1, %p45_p0  ;;  %p208_p7 = scmp.lt.s32.totalorder %s2579_s27, 3 }
   0xb   : > { %p2667_p6 = por %p201_p3, %p45_p0  ;;  %s2581_s10 = smov [#allocation6]  }
   0xc   : > { %s3178_s30 = scalar_select %p2662_p4, 1, 0 }
   0xd   : > { %s3179_s8 = scalar_select %p2667_p6, 1, 0 }
   0xe   : > { %p2672_p8 = pnand %p1856_p5, %p208_p7  ;;  %s220_s11 = sshll.u32 %s2581_s10, 4  ;;  %s2676_s11 = int_to_ptr.vmem [resolvable:$true] %s220_s11 }
   0xf   : > { %3180 = sst [smem:[#allocation16_spill]] %s3179_s8  ;;  %s2582_s13 = smov [#allocation8]  }
  0x10   : > { %s3181_s9 = scalar_select %p2672_p8, 1, 0 }
  0x11   : > { %p2284_p9 = pneg %p2672_p8  ;;  %s236_s14 = sshll.u32 %s2582_s13, 4  ;;  %s2687_s14 = int_to_ptr.vmem [resolvable:$true] %s236_s14 }
  0x12   : > { %s2583_s15 = smov [#allocation9]   ;;  %s2391_s19 = scalar_lea.hbm %s3167_s1, 2048 }
  0x13   : > { %p2683_p11 = pnand %p2284_p9, %p3174_p1  ;;  %s2689_s16 = sshll.u32 %s2583_s15, 4  ;;  %s253_s16 = int_to_ptr.vmem [resolvable:$true] %s2689_s16 }
  0x14   : > { %p2392_p12 = scmp.ne.s32.totalorder %s3167_s1, %s2391_s19  ;;  %p2398_p5 = scmp.lt.u32.totalorder %s2391_s19, %s3167_s1 }
  0x15   : > { %p2699_p13 = pneg %p2683_p11 }
  0x17   : > { %p2394_p0 = pnand %p2699_p13, %p2392_p12 }
  0x19   : > { %p2395_p3 = pneg %p2394_p0 }
  0x1b   : > { %p2400_p7 = pnand %p2398_p5, %p2395_p3 }
  0x1d   : > { %2403 = shalt.err (!%p2400_p7)
}
  0x1e   : > { %s2404_s10 = scalar_lea.vmem %s2676_s11, 2048  ;;  %p2412_p2 = scmp.lt.s32.totalorder %s2676_s11, %s2676_s11 }
  0x1f   : > { %p2405_p9 = scmp.ne.s32.totalorder %s2676_s11, %s2404_s10  ;;  %p2413_p6 = scmp.lt.s32.totalorder %s2404_s10, %s2404_s10 }
  0x21   : > { %p2407_p10 = pnand %p2405_p9, %p2699_p13  ;;  %p2414_p12 = por %p2413_p6, %p2412_p2 }
  0x23   : > { %p2408_p1 = pneg %p2407_p10 }
  0x25   : > { %p2415_p0 = pnand %p2414_p12, %p2408_p1 }
  0x27   : > { %2418 = shalt.err (!%p2415_p0)
}
  0x28   : > { %s2584_s13 = smov 64   ;;  %s2585_s15 = smov 4  }
  0x29   : > { %2287 = dma.hbm_to_vmem [thread:$0]  (!%p2683_p11), %s3167_s1, 2048, %s2676_s11, [#allocation7], %s2584_s13, %s2584_s13, %s2585_s15  }
  0x2a   : > { %s2419_s21 = scalar_lea.hbm %s3169_s3, 2048 }
  0x2b   : > { %p2420_p1 = scmp.ne.s32.totalorder %s3169_s3, %s2419_s21  ;;  %p2426_p10 = scmp.lt.u32.totalorder %s2419_s21, %s3169_s3 }
  0x2d   : > { %p2422_p2 = pnand %p2420_p1, %p2699_p13 }
  0x2f   : > { %p2423_p6 = pneg %p2422_p2 }
  0x31   : > { %p2428_p3 = pnand %p2426_p10, %p2423_p6 }
  0x33   : > { %2431 = shalt.err (!%p2428_p3)
}
  0x34   : > { %s2432_s11 = scalar_lea.vmem %s2687_s14, 2048  ;;  %p2440_p12 = scmp.lt.s32.totalorder %s2687_s14, %s2687_s14 }
  0x35   : > { %p2433_p5 = scmp.ne.s32.totalorder %s2687_s14, %s2432_s11  ;;  %p2441_p0 = scmp.lt.s32.totalorder %s2432_s11, %s2432_s11 }
  0x37   : > { %p2435_p7 = pnand %p2433_p5, %p2699_p13  ;;  %p2442_p1 = por %p2441_p0, %p2440_p12 }
  0x39   : > { %p2436_p9 = pneg %p2435_p7 }
  0x3b   : > { %p2443_p2 = pnand %p2442_p1, %p2436_p9 }
  0x3d   : > { %2446 = shalt.err (!%p2443_p2)
}
  0x3e   : > { %2290 = dma.hbm_to_vmem [thread:$0]  (!%p2683_p11), %s3169_s3, 2048, %s2687_s14, [#allocation7], %s2584_s13, %s2584_s13, %s2585_s15  }
  0x3f   : > { %s2447_s20 = scalar_lea.hbm %s3171_s5, 1024 }
  0x40   : > { %p2448_p6 = scmp.ne.s32.totalorder %s3171_s5, %s2447_s20  ;;  %p2454_p5 = scmp.lt.u32.totalorder %s2447_s20, %s3171_s5 }
  0x42   : > { %p2450_p10 = pnand %p2448_p6, %p2699_p13 }
  0x44   : > { %p2451_p3 = pneg %p2450_p10 }
  0x46   : > { %p2456_p7 = pnand %p2454_p5, %p2451_p3 }
  0x48   : > { %2459 = shalt.err (!%p2456_p7)
}
  0x49   : > { %s2460_s11 = scalar_lea.vmem %s253_s16, 1024  ;;  %p2468_p1 = scmp.lt.s32.totalorder %s253_s16, %s253_s16 }
  0x4a   : > { %p2461_p9 = scmp.ne.s32.totalorder %s253_s16, %s2460_s11  ;;  %p2469_p2 = scmp.lt.s32.totalorder %s2460_s11, %s2460_s11 }
  0x4c   : > { %p2463_p12 = pnand %p2461_p9, %p2699_p13  ;;  %p2470_p4 = por %p2469_p2, %p2468_p1 }
  0x4e   : > { %p2464_p0 = pneg %p2463_p12 }
  0x50   : > { %p2471_p8 = pnand %p2470_p4, %p2464_p0 }
  0x52   : > { %2474 = shalt.err (!%p2471_p8)
}
  0x53   : > { %2293 = dma.hbm_to_vmem [thread:$0]  (!%p2683_p11), %s3171_s5, 1024, %s253_s16, [#allocation10], %s2584_s13, %s2584_s13, %s2585_s15  }
  0x54   : > { %s2772_s22 = sadd.s32 1, %s2579_s27   ;;  %s32_s17 = sadd.s32 1, %s2575_s26 }
  0x55   : > { %s29_s12 = ssub.s32 %s2579_s27, %s2772_s22  ;;  %p39_p8 = scmp.ne.s32.totalorder %s2575_s26, %s2571_s25 }
  0x56   : > { %p30_p4 = scmp.eq.s32.totalorder %s29_s12, 0  ;;  %p40_p13 = scmp.eq.s32.totalorder %s2579_s27, 0 }
  0x57   : > { %p2305_p6 = scmp.lt.s32.totalorder %s2579_s27, 2  ;;  %p3184_p3 = scmp.eq.s32.totalorder %s2653_s28, 1 }
  0x58   : > { %s2782_s18 = scalar_select %p30_p4, %s2575_s26, %s32_s17  }
  0x59   : > { %p41_p10 = por %p40_p13, %p39_p8  ;;  %p2786_p5 = por %p3184_p3, %p39_p8 }
  0x5a   : > { %s269_s20 = sand.u32 1, %s2575_s26   ;;  %s1922_s21 = sshll.u32 %s2579_s27, 13 }
  0x5b   : > { %s1861_s16 = sshll.u32 %s269_s20, 9  ;;  %s2795_s23 = scalar_lea.hbm %s3166_s0, %s1922_s21 }
  0x5c   : > { %s273_s29 = scalar_lea.vmem [#allocation3], %s1861_s16  ;;  %p2797_p11 = pnand %p2305_p6, %p41_p10 }
  0x5d   : > { %s281_s10 = sshll.u32 %s273_s29, 4  ;;  %s2803_s14 = scalar_lea.sflag [#allocation4], %s269_s20  ;;  %s2801_s10 = int_to_ptr.vmem [resolvable:$true] %s281_s10 }
  0x5e   : > { %s2475_s8 = scalar_lea.hbm %s2795_s23, 8192  ;;  %p2477_p9 = pneg %p2797_p11 }
  0x5f   : > { %p2476_p7 = scmp.ne.s32.totalorder %s2795_s23, %s2475_s8  ;;  %s2480_s21 = scalar_lea.hbm %s3166_s0, 16384 }
  0x60   : > { %p2481_p1 = scmp.lt.u32.totalorder %s2795_s23, %s3166_s0  ;;  %p2482_p2 = scmp.lt.u32.totalorder %s2480_s21, %s2475_s8 }
  0x61   : > { %p2478_p12 = pnand %p2477_p9, %p2476_p7  ;;  %p2484_p8 = scmp.lt.u32.totalorder %s2475_s8, %s2795_s23 }
  0x62   : > { %p2483_p4 = por %p2482_p2, %p2481_p1 }
  0x63   : > { %p2479_p0 = pneg %p2478_p12 }
  0x64   : > { %p2485_p13 = por %p2484_p8, %p2483_p4 }
  0x66   : > { %p2486_p6 = pnand %p2485_p13, %p2479_p0 }
  0x68   : > { %2489 = shalt.err (!%p2486_p6)
}
  0x69   : > { %s2490_s20 = scalar_lea.vmem %s2801_s10, 8192  ;;  %s2586_s15 = smov [#allocation3]  }
  0x6a   : > { %p2491_p10 = scmp.ne.s32.totalorder %s2801_s10, %s2490_s20  ;;  %s2495_s29 = sshll.u32 %s2586_s15, 4  ;;  %s2496_s29 = int_to_ptr.vmem [resolvable:$false] %s2495_s29 }
  0x6b   : > { %s2497_s12 = scalar_lea.vmem %s2496_s29, 16384  ;;  %p2498_p12 = scmp.lt.s32.totalorder %s2801_s10, %s2496_s29 }
  0x6c   : > { %p2493_p3 = pnand %p2491_p10, %p2477_p9  ;;  %p2499_p1 = scmp.lt.s32.totalorder %s2497_s12, %s2490_s20 }
  0x6e   : > { %p2494_p7 = pneg %p2493_p3  ;;  %p2500_p2 = por %p2499_p1, %p2498_p12 }
  0x70   : > { %p2501_p4 = pnand %p2500_p2, %p2494_p7 }
  0x72   : > { %2504 = shalt.err (!%p2501_p4)
}
  0x73   : > { %s2587_s8 = smov 256   ;;  %s2588_s17 = smov 16  }
  0x74   : > { %2297 = dma.hbm_to_vmem [thread:$0]  (!%p2797_p11), %s2795_s23, 8192, %s2801_s10, %s2803_s14, %s2587_s8, %s2587_s8, %s2588_s17  }
  0x75   : > { %p3187_p9 = scmp.ne.s32.totalorder %s3181_s9, 0 }
  0x76   : > { %s2834_s21 = sand.u32 (!%p3187_p9), 1, %s2571_s25   ;;  %p3188_p0 = scmp.ne.s32.totalorder (!%p3187_p9), %s3178_s30, 0 }
  0x77   : > { %293 = sbr.rel (%p3187_p9) target bundleno = 1172 (0x494), region = 48  ;;  %s1866_s16 = sshll.u32 (!%p3187_p9), %s2834_s21, 9 }
  0x78   : > { %s296_s13 = scalar_lea.sflag (!%p3187_p9), [#allocation4], %s2834_s21  ;;  %s2838_s20 = scalar_lea.vmem (!%p3187_p9), [#allocation3], %s1866_s16 }
  0x7e   : > { %2550 = dma.done.wait (%p3188_p0), %s296_s13, 8192  }
  0x7f   : > { %2552 = vsyncadd (%p3188_p0), %s296_s13, 4294959104  ;;  %p3189_p11 = scmp.eq.s32.totalorder %s2653_s28, 0 }
  0x81   : > { %2554 = dma.done.wait (%p3189_p11), [#allocation7], 4096   ;;  %p3190_p8 = pmov %p3189_p11 }
  0x83   : > { %2556 = vsyncadd (%p3190_p8), [#allocation7], 4294963200  ;;  %p3191_p13 = pmov %p3190_p8 }
  0x84   : > { %p3192_p6 = pmov %p3190_p8 }
  0x85   : > { %2558 = dma.done.wait (%p3191_p13), [#allocation10], 1024  }
  0x86   : > { %2560 = vsyncadd (%p3192_p6), [#allocation10], 4294966272  ;;  %v2351_v0 = vld [vmem:[#allocation6 + $0x40] sm:$0xff]   ;;  %v2353_v2 = vld [vmem:[#allocation6 + $0x48] sm:$0xff]   ;;  %s1870_s12 = sshll.u32 %s2834_s21, 8  ;;  %s1923_s17 = sshll.u32 %s2653_s28, 12 }
  0x87   : > { %v2352_v1 = vld [vmem:[#allocation6] sm:$0xff]   ;;  %1924 = vmatprep.subr.bf16.mxu0 %v2351_v0  ;;  %2252 = vmatprep.subr.bf16.mxu1 %v2351_v0  ;;  %v2354_v3 = vld [vmem:[#allocation6 + $0x8] sm:$0xff]   ;;  %v2355_v4 = vld [vmem:[#allocation6 + $0x50] sm:$0xff]   ;;  %s3053_s8 = scalar_lea.vmem [#allocation11], %s1870_s12  ;;  %s3117_s30 = scalar_lea.hbm %s3173_s7, %s1923_s17 }
  0x88   : > { %1925 = vmatpush3.bf16.msra.mxu0 %v2352_v1  ;;  %2260 = vmatpush3.bf16.msra.mxu1 %v2352_v1  ;;  %v2356_v5 = vld [vmem:[#allocation6 + $0x10] sm:$0xff]   ;;  %v2357_v6 = vld [vmem:[#allocation6 + $0x58] sm:$0xff]   ;;  %v2359_v8 = vld [vmem:[#allocation6 + $0x60] sm:$0xff]   ;;  %s1753_s16 = sshll.u32 %s3053_s8, 4  ;;  %s1740_s28 = scalar_lea.sflag [#allocation5], %s2834_s21  ;;  %s3119_s16 = int_to_ptr.vmem [resolvable:$true] %s1753_s16 }
  0x89   : > { %1926 = vmatprep.subr.bf16.mxu0 %v2353_v2  ;;  %2253 = vmatprep.subr.bf16.mxu1 %v2353_v2  ;;  %v2358_v7 = vld [vmem:[#allocation6 + $0x18] sm:$0xff]   ;;  %v2360_v9 = vld [vmem:[#allocation6 + $0x20] sm:$0xff]   ;;  %v2361_v10 = vld [vmem:[#allocation6 + $0x68] sm:$0xff]   ;;  %s2505_s9 = scalar_lea.vmem %s3119_s16, 4096  ;;  %s2589_s23 = smov [#allocation11]  }
  0x8a   : > { %v346_v11 = vld [vmem:[%s2838_s20 + $0x8] sm:$0xff]  ;;  %v348_v12 = vld [vmem:[%s2838_s20 + $0x18] sm:$0xff]  ;;  %v2363_v15 = vld [vmem:[#allocation6 + $0x70] sm:$0xff]   ;;  %p2506_p10 = scmp.ne.s32.totalorder %s3119_s16, %s2505_s9  ;;  %s2509_s10 = sshll.u32 %s2589_s23, 4  ;;  %s2510_s10 = int_to_ptr.vmem [resolvable:$false] %s2509_s10 }
  0x8b   : > { %v410_v13 = vpack.c.bf16 %v348_v12, %v346_v11  ;;  %v2362_v14 = vld [vmem:[#allocation6 + $0x28] sm:$0xff]   ;;  %v2364_v16 = vld [vmem:[#allocation6 + $0x30] sm:$0xff]   ;;  %v2365_v17 = vld [vmem:[#allocation6 + $0x78] sm:$0xff]   ;;  %s2511_s11 = scalar_lea.vmem %s2510_s10, 8192  ;;  %p2512_p12 = scmp.lt.s32.totalorder %s3119_s16, %s2510_s10 }
  0x8c   : > { %1927 = vmatpush3.bf16.msra.mxu0 %v2354_v3  ;;  %2261 = vmatpush3.bf16.msra.mxu1 %v2354_v3  ;;  %v2366_v18 = vld [vmem:[#allocation6 + $0x38] sm:$0xff]   ;;  %v345_v19 = vld [vmem:[%s2838_s20] sm:$0xff]  ;;  %v347_v20 = vld [vmem:[%s2838_s20 + $0x10] sm:$0xff]  ;;  %p2507_p3 = pnand %p2506_p10, %p2786_p5  ;;  %p2513_p1 = scmp.lt.s32.totalorder %s2511_s11, %s2505_s9 }
  0x8d   : > { %1928 = vmatprep.subr.bf16.mxu0 %v2355_v4  ;;  %2254 = vmatprep.subr.bf16.mxu1 %v2355_v4  ;;  %v350_v21 = vld [vmem:[%s2838_s20 + $0x28] sm:$0xff]  ;;  %v352_v22 = vld [vmem:[%s2838_s20 + $0x38] sm:$0xff]  ;;  %v409_v25 = vpack.c.bf16 %v347_v20, %v345_v19  ;;  %v393_v27 = vld [vmem:[%s2838_s20 + $0x180] sm:$0xff] }
  0x8e   : > { %608 = vmatprep.mubr.bf16.mxu0 %v410_v13  ;;  %v394_v23 = vld [vmem:[%s2838_s20 + $0x188] sm:$0xff]  ;;  %v396_v24 = vld [vmem:[%s2838_s20 + $0x198] sm:$0xff]  ;;  %v395_v28 = vld [vmem:[%s2838_s20 + $0x190] sm:$0xff]  ;;  %v412_v29 = vpack.c.bf16 %v352_v22, %v350_v21  ;;  %p2508_p7 = pneg %p2507_p3  ;;  %p2514_p2 = por %p2513_p1, %p2512_p12 }
  0x8f   : > { %v434_v26 = vpack.c.bf16 %v396_v24, %v394_v23  ;;  %v433_v30 = vpack.c.bf16 %v395_v28, %v393_v27  ;;  %v398_v31 = vld [vmem:[%s2838_s20 + $0x1a8] sm:$0xff]  ;;  %v400_v32 = vld [vmem:[%s2838_s20 + $0x1b8] sm:$0xff]  ;;  %v349_v34 = vld [vmem:[%s2838_s20 + $0x20] sm:$0xff] }
  0x90   : > { %1929 = vmatpush3.bf16.msra.mxu0 %v2356_v5  ;;  %2262 = vmatpush3.bf16.msra.mxu1 %v2356_v5  ;;  %v436_v33 = vpack.c.bf16 %v400_v32, %v398_v31  ;;  %v351_v35 = vld [vmem:[%s2838_s20 + $0x30] sm:$0xff]  ;;  %v354_v36 = vld [vmem:[%s2838_s20 + $0x48] sm:$0xff]  ;;  %v356_v37 = vld [vmem:[%s2838_s20 + $0x58] sm:$0xff]  ;;  %p2515_p4 = pnand %p2514_p2, %p2508_p7 }
  0x91   : > { %1930 = vmatprep.subr.bf16.mxu0 %v2357_v6  ;;  %2255 = vmatprep.subr.bf16.mxu1 %v2357_v6  ;;  %v397_v38 = vld [vmem:[%s2838_s20 + $0x1a0] sm:$0xff]  ;;  %v399_v39 = vld [vmem:[%s2838_s20 + $0x1b0] sm:$0xff]  ;;  %v402_v40 = vld [vmem:[%s2838_s20 + $0x1c8] sm:$0xff]  ;;  %v411_v42 = vpack.c.bf16 %v351_v35, %v349_v34  ;;  %v414_v44 = vpack.c.bf16 %v356_v37, %v354_v36 }
  0x92   : > { %704 = vmatprep.mubr.bf16.mxu1 %v434_v26  ;;  %v404_v41 = vld [vmem:[%s2838_s20 + $0x1d8] sm:$0xff]  ;;  %v2367_v43 = vld [vmem:[#allocation8] sm:$0xff]   ;;  %v435_v45 = vpack.c.bf16 %v399_v39, %v397_v38  ;;  %v2368_v46 = vld [vmem:[#allocation8 + $0x8] sm:$0xff]  }
  0x93   : > { %v438_v47 = vpack.c.bf16 %v404_v41, %v402_v40  ;;  %v2369_v48 = vld [vmem:[#allocation8 + $0x10] sm:$0xff]   ;;  %v353_v49 = vld [vmem:[%s2838_s20 + $0x40] sm:$0xff]  ;;  %v358_v51 = vld [vmem:[%s2838_s20 + $0x68] sm:$0xff] }
  0x94   : > { %1931 = vmatpush3.bf16.msra.mxu0 %v2358_v7  ;;  %2263 = vmatpush3.bf16.msra.mxu1 %v2358_v7  ;;  %v355_v50 = vld [vmem:[%s2838_s20 + $0x50] sm:$0xff]  ;;  %v360_v52 = vld [vmem:[%s2838_s20 + $0x78] sm:$0xff]  ;;  %v401_v53 = vld [vmem:[%s2838_s20 + $0x1c0] sm:$0xff] }
  0x95   : > { %1932 = vmatprep.subr.bf16.mxu0 %v2359_v8  ;;  %2256 = vmatprep.subr.bf16.mxu1 %v2359_v8  ;;  %v403_v54 = vld [vmem:[%s2838_s20 + $0x1d0] sm:$0xff]  ;;  %v406_v55 = vld [vmem:[%s2838_s20 + $0x1e8] sm:$0xff]  ;;  %v408_v56 = vld [vmem:[%s2838_s20 + $0x1f8] sm:$0xff]  ;;  %v413_v57 = vpack.c.bf16 %v355_v50, %v353_v49  ;;  %v416_v58 = vpack.c.bf16 %v360_v52, %v358_v51 }
  0x96   : > { %v437_v59 = vpack.c.bf16 %v403_v54, %v401_v53  ;;  %v440_v60 = vpack.c.bf16 %v408_v56, %v406_v55  ;;  %v357_v61 = vld [vmem:[%s2838_s20 + $0x60] sm:$0xff]  ;;  %v359_v62 = vld [vmem:[%s2838_s20 + $0x70] sm:$0xff]  ;;  %v362_v63 = vld [vmem:[%s2838_s20 + $0x88] sm:$0xff] }
  0x97   : > { %v364_v0 = vld [vmem:[%s2838_s20 + $0x98] sm:$0xff]  ;;  %v405_v1 = vld [vmem:[%s2838_s20 + $0x1e0] sm:$0xff]  ;;  %v407_v2 = vld [vmem:[%s2838_s20 + $0x1f0] sm:$0xff]  ;;  %v415_v3 = vpack.c.bf16 %v359_v62, %v357_v61 }
  0x98   : > { %1933 = vmatpush3.bf16.msra.mxu0 %v2360_v9  ;;  %2264 = vmatpush3.bf16.msra.mxu1 %v2360_v9  ;;  %v418_v4 = vpack.c.bf16 %v364_v0, %v362_v63  ;;  %v439_v5 = vpack.c.bf16 %v407_v2, %v405_v1  ;;  %v361_v6 = vld [vmem:[%s2838_s20 + $0x80] sm:$0xff]  ;;  %v363_v7 = vld [vmem:[%s2838_s20 + $0x90] sm:$0xff]  ;;  %v366_v8 = vld [vmem:[%s2838_s20 + $0xa8] sm:$0xff] }
  0x99   : > { %1934 = vmatprep.subr.bf16.mxu0 %v2361_v10  ;;  %2257 = vmatprep.subr.bf16.mxu1 %v2361_v10  ;;  %v368_v9 = vld [vmem:[%s2838_s20 + $0xb8] sm:$0xff]  ;;  %v417_v10 = vpack.c.bf16 %v363_v7, %v361_v6  ;;  %v365_v12 = vld [vmem:[%s2838_s20 + $0xa0] sm:$0xff]  ;;  %v367_v13 = vld [vmem:[%s2838_s20 + $0xb0] sm:$0xff] }
  0x9a   : > { %v420_v11 = vpack.c.bf16 %v368_v9, %v366_v8  ;;  %v371_v19 = vld [vmem:[%s2838_s20 + $0xd0] sm:$0xff]  ;;  %v374_v20 = vld [vmem:[%s2838_s20 + $0xe8] sm:$0xff]  ;;  %v376_v21 = vld [vmem:[%s2838_s20 + $0xf8] sm:$0xff] }
  0x9b   : > { %v424_v23 = vpack.c.bf16 %v376_v21, %v374_v20  ;;  %v373_v24 = vld [vmem:[%s2838_s20 + $0xe0] sm:$0xff]  ;;  %v378_v26 = vld [vmem:[%s2838_s20 + $0x108] sm:$0xff]  ;;  %v380_v27 = vld [vmem:[%s2838_s20 + $0x118] sm:$0xff] }
  0x9c   : > { %1935 = vmatpush3.bf16.msra.mxu0 %v2362_v14  ;;  %2265 = vmatpush3.bf16.msra.mxu1 %v2362_v14  ;;  %v370_v14 = vld [vmem:[%s2838_s20 + $0xc8] sm:$0xff]  ;;  %v379_v31 = vld [vmem:[%s2838_s20 + $0x110] sm:$0xff]  ;;  %v381_v36 = vld [vmem:[%s2838_s20 + $0x120] sm:$0xff] }
  0x9d   : > { %1936 = vmatprep.subr.bf16.mxu0 %v2363_v15  ;;  %2258 = vmatprep.subr.bf16.mxu1 %v2363_v15  ;;  %v372_v15 = vld [vmem:[%s2838_s20 + $0xd8] sm:$0xff]  ;;  %v382_v32 = vld [vmem:[%s2838_s20 + $0x128] sm:$0xff]  ;;  %v383_v37 = vld [vmem:[%s2838_s20 + $0x130] sm:$0xff] }
  0x9e   : > { %v386_v38 = vld [vmem:[%s2838_s20 + $0x148] sm:$0xff]  ;;  %v388_v39 = vld [vmem:[%s2838_s20 + $0x158] sm:$0xff]  ;;  %v427_v40 = vpack.c.bf16 %v383_v37, %v381_v36  ;;  %v391_v49 = vld [vmem:[%s2838_s20 + $0x170] sm:$0xff] }
  0x9f   : > { %v430_v41 = vpack.c.bf16 %v388_v39, %v386_v38  ;;  %v2370_v50 = vld [vmem:[#allocation8 + $0x18] sm:$0xff]   ;;  %v2371_v52 = vld [vmem:[#allocation8 + $0x20] sm:$0xff]   ;;  %v2372_v53 = vld [vmem:[#allocation8 + $0x28] sm:$0xff]  }
  0xa0   : > { %1937 = vmatpush3.bf16.msra.mxu0 %v2364_v16  ;;  %2266 = vmatpush3.bf16.msra.mxu1 %v2364_v16  ;;  %v419_v16 = vpack.c.bf16 %v367_v13, %v365_v12  ;;  %v2373_v54 = vld [vmem:[#allocation8 + $0x30] sm:$0xff]   ;;  %v2374_v55 = vld [vmem:[#allocation8 + $0x38] sm:$0xff]   ;;  %v2916_v56 = vld [vmem:[#allocation8 + $0x40] sm:$0xff]  }
  0xa1   : > { %1938 = vmatprep.subr.bf16.mxu0 %v2365_v17  ;;  %2259 = vmatprep.subr.bf16.mxu1 %v2365_v17  ;;  %v422_v17 = vpack.c.bf16 %v372_v15, %v370_v14 }
  0xa4   : > { %1939 = vmatpush3.bf16.msra.mxu0 %v2366_v18  ;;  %2267 = vmatpush3.bf16.msra.mxu1 %v2366_v18  ;;  %v369_v18 = vld [vmem:[%s2838_s20 + $0xc0] sm:$0xff] }
  0xa5   : > { %2108 = vmatprep.subr.bf16.mxu1 %v2367_v43  ;;  %v421_v22 = vpack.c.bf16 %v371_v19, %v369_v18 }
  0xa7   : > { %609 = vmatmul.mubr.bf16.vlgmr.msra.gmra.mrb[0].mxu0 %v409_v25  ;;  %705 = vmatmul.mubr.bf16.vlgmr.msra.gmra.mrb[0].mxu1 %v433_v30  ;;  %v375_v25 = vld [vmem:[%s2838_s20 + $0xf0] sm:$0xff]  ;;  %v377_v30 = vld [vmem:[%s2838_s20 + $0x100] sm:$0xff] }
  0xa8   : > { %616 = vmatprep.mubr.bf16.mxu0 %v412_v29  ;;  %712 = vmatprep.mubr.bf16.mxu1 %v436_v33  ;;  %v423_v28 = vpack.c.bf16 %v375_v25, %v373_v24  ;;  %v426_v29 = vpack.c.bf16 %v380_v27, %v378_v26  ;;  %v384_v33 = vld [vmem:[%s2838_s20 + $0x138] sm:$0xff]  ;;  %v425_v34 = vpack.c.bf16 %v379_v31, %v377_v30 }
  0xa9   : > { %2109 = vmatpush3.bf16.msra.mxu1 %v2367_v43  ;;  %v428_v35 = vpack.c.bf16 %v384_v33, %v382_v32  ;;  %v387_v43 = vld [vmem:[%s2838_s20 + $0x150] sm:$0xff] }
  0xaa   : > { %2110 = vmatprep.subr.bf16.mxu1 %v2368_v46 }
  0xad   : > { %2111 = vmatpush3.bf16.msra.mxu1 %v2368_v46 }
  0xae   : > { %2112 = vmatprep.subr.bf16.mxu1 %v2369_v48 }
  0xaf   : > { %617 = vmatmul.mubr.bf16.gmra.mrb[4].mxu0 %v411_v42  ;;  %713 = vmatmul.mubr.bf16.gmra.mrb[4].mxu1 %v435_v45  ;;  %v385_v42 = vld [vmem:[%s2838_s20 + $0x140] sm:$0xff]  ;;  %v392_v45 = vld [vmem:[%s2838_s20 + $0x178] sm:$0xff] }
  0xb0   : > { %624 = vmatprep.mubr.bf16.mxu0 %v414_v44  ;;  %720 = vmatprep.mubr.bf16.mxu1 %v438_v47  ;;  %v390_v44 = vld [vmem:[%s2838_s20 + $0x168] sm:$0xff]  ;;  %v429_v46 = vpack.c.bf16 %v387_v43, %v385_v42 }
  0xb1   : > { %2113 = vmatpush3.bf16.msra.mxu1 %v2369_v48  ;;  %v432_v47 = vpack.c.bf16 %v392_v45, %v390_v44  ;;  %v389_v48 = vld [vmem:[%s2838_s20 + $0x160] sm:$0xff]  ;;  %v2376_v43 = vld [vmem:[#allocation8 + $0x48] sm:$0xff]  }
  0xb2   : > { %2114 = vmatprep.subr.bf16.mxu1 %v2370_v50  ;;  %v431_v51 = vpack.c.bf16 %v391_v49, %v389_v48 }
  0xb5   : > { %2115 = vmatpush3.bf16.msra.mxu1 %v2370_v50 }
  0xb6   : > { %2116 = vmatprep.subr.bf16.mxu1 %v2371_v52 }
  0xb7   : > { %625 = vmatmul.mubr.bf16.gmra.mrb[8].mxu0 %v413_v57  ;;  %721 = vmatmul.mubr.bf16.gmra.mrb[8].mxu1 %v437_v59 }
  0xb8   : > { %632 = vmatprep.mubr.bf16.mxu0 %v416_v58  ;;  %728 = vmatprep.mubr.bf16.mxu1 %v440_v60  ;;  %v2922_v58 = vld [vmem:[%s3168_s2] ss:$0 sm:$0xff] }
  0xb9   : > { %2117 = vmatpush3.bf16.msra.mxu1 %v2371_v52 }
  0xba   : > { %2118 = vmatprep.subr.bf16.mxu1 %v2372_v53 }
  0xbd   : > { %2119 = vmatpush3.bf16.msra.mxu1 %v2372_v53 }
  0xbe   : > { %2120 = vmatprep.subr.bf16.mxu1 %v2373_v54 }
  0xbf   : > { %633 = vmatmul.mubr.bf16.gmra.mrb[12].mxu0 %v415_v3  ;;  %729 = vmatmul.mubr.bf16.gmra.mrb[12].mxu1 %v439_v5 }
  0xc0   : > { %640 = vmatprep.mubr.bf16.mxu0 %v418_v4 }
  0xc1   : > { %2121 = vmatpush3.bf16.msra.mxu1 %v2373_v54  ;;  %v2377_v54 = vld [vmem:[#allocation8 + $0x50] sm:$0xff]  }
  0xc2   : > { %2122 = vmatprep.subr.bf16.mxu1 %v2374_v55 }
  0xc5   : > { %2123 = vmatpush3.bf16.msra.mxu1 %v2374_v55 }
  0xc6   : > { %2156 = vmatprep.subr.bf16.mxu1 %v2916_v56 }
  0xc7   : > { %641 = vmatmul.mubr.bf16.gmra.mrb[16].mxu0 %v417_v10 }
  0xc8   : > { %648 = vmatprep.mubr.bf16.mxu0 %v420_v11 }
  0xcf   : > { %649 = vmatmul.mubr.bf16.gmra.mrb[20].mxu0 %v419_v16 }
  0xd0   : > { %656 = vmatprep.mubr.bf16.mxu0 %v422_v17 }
  0xd7   : > { %657 = vmatmul.mubr.bf16.gmra.mrb[24].mxu0 %v421_v22 }
  0xd8   : > { %664 = vmatprep.mubr.bf16.mxu0 %v424_v23 }
  0xdf   : > { %665 = vmatmul.mubr.bf16.gmra.mrb[28].mxu0 %v423_v28 }
  0xe0   : > { %672 = vmatprep.mubr.bf16.mxu0 %v426_v29 }
  0xe7   : > { %673 = vmatmul.mubr.bf16.gmra.mrb[32].mxu0 %v425_v34 }
  0xe8   : > { %680 = vmatprep.mubr.bf16.mxu0 %v428_v35 }
  0xef   : > { %681 = vmatmul.mubr.bf16.gmra.mrb[36].mxu0 %v427_v40 }
  0xf0   : > { %688 = vmatprep.mubr.bf16.mxu0 %v430_v41 }
  0xf7   : > { %689 = vmatmul.mubr.bf16.gmra.mrb[40].mxu0 %v429_v46 }
  0xf8   : > { %696 = vmatprep.mubr.bf16.mxu0 %v432_v47 }
  0xff   : > { %697 = vmatmul.mubr.bf16.gmra.mrb[44].mxu0 %v431_v51 }
 0x17a   : > { %v1940_v57 = vpop.f32.mrb[0].mxu0  ;;  %v2012_v60 = vpop.f32.mrb[0].mxu1 }
 0x17b   : > { %v1941_v59 = vpop.f32.mrb[1].mxu0  ;;  %v2013_v63 = vpop.f32.mrb[1].mxu1 }
 0x17c   : > { %v1942_v61 = vadd.f32 %v1941_v59, %v1940_v57  ;;  %v1943_v62 = vpop.f32.mrb[2].mxu0  ;;  %v2014_v1 = vadd.f32 %v2013_v63, %v2012_v60  ;;  %v2015_v2 = vpop.f32.mrb[2].mxu1 }
 0x17d   : > { %v1944_v0 = vpop.f32.mrb[3].mxu0  ;;  %v2016_v5 = vpop.f32.mrb[3].mxu1 }
 0x17e   : > { %v611_v3 = vadd.f32 %v1942_v61, %v2922_v58  ;;  %v1945_v4 = vadd.f32 %v1944_v0, %v1943_v62  ;;  %v707_v6 = vadd.f32 %v2014_v1, %v2922_v58  ;;  %v2017_v7 = vadd.f32 %v2016_v5, %v2015_v2 }
 0x180   : > { %v614_v8 = vadd.f32 %v1945_v4, %v2922_v58  ;;  %v761_v9 = vmax.f32 %v707_v6, 0.0  ;;  %v710_v10 = vadd.f32 %v2017_v7, %v2922_v58  ;;  %v737_v11 = vmax.f32 %v611_v3, 0.0 }
 0x182   : > { %v738_v12 = vmax.f32 %v614_v8, 0.0  ;;  %v1946_v13 = vpop.f32.mrb[4].mxu0  ;;  %v762_v15 = vmax.f32 %v710_v10, 0.0  ;;  %v2018_v16 = vpop.f32.mrb[4].mxu1 }
 0x183   : > { %v1947_v14 = vpop.f32.mrb[5].mxu0  ;;  %v2019_v20 = vpop.f32.mrb[5].mxu1 }
 0x184   : > { %v1948_v17 = vadd.f32 %v1947_v14, %v1946_v13  ;;  %v1949_v18 = vpop.f32.mrb[6].mxu0  ;;  %v769_v19 = vpack.c.bf16 %v738_v12, %v737_v11  ;;  %v2020_v22 = vadd.f32 %v2019_v20, %v2018_v16  ;;  %v2021_v23 = vpop.f32.mrb[6].mxu1  ;;  %v2928_v24 = vpack.c.bf16 %v762_v15, %v761_v9  ;;  %v2379_v15 = vld [vmem:[#allocation8 + $0x60] sm:$0xff]  }
 0x185   : > { %v1950_v21 = vpop.f32.mrb[7].mxu0  ;;  %v2022_v27 = vpop.f32.mrb[7].mxu1 }
 0x186   : > { %v619_v25 = vadd.f32 %v1948_v17, %v2922_v58  ;;  %v1951_v26 = vadd.f32 %v1950_v21, %v1949_v18  ;;  %2124 = vmatprep.mubr.bf16.mxu1 %v769_v19  ;;  %v715_v28 = vadd.f32 %v2020_v22, %v2922_v58  ;;  %v2023_v29 = vadd.f32 %v2022_v27, %v2021_v23  ;;  %v2380_v27 = vld [vmem:[#allocation8 + $0x68] sm:$0xff]  }
 0x188   : > { %v622_v30 = vadd.f32 %v1951_v26, %v2922_v58  ;;  %v763_v31 = vmax.f32 %v715_v28, 0.0  ;;  %v718_v32 = vadd.f32 %v2023_v29, %v2922_v58  ;;  %v739_v33 = vmax.f32 %v619_v25, 0.0 }
 0x18a   : > { %v740_v34 = vmax.f32 %v622_v30, 0.0  ;;  %v1952_v35 = vpop.f32.mrb[8].mxu0  ;;  %v764_v37 = vmax.f32 %v718_v32, 0.0  ;;  %v2024_v38 = vpop.f32.mrb[8].mxu1 }
 0x18b   : > { %v1953_v36 = vpop.f32.mrb[9].mxu0  ;;  %v2025_v42 = vpop.f32.mrb[9].mxu1 }
 0x18c   : > { %v770_v39 = vpack.c.bf16 %v740_v34, %v739_v33  ;;  %v1954_v40 = vadd.f32 %v1953_v36, %v1952_v35  ;;  %v1955_v41 = vpop.f32.mrb[10].mxu0  ;;  %v2026_v45 = vadd.f32 %v2025_v42, %v2024_v38  ;;  %v2027_v46 = vpop.f32.mrb[10].mxu1  ;;  %v2934_v47 = vpack.c.bf16 %v764_v37, %v763_v31 }
 0x18d   : > { %v1956_v44 = vpop.f32.mrb[11].mxu0  ;;  %v2028_v50 = vpop.f32.mrb[11].mxu1 }
 0x18e   : > { %v627_v48 = vadd.f32 %v1954_v40, %v2922_v58  ;;  %v1957_v49 = vadd.f32 %v1956_v44, %v1955_v41  ;;  %2125 = vmatmul.mubr.bf16.vlgmr.msra.gmra.mrb[16].mxu1 %v770_v39  ;;  %v723_v51 = vadd.f32 %v2026_v45, %v2922_v58  ;;  %v2029_v52 = vadd.f32 %v2028_v50, %v2027_v46 }
 0x18f   : > { %2157 = vmatpush3.bf16.msra.mxu1 %v2916_v56  ;;  %v2378_v56 = vld [vmem:[#allocation8 + $0x58] sm:$0xff]  }
 0x190   : > { %v630_v53 = vadd.f32 %v1957_v49, %v2922_v58  ;;  %2158 = vmatprep.subr.bf16.mxu1 %v2376_v43  ;;  %v765_v55 = vmax.f32 %v723_v51, 0.0  ;;  %v726_v57 = vadd.f32 %v2029_v52, %v2922_v58  ;;  %v741_v59 = vmax.f32 %v627_v48, 0.0 }
 0x192   : > { %v742_v60 = vmax.f32 %v630_v53, 0.0  ;;  %v1958_v61 = vpop.f32.mrb[12].mxu0  ;;  %v766_v63 = vmax.f32 %v726_v57, 0.0  ;;  %v2030_v0 = vpop.f32.mrb[12].mxu1 }
 0x193   : > { %v1959_v62 = vpop.f32.mrb[13].mxu0  ;;  %2159 = vmatpush3.bf16.msra.mxu1 %v2376_v43  ;;  %v2031_v4 = vpop.f32.mrb[13].mxu1 }
 0x194   : > { %v1960_v1 = vadd.f32 %v1959_v62, %v1958_v61  ;;  %v1961_v2 = vpop.f32.mrb[14].mxu0  ;;  %v771_v3 = vpack.c.bf16 %v742_v60, %v741_v59  ;;  %2160 = vmatprep.subr.bf16.mxu1 %v2377_v54  ;;  %v2032_v6 = vadd.f32 %v2031_v4, %v2030_v0  ;;  %v2033_v7 = vpop.f32.mrb[14].mxu1  ;;  %v2941_v8 = vpack.c.bf16 %v766_v63, %v765_v55 }
 0x195   : > { %v1962_v5 = vpop.f32.mrb[15].mxu0  ;;  %v2034_v11 = vpop.f32.mrb[15].mxu1 }
 0x196   : > { %v635_v9 = vadd.f32 %v1960_v1, %v2922_v58  ;;  %v1963_v10 = vadd.f32 %v1962_v5, %v1961_v2  ;;  %2128 = vmatprep.mubr.bf16.mxu1 %v771_v3  ;;  %v731_v12 = vadd.f32 %v2032_v6, %v2922_v58  ;;  %v2035_v13 = vadd.f32 %v2034_v11, %v2033_v7 }
 0x197   : > { %2161 = vmatpush3.bf16.msra.mxu1 %v2377_v54 }
 0x198   : > { %v638_v14 = vadd.f32 %v1963_v10, %v2922_v58  ;;  %2162 = vmatprep.subr.bf16.mxu1 %v2378_v56  ;;  %v767_v16 = vmax.f32 %v731_v12, 0.0  ;;  %v734_v17 = vadd.f32 %v2035_v13, %v2922_v58  ;;  %v743_v18 = vmax.f32 %v635_v9, 0.0 }
 0x19a   : > { %v744_v19 = vmax.f32 %v638_v14, 0.0  ;;  %v1964_v20 = vpop.f32.mrb[16].mxu0  ;;  %v768_v22 = vmax.f32 %v734_v17, 0.0 }
 0x19b   : > { %v1965_v21 = vpop.f32.mrb[17].mxu0  ;;  %2163 = vmatpush3.bf16.msra.mxu1 %v2378_v56 }
 0x19c   : > { %v1966_v23 = vadd.f32 %v1965_v21, %v1964_v20  ;;  %v1967_v25 = vpop.f32.mrb[18].mxu0  ;;  %v772_v26 = vpack.c.bf16 %v744_v19, %v743_v18  ;;  %2164 = vmatprep.subr.bf16.mxu1 %v2379_v15  ;;  %v2947_v29 = vpack.c.bf16 %v768_v22, %v767_v16 }
 0x19d   : > { %v1968_v28 = vpop.f32.mrb[19].mxu0 }
 0x19e   : > { %v643_v30 = vadd.f32 %v1966_v23, %v2922_v58  ;;  %v1969_v31 = vadd.f32 %v1968_v28, %v1967_v25  ;;  %2129 = vmatmul.mubr.bf16.gmra.mrb[20].mxu1 %v772_v26 }
 0x19f   : > { %2165 = vmatpush3.bf16.msra.mxu1 %v2379_v15 }
 0x1a0   : > { %v646_v32 = vadd.f32 %v1969_v31, %v2922_v58  ;;  %2166 = vmatprep.subr.bf16.mxu1 %v2380_v27  ;;  %v745_v33 = vmax.f32 %v643_v30, 0.0 }
 0x1a2   : > { %v746_v34 = vmax.f32 %v646_v32, 0.0  ;;  %v1970_v35 = vpop.f32.mrb[20].mxu0 }
 0x1a3   : > { %v1971_v36 = vpop.f32.mrb[21].mxu0  ;;  %2167 = vmatpush3.bf16.msra.mxu1 %v2380_v27 }
 0x1a4   : > { %v1972_v37 = vadd.f32 %v1971_v36, %v1970_v35  ;;  %v1973_v38 = vpop.f32.mrb[22].mxu0  ;;  %v773_v39 = vpack.c.bf16 %v746_v34, %v745_v33 }
 0x1a5   : > { %v1974_v40 = vpop.f32.mrb[23].mxu0 }
 0x1a6   : > { %v651_v41 = vadd.f32 %v1972_v37, %v2922_v58  ;;  %v1975_v42 = vadd.f32 %v1974_v40, %v1973_v38  ;;  %2132 = vmatprep.mubr.bf16.mxu1 %v773_v39 }
 0x1a8   : > { %v654_v43 = vadd.f32 %v1975_v42, %v2922_v58  ;;  %v747_v44 = vmax.f32 %v651_v41, 0.0 }
 0x1aa   : > { %v748_v45 = vmax.f32 %v654_v43, 0.0  ;;  %v1976_v46 = vpop.f32.mrb[24].mxu0 }
 0x1ab   : > { %v1977_v48 = vpop.f32.mrb[25].mxu0 }
 0x1ac   : > { %v1978_v49 = vadd.f32 %v1977_v48, %v1976_v46  ;;  %v1979_v50 = vpop.f32.mrb[26].mxu0  ;;  %v774_v51 = vpack.c.bf16 %v748_v45, %v747_v44 }
 0x1ad   : > { %v1980_v52 = vpop.f32.mrb[27].mxu0 }
 0x1ae   : > { %v659_v53 = vadd.f32 %v1978_v49, %v2922_v58  ;;  %v1981_v54 = vadd.f32 %v1980_v52, %v1979_v50  ;;  %2133 = vmatmul.mubr.bf16.gmra.mrb[24].mxu1 %v774_v51 }
 0x1b0   : > { %v662_v55 = vadd.f32 %v1981_v54, %v2922_v58  ;;  %v749_v57 = vmax.f32 %v659_v53, 0.0 }
 0x1b2   : > { %v750_v59 = vmax.f32 %v662_v55, 0.0  ;;  %v1982_v60 = vpop.f32.mrb[28].mxu0  ;;  %v2381_v55 = vld [vmem:[#allocation8 + $0x70] sm:$0xff]  }
 0x1b3   : > { %v1983_v61 = vpop.f32.mrb[29].mxu0  ;;  %2168 = vmatprep.subr.bf16.mxu1 %v2381_v55 }
 0x1b4   : > { %v1984_v62 = vadd.f32 %v1983_v61, %v1982_v60  ;;  %v1985_v63 = vpop.f32.mrb[30].mxu0  ;;  %v775_v0 = vpack.c.bf16 %v750_v59, %v749_v57  ;;  %2169 = vmatpush3.bf16.msra.mxu1 %v2381_v55  ;;  %v2382_v57 = vld [vmem:[#allocation8 + $0x78] sm:$0xff]   ;;  %v2383_v59 = vld [vmem:[#allocation9] sm:$0xff]   ;;  %v2385_v60 = vld [vmem:[#allocation9 + $0x10] sm:$0xff]  }
 0x1b5   : > { %v1986_v1 = vpop.f32.mrb[31].mxu0  ;;  %2170 = vmatprep.subr.bf16.mxu1 %v2382_v57  ;;  %2204 = vmatprep.subr.bf16.mxu0 %v2383_v59  ;;  %v2387_v61 = vld [vmem:[#allocation9 + $0x20] sm:$0xff]  }
 0x1b6   : > { %v667_v2 = vadd.f32 %v1984_v62, %v2922_v58  ;;  %v1987_v3 = vadd.f32 %v1986_v1, %v1985_v63  ;;  %2136 = vmatprep.mubr.bf16.mxu1 %v775_v0  ;;  %2205 = vmatpush3.bf16.msra.mxu0 %v2383_v59 }
 0x1b8   : > { %v670_v4 = vadd.f32 %v1987_v3, %v2922_v58  ;;  %v751_v56 = vmax.f32 %v667_v2, 0.0  ;;  %2171 = vmatpush3.bf16.msra.mxu1 %v2382_v57 }
 0x1ba   : > { %v752_v5 = vmax.f32 %v670_v4, 0.0  ;;  %v1988_v6 = vpop.f32.mrb[32].mxu0 }
 0x1bb   : > { %v1989_v7 = vpop.f32.mrb[33].mxu0 }
 0x1bc   : > { %v1990_v9 = vadd.f32 %v1989_v7, %v1988_v6  ;;  %v1991_v10 = vpop.f32.mrb[34].mxu0  ;;  %v776_v11 = vpack.c.bf16 %v752_v5, %v751_v56 }
 0x1bd   : > { %v1992_v12 = vpop.f32.mrb[35].mxu0 }
 0x1be   : > { %v675_v13 = vadd.f32 %v1990_v9, %v2922_v58  ;;  %v1993_v14 = vadd.f32 %v1992_v12, %v1991_v10  ;;  %2137 = vmatmul.mubr.bf16.gmra.mrb[28].mxu1 %v776_v11 }
 0x1c0   : > { %v678_v15 = vadd.f32 %v1993_v14, %v2922_v58  ;;  %v753_v16 = vmax.f32 %v675_v13, 0.0 }
 0x1c2   : > { %v754_v17 = vmax.f32 %v678_v15, 0.0  ;;  %v1994_v18 = vpop.f32.mrb[36].mxu0 }
 0x1c3   : > { %v1995_v19 = vpop.f32.mrb[37].mxu0 }
 0x1c4   : > { %v1996_v20 = vadd.f32 %v1995_v19, %v1994_v18  ;;  %v1997_v21 = vpop.f32.mrb[38].mxu0  ;;  %v777_v22 = vpack.c.bf16 %v754_v17, %v753_v16 }
 0x1c5   : > { %v1998_v23 = vpop.f32.mrb[39].mxu0 }
 0x1c6   : > { %v683_v25 = vadd.f32 %v1996_v20, %v2922_v58  ;;  %v1999_v26 = vadd.f32 %v1998_v23, %v1997_v21  ;;  %2140 = vmatprep.mubr.bf16.mxu1 %v777_v22 }
 0x1c8   : > { %v686_v27 = vadd.f32 %v1999_v26, %v2922_v58  ;;  %v755_v28 = vmax.f32 %v683_v25, 0.0 }
 0x1ca   : > { %v756_v30 = vmax.f32 %v686_v27, 0.0  ;;  %v2000_v31 = vpop.f32.mrb[40].mxu0 }
 0x1cb   : > { %v2001_v32 = vpop.f32.mrb[41].mxu0 }
 0x1cc   : > { %v2002_v33 = vadd.f32 %v2001_v32, %v2000_v31  ;;  %v2003_v34 = vpop.f32.mrb[42].mxu0  ;;  %v778_v35 = vpack.c.bf16 %v756_v30, %v755_v28 }
 0x1cd   : > { %v2004_v36 = vpop.f32.mrb[43].mxu0 }
 0x1ce   : > { %v691_v37 = vadd.f32 %v2002_v33, %v2922_v58  ;;  %v2005_v38 = vadd.f32 %v2004_v36, %v2003_v34  ;;  %2141 = vmatmul.mubr.bf16.gmra.mrb[32].mxu1 %v778_v35 }
 0x1d0   : > { %v694_v39 = vadd.f32 %v2005_v38, %v2922_v58  ;;  %v757_v40 = vmax.f32 %v691_v37, 0.0 }
 0x1d2   : > { %v758_v41 = vmax.f32 %v694_v39, 0.0  ;;  %v2006_v42 = vpop.f32.mrb[44].mxu0 }
 0x1d3   : > { %v2007_v43 = vpop.f32.mrb[45].mxu0 }
 0x1d4   : > { %v2008_v44 = vadd.f32 %v2007_v43, %v2006_v42  ;;  %v2009_v45 = vpop.f32.mrb[46].mxu0  ;;  %v779_v46 = vpack.c.bf16 %v758_v41, %v757_v40 }
 0x1d5   : > { %v2010_v48 = vpop.f32.mrb[47].mxu0 }
 0x1d6   : > { %v699_v49 = vadd.f32 %v2008_v44, %v2922_v58  ;;  %v2011_v50 = vadd.f32 %v2010_v48, %v2009_v45  ;;  %2144 = vmatprep.mubr.bf16.mxu1 %v779_v46 }
 0x1d8   : > { %v702_v51 = vadd.f32 %v2011_v50, %v2922_v58  ;;  %v759_v52 = vmax.f32 %v699_v49, 0.0  ;;  %v2384_v58 = vld [vmem:[#allocation9 + $0x8] sm:$0xff]  }
 0x1d9   : > { %2206 = vmatprep.subr.bf16.mxu0 %v2384_v58 }
 0x1da   : > { %v760_v53 = vmax.f32 %v702_v51, 0.0  ;;  %2207 = vmatpush3.bf16.msra.mxu0 %v2384_v58 }
 0x1db   : > { %2208 = vmatprep.subr.bf16.mxu0 %v2385_v60 }
 0x1dc   : > { %v780_v54 = vpack.c.bf16 %v760_v53, %v759_v52 }
 0x1de   : > { %2145 = vmatmul.mubr.bf16.gmra.mrb[36].mxu1 %v780_v54  ;;  %2209 = vmatpush3.bf16.msra.mxu0 %v2385_v60 }
 0x1df   : > { %2148 = vmatprep.mubr.bf16.mxu1 %v2928_v24  ;;  %v2386_v24 = vld [vmem:[#allocation9 + $0x18] sm:$0xff]  }
 0x1e0   : > { %2210 = vmatprep.subr.bf16.mxu0 %v2386_v24 }
 0x1e2   : > { %2211 = vmatpush3.bf16.msra.mxu0 %v2386_v24 }
 0x1e3   : > { %2212 = vmatprep.subr.bf16.mxu0 %v2387_v61 }
 0x1e6   : > { %2149 = vmatmul.mubr.bf16.gmra.mrb[40].mxu1 %v2934_v47  ;;  %v2388_v47 = vld [vmem:[#allocation9 + $0x28] sm:$0xff]   ;;  %2213 = vmatpush3.bf16.msra.mxu0 %v2387_v61 }
 0x1e7   : > { %2152 = vmatprep.mubr.bf16.mxu1 %v2941_v8  ;;  %v2972_v8 = vld [vmem:[%s3170_s4] ss:$0 sm:$0xff]  ;;  %2214 = vmatprep.subr.bf16.mxu0 %v2388_v47 }
 0x1ea   : > { %2215 = vmatpush3.bf16.msra.mxu0 %v2388_v47 }
 0x1ee   : > { %2153 = vmatmul.mubr.bf16.gmra.mrb[44].mxu1 %v2947_v29 }
 0x261   : > { %v2126_v29 = vpop.f32.mrb[16].mxu1 }
 0x262   : > { %v931_v62 = vadd.f32 %v2126_v29, %v2972_v8  ;;  %v922_v63 = vpop.f32.mrb[17].mxu1 }
 0x263   : > { %v923_v0 = vadd.f32 %v2972_v8, %v922_v63  ;;  %v2127_v1 = vpop.f32.mrb[18].mxu1 }
 0x264   : > { %v934_v2 = vadd.f32 %v2127_v1, %v2972_v8  ;;  %v925_v3 = vpop.f32.mrb[19].mxu1  ;;  %v1051_v56 = vmax.f32 %v931_v62, 0.0 }
 0x265   : > { %v926_v4 = vadd.f32 %v2972_v8, %v925_v3  ;;  %v1049_v6 = vmax.f32 %v923_v0, 0.0 }
 0x266   : > { %v1052_v5 = vmax.f32 %v934_v2, 0.0 }
 0x267   : > { %v1050_v7 = vmax.f32 %v926_v4, 0.0 }
 0x268   : > { %v1082_v9 = vpack.c.bf16 %v1052_v5, %v1051_v56 }
 0x269   : > { %v1081_v10 = vpack.c.bf16 %v1050_v7, %v1049_v6 }
 0x26b   : > { %2172 = vmatprep.mubr.bf16.mxu1 %v1081_v10 }
 0x26c   : > { %2173 = vmatmul.mubr.bf16.vlgmr.msra.gmra.mrb[48].mxu1 %v1082_v9 }
 0x271   : > { %v2130_v11 = vpop.f32.mrb[20].mxu1 }
 0x272   : > { %v947_v12 = vadd.f32 %v2130_v11, %v2972_v8  ;;  %v938_v13 = vpop.f32.mrb[21].mxu1 }
 0x273   : > { %v939_v14 = vadd.f32 %v2972_v8, %v938_v13  ;;  %v2131_v15 = vpop.f32.mrb[22].mxu1 }
 0x274   : > { %v950_v16 = vadd.f32 %v2131_v15, %v2972_v8  ;;  %v941_v17 = vpop.f32.mrb[23].mxu1  ;;  %v1055_v19 = vmax.f32 %v947_v12, 0.0 }
 0x275   : > { %v942_v18 = vadd.f32 %v2972_v8, %v941_v17  ;;  %v1053_v21 = vmax.f32 %v939_v14, 0.0 }
 0x276   : > { %v1056_v20 = vmax.f32 %v950_v16, 0.0 }
 0x277   : > { %v1054_v22 = vmax.f32 %v942_v18, 0.0 }
 0x278   : > { %v1084_v23 = vpack.c.bf16 %v1056_v20, %v1055_v19 }
 0x279   : > { %v1083_v25 = vpack.c.bf16 %v1054_v22, %v1053_v21 }
 0x27b   : > { %2176 = vmatprep.mubr.bf16.mxu1 %v1083_v25 }
 0x27c   : > { %2177 = vmatmul.mubr.bf16.gmra.mrb[52].mxu1 %v1084_v23 }
 0x281   : > { %v2134_v26 = vpop.f32.mrb[24].mxu1 }
 0x282   : > { %v963_v27 = vadd.f32 %v2134_v26, %v2972_v8  ;;  %v954_v28 = vpop.f32.mrb[25].mxu1 }
 0x283   : > { %v955_v30 = vadd.f32 %v2972_v8, %v954_v28  ;;  %v2135_v31 = vpop.f32.mrb[26].mxu1 }
 0x284   : > { %v966_v32 = vadd.f32 %v2135_v31, %v2972_v8  ;;  %v957_v33 = vpop.f32.mrb[27].mxu1  ;;  %v1059_v35 = vmax.f32 %v963_v27, 0.0 }
 0x285   : > { %v958_v34 = vadd.f32 %v2972_v8, %v957_v33  ;;  %v1057_v37 = vmax.f32 %v955_v30, 0.0  ;;  %v2389_v33 = vld [vmem:[#allocation9 + $0x30] sm:$0xff]  }
 0x286   : > { %v1060_v36 = vmax.f32 %v966_v32, 0.0  ;;  %2216 = vmatprep.subr.bf16.mxu0 %v2389_v33 }
 0x287   : > { %v1058_v38 = vmax.f32 %v958_v34, 0.0  ;;  %2217 = vmatpush3.bf16.msra.mxu0 %v2389_v33 }
 0x288   : > { %v1086_v39 = vpack.c.bf16 %v1060_v36, %v1059_v35 }
 0x289   : > { %v1085_v40 = vpack.c.bf16 %v1058_v38, %v1057_v37 }
 0x28b   : > { %2180 = vmatprep.mubr.bf16.mxu1 %v1085_v40 }
 0x28c   : > { %2181 = vmatmul.mubr.bf16.gmra.mrb[56].mxu1 %v1086_v39 }
 0x291   : > { %v2138_v41 = vpop.f32.mrb[28].mxu1 }
 0x292   : > { %v979_v42 = vadd.f32 %v2138_v41, %v2972_v8  ;;  %v970_v43 = vpop.f32.mrb[29].mxu1 }
 0x293   : > { %v971_v44 = vadd.f32 %v2972_v8, %v970_v43  ;;  %v2139_v45 = vpop.f32.mrb[30].mxu1 }
 0x294   : > { %v982_v46 = vadd.f32 %v2139_v45, %v2972_v8  ;;  %v973_v48 = vpop.f32.mrb[31].mxu1  ;;  %v1063_v50 = vmax.f32 %v979_v42, 0.0  ;;  %v2390_v42 = vld [vmem:[#allocation9 + $0x38] sm:$0xff]  }
 0x295   : > { %v974_v49 = vadd.f32 %v2972_v8, %v973_v48  ;;  %v1061_v52 = vmax.f32 %v971_v44, 0.0  ;;  %2218 = vmatprep.subr.bf16.mxu0 %v2390_v42 }
 0x296   : > { %v1064_v51 = vmax.f32 %v982_v46, 0.0  ;;  %2219 = vmatpush3.bf16.msra.mxu0 %v2390_v42 }
 0x297   : > { %v1062_v53 = vmax.f32 %v974_v49, 0.0 }
 0x298   : > { %v1088_v54 = vpack.c.bf16 %v1064_v51, %v1063_v50  ;;  %v3009_v51 = vld [vmem:[%s3170_s4 + $0x1] ss:$0 sm:$0xff] }
 0x299   : > { %v1087_v55 = vpack.c.bf16 %v1062_v53, %v1061_v52 }
 0x29b   : > { %2184 = vmatprep.mubr.bf16.mxu1 %v1087_v55 }
 0x29c   : > { %2185 = vmatmul.mubr.bf16.gmra.mrb[60].mxu1 %v1088_v54 }
 0x2a1   : > { %v2142_v57 = vpop.f32.mrb[32].mxu1 }
 0x2a2   : > { %v995_v59 = vadd.f32 %v2142_v57, %v2972_v8  ;;  %v986_v58 = vpop.f32.mrb[33].mxu1 }
 0x2a3   : > { %v987_v60 = vadd.f32 %v2972_v8, %v986_v58  ;;  %v2143_v24 = vpop.f32.mrb[34].mxu1 }
 0x2a4   : > { %v998_v61 = vadd.f32 %v2143_v24, %v2972_v8  ;;  %v989_v47 = vpop.f32.mrb[35].mxu1  ;;  %v1067_v62 = vmax.f32 %v995_v59, 0.0 }
 0x2a5   : > { %v990_v29 = vadd.f32 %v2972_v8, %v989_v47  ;;  %v1065_v0 = vmax.f32 %v987_v60, 0.0 }
 0x2a6   : > { %v1068_v63 = vmax.f32 %v998_v61, 0.0 }
 0x2a7   : > { %v1066_v1 = vmax.f32 %v990_v29, 0.0 }
 0x2a8   : > { %v1090_v2 = vpack.c.bf16 %v1068_v63, %v1067_v62 }
 0x2a9   : > { %v1089_v3 = vpack.c.bf16 %v1066_v1, %v1065_v0 }
 0x2ab   : > { %2188 = vmatprep.mubr.bf16.mxu1 %v1089_v3 }
 0x2ac   : > { %2189 = vmatmul.mubr.bf16.gmra.mrb[64].mxu1 %v1090_v2 }
 0x2b1   : > { %v2146_v4 = vpop.f32.mrb[36].mxu1 }
 0x2b2   : > { %v1011_v56 = vadd.f32 %v2146_v4, %v2972_v8  ;;  %v1002_v5 = vpop.f32.mrb[37].mxu1 }
 0x2b3   : > { %v1003_v6 = vadd.f32 %v2972_v8, %v1002_v5  ;;  %v2147_v7 = vpop.f32.mrb[38].mxu1 }
 0x2b4   : > { %v1014_v9 = vadd.f32 %v2147_v7, %v2972_v8  ;;  %v1005_v10 = vpop.f32.mrb[39].mxu1  ;;  %v1071_v12 = vmax.f32 %v1011_v56, 0.0 }
 0x2b5   : > { %v1006_v11 = vadd.f32 %v2972_v8, %v1005_v10  ;;  %v1069_v14 = vmax.f32 %v1003_v6, 0.0 }
 0x2b6   : > { %v1072_v13 = vmax.f32 %v1014_v9, 0.0 }
 0x2b7   : > { %v1070_v15 = vmax.f32 %v1006_v11, 0.0 }
 0x2b8   : > { %v1092_v16 = vpack.c.bf16 %v1072_v13, %v1071_v12 }
 0x2b9   : > { %v1091_v17 = vpack.c.bf16 %v1070_v15, %v1069_v14  ;;  %v2150_v18 = vpop.f32.mrb[40].mxu1 }
 0x2ba   : > { %v1027_v19 = vadd.f32 %v2150_v18, %v2972_v8  ;;  %v1018_v20 = vpop.f32.mrb[41].mxu1 }
 0x2bb   : > { %v1019_v21 = vadd.f32 %v2972_v8, %v1018_v20  ;;  %v2151_v22 = vpop.f32.mrb[42].mxu1  ;;  %2192 = vmatprep.mubr.bf16.mxu1 %v1091_v17 }
 0x2bc   : > { %v1030_v23 = vadd.f32 %v2151_v22, %v2972_v8  ;;  %v1021_v25 = vpop.f32.mrb[43].mxu1  ;;  %2193 = vmatmul.mubr.bf16.gmra.mrb[68].mxu1 %v1092_v16  ;;  %v1075_v27 = vmax.f32 %v1027_v19, 0.0 }
 0x2bd   : > { %v1022_v26 = vadd.f32 %v2972_v8, %v1021_v25  ;;  %v1073_v30 = vmax.f32 %v1019_v21, 0.0 }
 0x2be   : > { %v1076_v28 = vmax.f32 %v1030_v23, 0.0 }
 0x2bf   : > { %v1074_v31 = vmax.f32 %v1022_v26, 0.0 }
 0x2c0   : > { %v1094_v32 = vpack.c.bf16 %v1076_v28, %v1075_v27 }
 0x2c1   : > { %v1093_v34 = vpack.c.bf16 %v1074_v31, %v1073_v30  ;;  %v2154_v35 = vpop.f32.mrb[44].mxu1 }
 0x2c2   : > { %v1043_v36 = vadd.f32 %v2154_v35, %v2972_v8  ;;  %v1034_v37 = vpop.f32.mrb[45].mxu1 }
 0x2c3   : > { %v1035_v38 = vadd.f32 %v2972_v8, %v1034_v37  ;;  %v2155_v39 = vpop.f32.mrb[46].mxu1  ;;  %2196 = vmatprep.mubr.bf16.mxu1 %v1093_v34 }
 0x2c4   : > { %v1046_v40 = vadd.f32 %v2155_v39, %v2972_v8  ;;  %v1037_v41 = vpop.f32.mrb[47].mxu1  ;;  %2197 = vmatmul.mubr.bf16.gmra.mrb[72].mxu1 %v1094_v32  ;;  %v1079_v44 = vmax.f32 %v1043_v36, 0.0 }
 0x2c5   : > { %v1038_v43 = vadd.f32 %v2972_v8, %v1037_v41  ;;  %v1077_v46 = vmax.f32 %v1035_v38, 0.0 }
 0x2c6   : > { %v1080_v45 = vmax.f32 %v1046_v40, 0.0 }
 0x2c7   : > { %v1078_v48 = vmax.f32 %v1038_v43, 0.0 }
 0x2c8   : > { %v1096_v49 = vpack.c.bf16 %v1080_v45, %v1079_v44 }
 0x2c9   : > { %v1095_v50 = vpack.c.bf16 %v1078_v48, %v1077_v46 }
 0x2cb   : > { %2200 = vmatprep.mubr.bf16.mxu1 %v1095_v50 }
 0x2cc   : > { %2201 = vmatmul.mubr.bf16.gmra.mrb[76].mxu1 %v1096_v49 }
 0x33f   : > { %v2174_v52 = vpop.f32.mrb[48].mxu1 }
 0x340   : > { %v1245_v53 = vadd.f32 %v2174_v52, %v3009_v51  ;;  %v1236_v54 = vpop.f32.mrb[49].mxu1 }
 0x341   : > { %v1237_v8 = vadd.f32 %v3009_v51, %v1236_v54  ;;  %v2175_v55 = vpop.f32.mrb[50].mxu1 }
 0x342   : > { %v1248_v57 = vadd.f32 %v2175_v55, %v3009_v51  ;;  %v1239_v59 = vpop.f32.mrb[51].mxu1  ;;  %v1365_v60 = vmax.f32 %v1245_v53, 0.0 }
 0x343   : > { %v1240_v58 = vadd.f32 %v3009_v51, %v1239_v59  ;;  %v1363_v61 = vmax.f32 %v1237_v8, 0.0 }
 0x344   : > { %v1366_v24 = vmax.f32 %v1248_v57, 0.0 }
 0x345   : > { %v1364_v47 = vmax.f32 %v1240_v58, 0.0 }
 0x346   : > { %v1396_v29 = vpack.c.bf16 %v1366_v24, %v1365_v60 }
 0x347   : > { %v1395_v62 = vpack.c.bf16 %v1364_v47, %v1363_v61 }
 0x349   : > { %2220 = vmatprep.mubr.bf16.mxu0 %v1395_v62 }
 0x34a   : > { %2221 = vmatmul.mubr.bf16.vlgmr.msra.gmra.mrb[48].mxu0 %v1396_v29 }
 0x34f   : > { %v2178_v63 = vpop.f32.mrb[52].mxu1 }
 0x350   : > { %v1261_v0 = vadd.f32 %v2178_v63, %v3009_v51  ;;  %v1252_v1 = vpop.f32.mrb[53].mxu1 }
 0x351   : > { %v1253_v2 = vadd.f32 %v3009_v51, %v1252_v1  ;;  %v2179_v3 = vpop.f32.mrb[54].mxu1 }
 0x352   : > { %v1264_v4 = vadd.f32 %v2179_v3, %v3009_v51  ;;  %v1255_v56 = vpop.f32.mrb[55].mxu1  ;;  %v1369_v6 = vmax.f32 %v1261_v0, 0.0 }
 0x353   : > { %v1256_v5 = vadd.f32 %v3009_v51, %v1255_v56  ;;  %v1367_v9 = vmax.f32 %v1253_v2, 0.0 }
 0x354   : > { %v1370_v7 = vmax.f32 %v1264_v4, 0.0 }
 0x355   : > { %v1368_v10 = vmax.f32 %v1256_v5, 0.0 }
 0x356   : > { %v1398_v11 = vpack.c.bf16 %v1370_v7, %v1369_v6 }
 0x357   : > { %v1397_v12 = vpack.c.bf16 %v1368_v10, %v1367_v9 }
 0x359   : > { %2224 = vmatprep.mubr.bf16.mxu0 %v1397_v12 }
 0x35a   : > { %2225 = vmatmul.mubr.bf16.gmra.mrb[52].mxu0 %v1398_v11 }
 0x35f   : > { %v2182_v13 = vpop.f32.mrb[56].mxu1 }
 0x360   : > { %v1277_v14 = vadd.f32 %v2182_v13, %v3009_v51  ;;  %v1268_v15 = vpop.f32.mrb[57].mxu1 }
 0x361   : > { %v1269_v16 = vadd.f32 %v3009_v51, %v1268_v15  ;;  %v2183_v17 = vpop.f32.mrb[58].mxu1 }
 0x362   : > { %v1280_v18 = vadd.f32 %v2183_v17, %v3009_v51  ;;  %v1271_v19 = vpop.f32.mrb[59].mxu1  ;;  %v1373_v21 = vmax.f32 %v1277_v14, 0.0 }
 0x363   : > { %v1272_v20 = vadd.f32 %v3009_v51, %v1271_v19  ;;  %v1371_v23 = vmax.f32 %v1269_v16, 0.0 }
 0x364   : > { %v1374_v22 = vmax.f32 %v1280_v18, 0.0 }
 0x365   : > { %v1372_v25 = vmax.f32 %v1272_v20, 0.0 }
 0x366   : > { %v1400_v26 = vpack.c.bf16 %v1374_v22, %v1373_v21 }
 0x367   : > { %v1399_v27 = vpack.c.bf16 %v1372_v25, %v1371_v23 }
 0x369   : > { %2228 = vmatprep.mubr.bf16.mxu0 %v1399_v27 }
 0x36a   : > { %2229 = vmatmul.mubr.bf16.gmra.mrb[56].mxu0 %v1400_v26 }
 0x36f   : > { %v2186_v28 = vpop.f32.mrb[60].mxu1 }
 0x370   : > { %v1293_v30 = vadd.f32 %v2186_v28, %v3009_v51  ;;  %v1284_v31 = vpop.f32.mrb[61].mxu1 }
 0x371   : > { %v1285_v32 = vadd.f32 %v3009_v51, %v1284_v31  ;;  %v2187_v33 = vpop.f32.mrb[62].mxu1 }
 0x372   : > { %v1296_v34 = vadd.f32 %v2187_v33, %v3009_v51  ;;  %v1287_v35 = vpop.f32.mrb[63].mxu1  ;;  %v1377_v37 = vmax.f32 %v1293_v30, 0.0 }
 0x373   : > { %v1288_v36 = vadd.f32 %v3009_v51, %v1287_v35  ;;  %v1375_v39 = vmax.f32 %v1285_v32, 0.0 }
 0x374   : > { %v1378_v38 = vmax.f32 %v1296_v34, 0.0 }
 0x375   : > { %v1376_v40 = vmax.f32 %v1288_v36, 0.0  ;;  %v3046_v36 = vld [vmem:[%s3172_s6] ss:$0 sm:$0xff] }
 0x376   : > { %v1402_v41 = vpack.c.bf16 %v1378_v38, %v1377_v37 }
 0x377   : > { %v1401_v42 = vpack.c.bf16 %v1376_v40, %v1375_v39 }
 0x379   : > { %2232 = vmatprep.mubr.bf16.mxu0 %v1401_v42 }
 0x37a   : > { %2233 = vmatmul.mubr.bf16.gmra.mrb[60].mxu0 %v1402_v41 }
 0x37f   : > { %v2190_v43 = vpop.f32.mrb[64].mxu1 }
 0x380   : > { %v1309_v44 = vadd.f32 %v2190_v43, %v3009_v51  ;;  %v1300_v45 = vpop.f32.mrb[65].mxu1 }
 0x381   : > { %v1301_v46 = vadd.f32 %v3009_v51, %v1300_v45  ;;  %v2191_v48 = vpop.f32.mrb[66].mxu1 }
 0x382   : > { %v1312_v49 = vadd.f32 %v2191_v48, %v3009_v51  ;;  %v1303_v50 = vpop.f32.mrb[67].mxu1  ;;  %v1381_v53 = vmax.f32 %v1309_v44, 0.0 }
 0x383   : > { %v1304_v52 = vadd.f32 %v3009_v51, %v1303_v50  ;;  %v1379_v8 = vmax.f32 %v1301_v46, 0.0 }
 0x384   : > { %v1382_v54 = vmax.f32 %v1312_v49, 0.0 }
 0x385   : > { %v1380_v55 = vmax.f32 %v1304_v52, 0.0 }
 0x386   : > { %v1404_v57 = vpack.c.bf16 %v1382_v54, %v1381_v53 }
 0x387   : > { %v1403_v59 = vpack.c.bf16 %v1380_v55, %v1379_v8 }
 0x389   : > { %2236 = vmatprep.mubr.bf16.mxu0 %v1403_v59 }
 0x38a   : > { %2237 = vmatmul.mubr.bf16.gmra.mrb[64].mxu0 %v1404_v57 }
 0x38f   : > { %v2194_v58 = vpop.f32.mrb[68].mxu1 }
 0x390   : > { %v1325_v60 = vadd.f32 %v2194_v58, %v3009_v51  ;;  %v1316_v24 = vpop.f32.mrb[69].mxu1 }
 0x391   : > { %v1317_v61 = vadd.f32 %v3009_v51, %v1316_v24  ;;  %v2195_v47 = vpop.f32.mrb[70].mxu1 }
 0x392   : > { %v1328_v29 = vadd.f32 %v2195_v47, %v3009_v51  ;;  %v1319_v62 = vpop.f32.mrb[71].mxu1  ;;  %v1385_v0 = vmax.f32 %v1325_v60, 0.0 }
 0x393   : > { %v1320_v63 = vadd.f32 %v3009_v51, %v1319_v62  ;;  %v1383_v2 = vmax.f32 %v1317_v61, 0.0 }
 0x394   : > { %v1386_v1 = vmax.f32 %v1328_v29, 0.0 }
 0x395   : > { %v1384_v3 = vmax.f32 %v1320_v63, 0.0 }
 0x396   : > { %v1406_v4 = vpack.c.bf16 %v1386_v1, %v1385_v0 }
 0x397   : > { %v1405_v56 = vpack.c.bf16 %v1384_v3, %v1383_v2  ;;  %v2198_v5 = vpop.f32.mrb[72].mxu1 }
 0x398   : > { %v1341_v6 = vadd.f32 %v2198_v5, %v3009_v51  ;;  %v1332_v7 = vpop.f32.mrb[73].mxu1 }
 0x399   : > { %v1333_v9 = vadd.f32 %v3009_v51, %v1332_v7  ;;  %v2199_v10 = vpop.f32.mrb[74].mxu1  ;;  %2240 = vmatprep.mubr.bf16.mxu0 %v1405_v56 }
 0x39a   : > { %v1344_v11 = vadd.f32 %v2199_v10, %v3009_v51  ;;  %v1335_v12 = vpop.f32.mrb[75].mxu1  ;;  %2241 = vmatmul.mubr.bf16.gmra.mrb[68].mxu0 %v1406_v4  ;;  %v1389_v14 = vmax.f32 %v1341_v6, 0.0 }
 0x39b   : > { %v1336_v13 = vadd.f32 %v3009_v51, %v1335_v12  ;;  %v1387_v16 = vmax.f32 %v1333_v9, 0.0 }
 0x39c   : > { %v1390_v15 = vmax.f32 %v1344_v11, 0.0 }
 0x39d   : > { %v1388_v17 = vmax.f32 %v1336_v13, 0.0 }
 0x39e   : > { %v1408_v18 = vpack.c.bf16 %v1390_v15, %v1389_v14 }
 0x39f   : > { %v1407_v19 = vpack.c.bf16 %v1388_v17, %v1387_v16  ;;  %v2202_v20 = vpop.f32.mrb[76].mxu1 }
 0x3a0   : > { %v1357_v21 = vadd.f32 %v2202_v20, %v3009_v51  ;;  %v1348_v22 = vpop.f32.mrb[77].mxu1 }
 0x3a1   : > { %v1349_v23 = vadd.f32 %v3009_v51, %v1348_v22  ;;  %v2203_v25 = vpop.f32.mrb[78].mxu1  ;;  %2244 = vmatprep.mubr.bf16.mxu0 %v1407_v19 }
 0x3a2   : > { %v1360_v26 = vadd.f32 %v2203_v25, %v3009_v51  ;;  %v1351_v27 = vpop.f32.mrb[79].mxu1  ;;  %2245 = vmatmul.mubr.bf16.gmra.mrb[72].mxu0 %v1408_v18  ;;  %v1393_v30 = vmax.f32 %v1357_v21, 0.0 }
 0x3a3   : > { %v1352_v28 = vadd.f32 %v3009_v51, %v1351_v27  ;;  %v1391_v32 = vmax.f32 %v1349_v23, 0.0 }
 0x3a4   : > { %v1394_v31 = vmax.f32 %v1360_v26, 0.0 }
 0x3a5   : > { %v1392_v33 = vmax.f32 %v1352_v28, 0.0 }
 0x3a6   : > { %v1410_v34 = vpack.c.bf16 %v1394_v31, %v1393_v30 }
 0x3a7   : > { %v1409_v35 = vpack.c.bf16 %v1392_v33, %v1391_v32 }
 0x3a9   : > { %2248 = vmatprep.mubr.bf16.mxu0 %v1409_v35 }
 0x3aa   : > { %2249 = vmatmul.mubr.bf16.gmra.mrb[76].mxu0 %v1410_v34 }
 0x41d   : > { %v2222_v37 = vpop.f32.mrb[48].mxu0 }
 0x41e   : > { %v1557_v38 = vadd.f32 %v2222_v37, %v3046_v36  ;;  %v1548_v39 = vpop.f32.mrb[49].mxu0 }
 0x41f   : > { %v1549_v51 = vadd.f32 %v3046_v36, %v1548_v39  ;;  %v2223_v40 = vpop.f32.mrb[50].mxu0 }
 0x420   : > { %v1677_v41 = vmax.f32 %v1557_v38, 0.0  ;;  %v1560_v42 = vadd.f32 %v2223_v40, %v3046_v36  ;;  %v1551_v43 = vpop.f32.mrb[51].mxu0 }
 0x421   : > { %v1675_v44 = vmax.f32 %v1549_v51, 0.0  ;;  %v1552_v45 = vadd.f32 %v3046_v36, %v1551_v43 }
 0x422   : > { %1709 = vst [vmem:[%s3053_s8 + $0x10] sm:$0xff] %v1677_v41  ;;  %v1678_v46 = vmax.f32 %v1560_v42, 0.0 }
 0x423   : > { %1707 = vst [vmem:[%s3053_s8] sm:$0xff] %v1675_v44  ;;  %v1676_v48 = vmax.f32 %v1552_v45, 0.0 }
 0x424   : > { %1710 = vst [vmem:[%s3053_s8 + $0x18] sm:$0xff] %v1678_v46 }
 0x425   : > { %1708 = vst [vmem:[%s3053_s8 + $0x8] sm:$0xff] %v1676_v48 }
 0x42d   : > { %v2226_v49 = vpop.f32.mrb[52].mxu0 }
 0x42e   : > { %v1573_v50 = vadd.f32 %v2226_v49, %v3046_v36  ;;  %v1564_v52 = vpop.f32.mrb[53].mxu0 }
 0x42f   : > { %v1565_v53 = vadd.f32 %v3046_v36, %v1564_v52  ;;  %v2227_v54 = vpop.f32.mrb[54].mxu0 }
 0x430   : > { %v1681_v8 = vmax.f32 %v1573_v50, 0.0  ;;  %v1576_v55 = vadd.f32 %v2227_v54, %v3046_v36  ;;  %v1567_v57 = vpop.f32.mrb[55].mxu0 }
 0x431   : > { %v1679_v59 = vmax.f32 %v1565_v53, 0.0  ;;  %v1568_v58 = vadd.f32 %v3046_v36, %v1567_v57 }
 0x432   : > { %1713 = vst [vmem:[%s3053_s8 + $0x30] sm:$0xff] %v1681_v8  ;;  %v1682_v60 = vmax.f32 %v1576_v55, 0.0 }
 0x433   : > { %1711 = vst [vmem:[%s3053_s8 + $0x20] sm:$0xff] %v1679_v59  ;;  %v1680_v24 = vmax.f32 %v1568_v58, 0.0 }
 0x434   : > { %1714 = vst [vmem:[%s3053_s8 + $0x38] sm:$0xff] %v1682_v60 }
 0x435   : > { %1712 = vst [vmem:[%s3053_s8 + $0x28] sm:$0xff] %v1680_v24 }
 0x43d   : > { %v2230_v61 = vpop.f32.mrb[56].mxu0 }
 0x43e   : > { %v1589_v47 = vadd.f32 %v2230_v61, %v3046_v36  ;;  %v1580_v29 = vpop.f32.mrb[57].mxu0 }
 0x43f   : > { %v1581_v62 = vadd.f32 %v3046_v36, %v1580_v29  ;;  %v2231_v63 = vpop.f32.mrb[58].mxu0 }
 0x440   : > { %v1685_v0 = vmax.f32 %v1589_v47, 0.0  ;;  %v1592_v1 = vadd.f32 %v2231_v63, %v3046_v36  ;;  %v1583_v2 = vpop.f32.mrb[59].mxu0 }
 0x441   : > { %v1683_v3 = vmax.f32 %v1581_v62, 0.0  ;;  %v1584_v4 = vadd.f32 %v3046_v36, %v1583_v2 }
 0x442   : > { %1717 = vst [vmem:[%s3053_s8 + $0x50] sm:$0xff] %v1685_v0  ;;  %v1686_v56 = vmax.f32 %v1592_v1, 0.0 }
 0x443   : > { %1715 = vst [vmem:[%s3053_s8 + $0x40] sm:$0xff] %v1683_v3  ;;  %v1684_v5 = vmax.f32 %v1584_v4, 0.0 }
 0x444   : > { %1718 = vst [vmem:[%s3053_s8 + $0x58] sm:$0xff] %v1686_v56 }
 0x445   : > { %1716 = vst [vmem:[%s3053_s8 + $0x48] sm:$0xff] %v1684_v5 }
 0x44d   : > { %v2234_v6 = vpop.f32.mrb[60].mxu0 }
 0x44e   : > { %v1605_v7 = vadd.f32 %v2234_v6, %v3046_v36  ;;  %v1596_v9 = vpop.f32.mrb[61].mxu0 }
 0x44f   : > { %v1597_v10 = vadd.f32 %v3046_v36, %v1596_v9  ;;  %v2235_v11 = vpop.f32.mrb[62].mxu0 }
 0x450   : > { %v1689_v12 = vmax.f32 %v1605_v7, 0.0  ;;  %v1608_v13 = vadd.f32 %v2235_v11, %v3046_v36  ;;  %v1599_v14 = vpop.f32.mrb[63].mxu0 }
 0x451   : > { %v1687_v15 = vmax.f32 %v1597_v10, 0.0  ;;  %v1600_v16 = vadd.f32 %v3046_v36, %v1599_v14 }
 0x452   : > { %1721 = vst [vmem:[%s3053_s8 + $0x70] sm:$0xff] %v1689_v12  ;;  %v1690_v17 = vmax.f32 %v1608_v13, 0.0 }
 0x453   : > { %1719 = vst [vmem:[%s3053_s8 + $0x60] sm:$0xff] %v1687_v15  ;;  %v1688_v18 = vmax.f32 %v1600_v16, 0.0 }
 0x454   : > { %1722 = vst [vmem:[%s3053_s8 + $0x78] sm:$0xff] %v1690_v17 }
 0x455   : > { %1720 = vst [vmem:[%s3053_s8 + $0x68] sm:$0xff] %v1688_v18 }
 0x45d   : > { %v2238_v19 = vpop.f32.mrb[64].mxu0 }
 0x45e   : > { %v1621_v20 = vadd.f32 %v2238_v19, %v3046_v36  ;;  %v1612_v21 = vpop.f32.mrb[65].mxu0 }
 0x45f   : > { %v1613_v22 = vadd.f32 %v3046_v36, %v1612_v21  ;;  %v2239_v23 = vpop.f32.mrb[66].mxu0 }
 0x460   : > { %v1693_v25 = vmax.f32 %v1621_v20, 0.0  ;;  %v1624_v26 = vadd.f32 %v2239_v23, %v3046_v36  ;;  %v1615_v27 = vpop.f32.mrb[67].mxu0 }
 0x461   : > { %v1691_v28 = vmax.f32 %v1613_v22, 0.0  ;;  %v1616_v30 = vadd.f32 %v3046_v36, %v1615_v27 }
 0x462   : > { %1725 = vst [vmem:[%s3053_s8 + $0x90] sm:$0xff] %v1693_v25  ;;  %v1694_v31 = vmax.f32 %v1624_v26, 0.0 }
 0x463   : > { %1723 = vst [vmem:[%s3053_s8 + $0x80] sm:$0xff] %v1691_v28  ;;  %v1692_v32 = vmax.f32 %v1616_v30, 0.0 }
 0x464   : > { %1726 = vst [vmem:[%s3053_s8 + $0x98] sm:$0xff] %v1694_v31 }
 0x465   : > { %1724 = vst [vmem:[%s3053_s8 + $0x88] sm:$0xff] %v1692_v32 }
 0x46d   : > { %v2242_v33 = vpop.f32.mrb[68].mxu0 }
 0x46e   : > { %v1637_v34 = vadd.f32 %v2242_v33, %v3046_v36  ;;  %v1628_v35 = vpop.f32.mrb[69].mxu0 }
 0x46f   : > { %v1629_v37 = vadd.f32 %v3046_v36, %v1628_v35  ;;  %v2243_v38 = vpop.f32.mrb[70].mxu0 }
 0x470   : > { %v1697_v39 = vmax.f32 %v1637_v34, 0.0  ;;  %v1640_v51 = vadd.f32 %v2243_v38, %v3046_v36  ;;  %v1631_v40 = vpop.f32.mrb[71].mxu0 }
 0x471   : > { %v1695_v41 = vmax.f32 %v1629_v37, 0.0  ;;  %v1632_v42 = vadd.f32 %v3046_v36, %v1631_v40 }
 0x472   : > { %1729 = vst [vmem:[%s3053_s8 + $0xb0] sm:$0xff] %v1697_v39  ;;  %v1698_v43 = vmax.f32 %v1640_v51, 0.0 }
 0x473   : > { %1727 = vst [vmem:[%s3053_s8 + $0xa0] sm:$0xff] %v1695_v41  ;;  %v1696_v44 = vmax.f32 %v1632_v42, 0.0 }
 0x474   : > { %1730 = vst [vmem:[%s3053_s8 + $0xb8] sm:$0xff] %v1698_v43 }
 0x475   : > { %1728 = vst [vmem:[%s3053_s8 + $0xa8] sm:$0xff] %v1696_v44  ;;  %v2246_v45 = vpop.f32.mrb[72].mxu0 }
 0x476   : > { %v1653_v46 = vadd.f32 %v2246_v45, %v3046_v36  ;;  %v1644_v48 = vpop.f32.mrb[73].mxu0 }
 0x477   : > { %v1645_v49 = vadd.f32 %v3046_v36, %v1644_v48  ;;  %v2247_v50 = vpop.f32.mrb[74].mxu0 }
 0x478   : > { %v1701_v52 = vmax.f32 %v1653_v46, 0.0  ;;  %v1656_v53 = vadd.f32 %v2247_v50, %v3046_v36  ;;  %v1647_v54 = vpop.f32.mrb[75].mxu0 }
 0x479   : > { %v1699_v8 = vmax.f32 %v1645_v49, 0.0  ;;  %v1648_v55 = vadd.f32 %v3046_v36, %v1647_v54 }
 0x47a   : > { %1733 = vst [vmem:[%s3053_s8 + $0xd0] sm:$0xff] %v1701_v52  ;;  %v1702_v57 = vmax.f32 %v1656_v53, 0.0 }
 0x47b   : > { %1731 = vst [vmem:[%s3053_s8 + $0xc0] sm:$0xff] %v1699_v8  ;;  %v1700_v59 = vmax.f32 %v1648_v55, 0.0 }
 0x47c   : > { %1734 = vst [vmem:[%s3053_s8 + $0xd8] sm:$0xff] %v1702_v57 }
 0x47d   : > { %1732 = vst [vmem:[%s3053_s8 + $0xc8] sm:$0xff] %v1700_v59  ;;  %v2250_v58 = vpop.f32.mrb[76].mxu0 }
 0x47e   : > { %v1669_v60 = vadd.f32 %v2250_v58, %v3046_v36  ;;  %v1660_v24 = vpop.f32.mrb[77].mxu0 }
 0x47f   : > { %v1661_v61 = vadd.f32 %v3046_v36, %v1660_v24  ;;  %v2251_v47 = vpop.f32.mrb[78].mxu0 }
 0x480   : > { %v1705_v29 = vmax.f32 %v1669_v60, 0.0  ;;  %v1672_v62 = vadd.f32 %v2251_v47, %v3046_v36  ;;  %v1663_v63 = vpop.f32.mrb[79].mxu0 }
 0x481   : > { %v1703_v0 = vmax.f32 %v1661_v61, 0.0  ;;  %v1664_v1 = vadd.f32 %v3046_v36, %v1663_v63 }
 0x482   : > { %1737 = vst [vmem:[%s3053_s8 + $0xf0] sm:$0xff] %v1705_v29  ;;  %v1706_v2 = vmax.f32 %v1672_v62, 0.0 }
 0x483   : > { %1735 = vst [vmem:[%s3053_s8 + $0xe0] sm:$0xff] %v1703_v0  ;;  %v1704_v3 = vmax.f32 %v1664_v1, 0.0 }
 0x484   : > { %1738 = vst [vmem:[%s3053_s8 + $0xf8] sm:$0xff] %v1706_v2 }
 0x485   : > { %1736 = vst [vmem:[%s3053_s8 + $0xe8] sm:$0xff] %v1704_v3 }
 0x486   : > { %2518 = shalt.err (!%p2515_p4)
}
 0x487   : > { %s2519_s14 = scalar_lea.hbm %s3117_s30, 4096  ;;  %s2523_s12 = scalar_lea.hbm %s3173_s7, 8192 }
 0x488   : > { %p2520_p9 = scmp.ne.s32.totalorder %s3117_s30, %s2519_s14  ;;  %p2524_p8 = scmp.lt.u32.totalorder %s3117_s30, %s3173_s7 }
 0x489   : > { %p2525_p13 = scmp.lt.u32.totalorder %s2523_s12, %s2519_s14  ;;  %p2527_p10 = scmp.lt.u32.totalorder %s2519_s14, %s3117_s30 }
 0x48a   : > { %p2521_p0 = pnand %p2520_p9, %p2786_p5 }
 0x48b   : > { %p2526_p6 = por %p2525_p13, %p2524_p8 }
 0x48c   : > { %p2522_p11 = pneg %p2521_p0 }
 0x48d   : > { %p2528_p3 = por %p2527_p10, %p2526_p6 }
 0x48f   : > { %p2529_p7 = pnand %p2528_p3, %p2522_p11 }
 0x491   : > { %2532 = shalt.err (!%p2529_p7)
}
 0x492   : > { %s2590_s13 = smov 128   ;;  %s2591_s20 = smov 8  }
 0x493   : > { %2282 = dma.vmem_to_hbm [thread:$0]  (%p2786_p5), %s3119_s16, 4096, %s3117_s30, %s1740_s28, %s2590_s13, %s2590_s13, %s2591_s20  }
 0x494 PF: > { %s3193_s9 = sld [smem:[#allocation16_spill]]  ;;  %s1768_s23 = sand.u32 1, %s2567_s24  }
 0x495   : > { %p3195_p1 = scmp.ge.s32.totalorder %s2579_s27, 2  ;;  %s1769_s10 = scalar_lea.sflag [#allocation5], %s1768_s23 }
 0x49a   : > { %p3194_p12 = scmp.ne.s32.totalorder %s3193_s9, 0 }
 0x49c   : > { %p2299_p2 = pnand %p3195_p1, %p3194_p12 }
 0x49e   : > { %2562 = dma.done.wait (!%p2299_p2), %s1769_s10, 4096  }
 0x49f   : > { %2564 = vsyncadd (!%p2299_p2), %s1769_s10, 4294963200  ;;  %p22_p4 = scmp.ge.s32.totalorder %s2772_s22, 4   ;;  %s3196_s24 = smov %s2571_s25 }
 0x4a0   : > { %s3197_s25 = smov %s2575_s26  ;;  %s3198_s26 = smov %s2782_s18 }
 0x4a1   : > { %s3199_s27 = smov %s2772_s22  ;;  %24 = sbr.rel (!%p22_p4) target bundleno = 7 (0x7), region = 107 }
 0x4a8   :  { %1774 = vsyncpa [#allocation4], 1 }
 0x4a9   :  { %1776 = vsyncpa [#allocation4 + $0x1], 1 }
 0x4aa   :  { %1777 = vsyncpa [#allocation7], 1 }
 0x4ab   :  { %1778 = vsyncpa [#allocation10], 1 }
 0x4ac   :  { %1779 = vsyncpa [#allocation5], 1 }
 0x4ad   :  { %1781 = vsyncpa [#allocation5 + $0x1], 1 }

</bundles_post_ra>
